<compile_context>
chip_gen: v7x
topology: tpu7x:2x2x1
jax: 0.10.0
libtpu: 0.0.40
codegen_flags: <defaults>
</compile_context>

<pallas_src>
import functools
import numpy as np

import jax
import jax.numpy as jnp
from jax.experimental import pallas as pl
from jax.experimental.pallas import tpu as pltpu

# Zero-ring padded layout: H 7 -> 9 (ring row top+bottom), W 7 -> 8 (one pad column).
H_PAD, W_PAD = 9, 8
ROWS_PER_IMG = H_PAD * W_PAD     # 72 rows per image, multiple of 8 sublanes

_TAPS = tuple((dh, dw) for dh in (-1, 0, 1) for dw in (-1, 0, 1))   # k = (dh+1)*3 + (dw+1)


def _acmodel_kernel(image_ref, mask_ref, emb_ref,
                    c1w_ref, bn1g_ref, bn1b_ref,
                    c2w_ref, bn2g_ref, bn2b_ref,
                    hw1_ref, hb1_ref, hw2_ref, hb2_ref,
                    out_ref, *, B, max_value, n_actions, real_count):
    f32 = jnp.float32
    bf16 = jnp.bfloat16
    N = B * ROWS_PER_IMG
    C = emb_ref.shape[1]
    vocab = emb_ref.shape[0]                     # 3 * max_value
    inv_count = 1.0 / float(real_count)

    mask = mask_ref[...]                         # (N, 1) f32, 1.0 on real pixel rows

    # ---- ImageBOWEmbedding: sum_c Embedding(image[..., c] + c*max_value) as one matmul.
    # Ring rows hold the sentinel value 3*max_value, so their one-hot rows are all-zero
    # and the embedded activation is exactly zero there (no extra mask multiply needed).
    img = image_ref[...]                                               # (N, 3) int32
    lane = jax.lax.broadcasted_iota(jnp.int32, (N, vocab), 1)
    bow = jnp.zeros((N, vocab), f32)
    for c in range(3):
        idx = img[:, c:c + 1] + c * max_value                          # (N, 1)
        bow = bow + (lane == idx).astype(f32)
    x = jnp.dot(bow.astype(bf16), emb_ref[...], preferred_element_type=f32)   # (N, C) f32

    def im2col(x_in):
        # Row r <-> (b, h_pad, w_pad).  A row shift by delta = dh*W_PAD + dw reaches the
        # (h+dh, w+dw) neighbour; every out-of-image tap lands on a zero ring row / zero
        # pad column (including roll wrap-around, which always hits a ring row of the
        # last image), so NO per-tap mask is required.  Slabs are cast to bf16 before
        # the concat so the (N, 9*C) buffer is half-size and feeds the MXU directly.
        cols = []
        for (dh, dw) in _TAPS:
            delta = dh * W_PAD + dw
            shifted = x_in if delta == 0 else jnp.roll(x_in, -delta, axis=0)
            cols.append(shifted.astype(bf16))
        return jnp.concatenate(cols, axis=1)                            # (N, 9*C) bf16

    def conv_bn_relu(x_in, w_ref, g_ref, beta_ref):
        # 3x3 "same" conv as one K=9*C MXU matmul (conv bias omitted: it cancels exactly
        # under train-mode BatchNorm).  BN batch statistics are taken over real pixel
        # rows only, with a two-pass (centered) variance for numerical robustness.
        acc = jnp.dot(im2col(x_in), w_ref[...], preferred_element_type=f32)   # (N, C) f32
        acc = acc * mask                                           # zero ring-row conv output
        mean = jnp.sum(acc, axis=0, keepdims=True) * inv_count
        diff = (acc - mean) * mask
        var = jnp.sum(diff * diff, axis=0, keepdims=True) * inv_count
        y = diff * jax.lax.rsqrt(var + 1e-5) * g_ref[...] + beta_ref[...]
        # Re-zero ring rows (beta / -mean leak) so the next im2col / pool stay exact.
        return jnp.maximum(y, 0.0) * mask

    x = conv_bn_relu(x, c1w_ref, bn1g_ref, bn1b_ref)
    x = conv_bn_relu(x, c2w_ref, bn2g_ref, bn2b_ref)

    # ---- film_pool: MaxPool2d((7,7)) + ReLU, vectorized over the batch.
    # Ring rows are zero and real values are post-ReLU (>= 0), so the max over all 72
    # padded rows equals relu(max over the 49 real cells).
    pooled = jnp.max(x.reshape(B, ROWS_PER_IMG, C), axis=1)             # (B, C) f32
    pooled = jnp.maximum(pooled, 0.0)

    # ---- fused actor|critic heads -> one lane-dense (B, 128) store.
    h = jnp.tanh(jnp.dot(pooled.astype(bf16), hw1_ref[...],
                         preferred_element_type=f32) + hb1_ref[...])    # (B, 128)
    raw = jnp.dot(h.astype(bf16), hw2_ref[...],
                  preferred_element_type=f32) + hb2_ref[...]            # (B, 128)

    lane_id = jax.lax.broadcasted_iota(jnp.int32, raw.shape, 1)
    is_logit = lane_id < n_actions
    is_value = lane_id == n_actions
    masked_logits = jnp.where(is_logit, raw, -jnp.inf)
    m = jnp.max(masked_logits, axis=1, keepdims=True)
    lse = m + jnp.log(jnp.sum(jnp.exp(masked_logits - m), axis=1, keepdims=True))
    logp = raw - lse
    # lanes 0..A-1: log-softmax logits; lane A: value; remaining lanes: 0.
    out_ref[...] = jnp.where(is_logit, logp, jnp.where(is_value, raw, 0.0))


def _real_row_mask(B):
    """(B*72, 1) f32 mask: 1.0 on real pixel rows, 0.0 on ring rows / pad column."""
    m = np.zeros((B, H_PAD, W_PAD, 1), np.float32)
    m[:, 1:8, 0:7, :] = 1.0
    return jnp.asarray(m.reshape(B * ROWS_PER_IMG, 1))


def _unit_row_linear(key, in_dim, out_dim):
    """Matches initialize_parameters: N(0,1) weight rows renormalized to unit L2.
    Returned in kernel layout (in_dim, out_dim)."""
    w = jax.random.normal(key, (out_dim, in_dim), jnp.float32)
    w = w / jnp.sqrt(jnp.sum(w * w, axis=1, keepdims=True))
    return jnp.transpose(w)


def init_params(key, *, max_value, C=128, n_actions=7):
    ks = jax.random.split(key, 7)
    p = {}
    # nn.Embedding default N(0,1); stored bf16 (MXU operand, f32 accumulation).
    p['emb'] = jax.random.normal(ks[0], (3 * max_value, C), jnp.float32).astype(jnp.bfloat16)
    # Conv weights in im2col layout (9*Cin, Cout): row k*Cin + cin <- torch_W[cout, cin, kh, kw],
    # with k = kh*3 + kw.  Conv biases are omitted (exactly cancelled by train-mode BN).
    p['c1w'] = (0.05 * jax.random.normal(ks[1], (9 * C, C), jnp.float32)).astype(jnp.bfloat16)
    p['c2w'] = (0.05 * jax.random.normal(ks[2], (9 * C, C), jnp.float32)).astype(jnp.bfloat16)
    # BatchNorm2d defaults: gamma=1, beta=0 (kept f32).
    p['bn1g'] = jnp.ones((1, C), jnp.float32)
    p['bn1b'] = jnp.zeros((1, C), jnp.float32)
    p['bn2g'] = jnp.ones((1, C), jnp.float32)
    p['bn2b'] = jnp.zeros((1, C), jnp.float32)
    # Actor / critic Linear layers (initialize_parameters: unit-norm rows, zero bias), fused:
    #   layer 1: [aw1 | cw1] -> (C, 128)
    #   layer 2: block-diagonal, padded to 128 output lanes so the kernel's fused output
    #            store is lane-dense (lanes 0..A-1 = actor, lane A = critic, rest zero).
    aw1 = _unit_row_linear(ks[3], C, 64)
    cw1 = _unit_row_linear(ks[4], C, 64)
    aw2 = _unit_row_linear(ks[5], 64, n_actions)
    cw2 = _unit_row_linear(ks[6], 64, 1)
    p['hw1'] = jnp.concatenate([aw1, cw1], axis=1).astype(jnp.bfloat16)        # (C, 128)
    p['hb1'] = jnp.zeros((1, 128), jnp.float32)
    hw2 = jnp.zeros((128, 128), jnp.float32)
    hw2 = hw2.at[:64, :n_actions].set(aw2)
    hw2 = hw2.at[64:, n_actions:n_actions + 1].set(cw2)
    p['hw2'] = hw2.astype(jnp.bfloat16)                                        # (128, 128)
    p['hb2'] = jnp.zeros((1, 128), jnp.float32)
    p['n_actions'] = n_actions
    return p


def acmodel_forward(params, image, memory):
    """image: (B, 7, 7, 3) integer obs.image; memory: (B, 2*memory_dim)."""
    B, H, W, _ = image.shape
    C = params['hw1'].shape[0]
    A = params['n_actions']
    max_value = params['emb'].shape[0] // 3
    N = B * ROWS_PER_IMG

    # Zero-ring padding: real cells live at [1:1+H, 0:W]; the sentinel value 3*max_value
    # makes the BOW one-hot of ring rows all-zero inside the kernel.
    img_pad = jnp.full((B, H_PAD, W_PAD, 3), 3 * max_value, jnp.int32)
    img_pad = img_pad.at[:, 1:1 + H, 0:W, :].set(image.astype(jnp.int32))
    img_flat = img_pad.reshape(N, 3)
    mask = _real_row_mask(B)

    kernel = functools.partial(_acmodel_kernel, B=B, max_value=max_value,
                               n_actions=A, real_count=B * H * W)

    operands = (img_flat, mask, params['emb'],
                params['c1w'], params['bn1g'], params['bn1b'],
                params['c2w'], params['bn2g'], params['bn2b'],
                params['hw1'], params['hb1'], params['hw2'], params['hb2'])

    flops = (2 * N * (3 * max_value) * C           # BOW embedding matmul
             + 2 * (2 * N * (9 * C) * C)           # two 3x3 convs as im2col matmuls
             + 2 * (2 * B * C * C))                # fused actor/critic heads
    transcendentals = 2 * B * C + 2 * C            # tanh + exp + rsqrt (approx)
    bytes_accessed = (sum(int(np.prod(a.shape)) * a.dtype.itemsize for a in operands)
                      + B * C * 4)

    vmem = lambda: pl.BlockSpec(memory_space=pltpu.MemorySpace.VMEM)
    fused = pl.pallas_call(
        kernel,
        out_shape=jax.ShapeDtypeStruct((B, C), jnp.float32),
        in_specs=[vmem() for _ in operands],
        out_specs=vmem(),
        compiler_params=pltpu.CompilerParams(vmem_limit_bytes=32 * 1024 * 1024),
        cost_estimate=pl.CostEstimate(flops=flops, transcendentals=transcendentals,
                                      bytes_accessed=bytes_accessed),
    )(*operands)

    return {
        'dist_logits': fused[:, :A],   # log-softmax logits of the Categorical dist
        'value': fused[:, A],
        'memory': memory,              # use_memory=False: passed through unchanged
        'extra_predictions': {},       # aux_info=None
    }


if __name__ == "__main__":
    B, H, W = 2, 7, 7            # babyai observation grid
    max_value = 8                # obs_space['image']
    n_actions = 7                # action_space.n
    memory_dim = 128

    key = jax.random.PRNGKey(0)
    k_params, k_img = jax.random.split(key)
    params = init_params(k_params, max_value=max_value, C=128, n_actions=n_actions)
    image = jax.random.randint(k_img, (B, H, W, 3), 0, max_value, dtype=jnp.int32)
    memory = jnp.zeros((B, 2 * memory_dim), jnp.float32)

    out = acmodel_forward(params, image, memory)
    out = jax.block_until_ready(out)

    assert out['dist_logits'].shape == (B, n_actions)
    assert out['value'].shape == (B,)
    assert bool(jnp.all(jnp.isfinite(out['dist_logits'])))
    assert bool(jnp.all(jnp.isfinite(out['value'])))
    # log-softmax rows must exponentiate to probability distributions
    assert bool(jnp.allclose(jnp.sum(jnp.exp(out['dist_logits']), axis=1), 1.0, atol=1e-4))
    print("KERNEL_OK")
</pallas_src>

<mosaic_0001>
module attributes {stable_mosaic.version = 11 : i64} {
  func.func @_acmodel_kernel(%arg0: memref<144x3xi32, #tpu.memory_space<vmem>>, %arg1: memref<144x1xf32, #tpu.memory_space<vmem>>, %arg2: memref<24x128xbf16, #tpu.memory_space<vmem>>, %arg3: memref<1152x128xbf16, #tpu.memory_space<vmem>>, %arg4: memref<1x128xf32, #tpu.memory_space<vmem>>, %arg5: memref<1x128xf32, #tpu.memory_space<vmem>>, %arg6: memref<1152x128xbf16, #tpu.memory_space<vmem>>, %arg7: memref<1x128xf32, #tpu.memory_space<vmem>>, %arg8: memref<1x128xf32, #tpu.memory_space<vmem>>, %arg9: memref<128x128xbf16, #tpu.memory_space<vmem>>, %arg10: memref<1x128xf32, #tpu.memory_space<vmem>>, %arg11: memref<128x128xbf16, #tpu.memory_space<vmem>>, %arg12: memref<1x128xf32, #tpu.memory_space<vmem>>, %arg13: memref<2x128xf32, #tpu.memory_space<vmem>>) attributes {dimension_semantics = [], scalar_prefetch = 0 : i64, scratch_operands = 0 : i64, tpu.core_type = #tpu.core_type<tc>} {
    %c0 = arith.constant 0 : index
    %c0_0 = arith.constant 0 : index
    %0 = vector.load %arg1[%c0, %c0_0] : memref<144x1xf32, #tpu.memory_space<vmem>>, vector<144x1xf32>
    %c0_1 = arith.constant 0 : index
    %c0_2 = arith.constant 0 : index
    %1 = vector.load %arg0[%c0_1, %c0_2] : memref<144x3xi32, #tpu.memory_space<vmem>>, vector<144x3xi32>
    %2 = tpu.iota {dimensions = array<i32: 1>} : vector<144x24xi32>
    %cst = arith.constant 0.000000e+00 : f32
    %3 = vector.broadcast %cst : f32 to vector<144x24xf32>
    %4 = vector.extract_strided_slice %1 {offsets = [0, 0], sizes = [144, 1], strides = [1, 1]} : vector<144x3xi32> to vector<144x1xi32>
    %c0_i32 = arith.constant 0 : i32
    %5 = vector.broadcast %c0_i32 : i32 to vector<144x1xi32>
    %6 = arith.addi %4, %5 : vector<144x1xi32>
    %7 = vector.broadcast %6 : vector<144x1xi32> to vector<144x24xi32>
    %8 = arith.cmpi eq, %2, %7 : vector<144x24xi32>
    %9 = arith.extui %8 : vector<144x24xi1> to vector<144x24xi32>
    %10 = arith.sitofp %9 : vector<144x24xi32> to vector<144x24xf32>
    %11 = arith.addf %3, %10 : vector<144x24xf32>
    %12 = vector.extract_strided_slice %1 {offsets = [0, 1], sizes = [144, 1], strides = [1, 1]} : vector<144x3xi32> to vector<144x1xi32>
    %c8_i32 = arith.constant 8 : i32
    %13 = vector.broadcast %c8_i32 : i32 to vector<144x1xi32>
    %14 = arith.addi %12, %13 : vector<144x1xi32>
    %15 = vector.broadcast %14 : vector<144x1xi32> to vector<144x24xi32>
    %16 = arith.cmpi eq, %2, %15 : vector<144x24xi32>
    %17 = arith.extui %16 : vector<144x24xi1> to vector<144x24xi32>
    %18 = arith.sitofp %17 : vector<144x24xi32> to vector<144x24xf32>
    %19 = arith.addf %11, %18 : vector<144x24xf32>
    %20 = vector.extract_strided_slice %1 {offsets = [0, 2], sizes = [144, 1], strides = [1, 1]} : vector<144x3xi32> to vector<144x1xi32>
    %c16_i32 = arith.constant 16 : i32
    %21 = vector.broadcast %c16_i32 : i32 to vector<144x1xi32>
    %22 = arith.addi %20, %21 : vector<144x1xi32>
    %23 = vector.broadcast %22 : vector<144x1xi32> to vector<144x24xi32>
    %24 = arith.cmpi eq, %2, %23 : vector<144x24xi32>
    %25 = arith.extui %24 : vector<144x24xi1> to vector<144x24xi32>
    %26 = arith.sitofp %25 : vector<144x24xi32> to vector<144x24xf32>
    %27 = arith.addf %19, %26 : vector<144x24xf32>
    %28 = arith.truncf %27 : vector<144x24xf32> to vector<144x24xbf16>
    %c0_3 = arith.constant 0 : index
    %c0_4 = arith.constant 0 : index
    %29 = vector.load %arg2[%c0_3, %c0_4] : memref<24x128xbf16, #tpu.memory_space<vmem>>, vector<24x128xbf16>
    %cst_5 = arith.constant dense<0.000000e+00> : vector<144x128xf32>
    %30 = tpu.matmul %28, %29, %cst_5 {dimension_numbers = #tpu.dot_dimension_numbers<[1], [0], [0], [1], [0, 0, 1, 1], [], []>} : vector<144x24xbf16>, vector<24x128xbf16>, vector<144x128xf32> -> vector<144x128xf32>
    %31 = vector.extract_strided_slice %30 {offsets = [135, 0], sizes = [9, 128], strides = [1, 1]} : vector<144x128xf32> to vector<9x128xf32>
    %32 = vector.extract_strided_slice %30 {offsets = [0, 0], sizes = [135, 128], strides = [1, 1]} : vector<144x128xf32> to vector<135x128xf32>
    %33 = tpu.concatenate %31, %32 in 0 : vector<9x128xf32>, vector<135x128xf32> -> vector<144x128xf32>
    %34 = arith.truncf %33 : vector<144x128xf32> to vector<144x128xbf16>
    %35 = vector.extract_strided_slice %30 {offsets = [136, 0], sizes = [8, 128], strides = [1, 1]} : vector<144x128xf32> to vector<8x128xf32>
    %36 = vector.extract_strided_slice %30 {offsets = [0, 0], sizes = [136, 128], strides = [1, 1]} : vector<144x128xf32> to vector<136x128xf32>
    %37 = tpu.concatenate %35, %36 in 0 : vector<8x128xf32>, vector<136x128xf32> -> vector<144x128xf32>
    %38 = arith.truncf %37 : vector<144x128xf32> to vector<144x128xbf16>
    %39 = vector.extract_strided_slice %30 {offsets = [137, 0], sizes = [7, 128], strides = [1, 1]} : vector<144x128xf32> to vector<7x128xf32>
    %40 = vector.extract_strided_slice %30 {offsets = [0, 0], sizes = [137, 128], strides = [1, 1]} : vector<144x128xf32> to vector<137x128xf32>
    %41 = tpu.concatenate %39, %40 in 0 : vector<7x128xf32>, vector<137x128xf32> -> vector<144x128xf32>
    %42 = arith.truncf %41 : vector<144x128xf32> to vector<144x128xbf16>
    %43 = vector.extract_strided_slice %30 {offsets = [143, 0], sizes = [1, 128], strides = [1, 1]} : vector<144x128xf32> to vector<1x128xf32>
    %44 = vector.extract_strided_slice %30 {offsets = [0, 0], sizes = [143, 128], strides = [1, 1]} : vector<144x128xf32> to vector<143x128xf32>
    %45 = tpu.concatenate %43, %44 in 0 : vector<1x128xf32>, vector<143x128xf32> -> vector<144x128xf32>
    %46 = arith.truncf %45 : vector<144x128xf32> to vector<144x128xbf16>
    %47 = arith.truncf %30 : vector<144x128xf32> to vector<144x128xbf16>
    %48 = vector.extract_strided_slice %30 {offsets = [1, 0], sizes = [143, 128], strides = [1, 1]} : vector<144x128xf32> to vector<143x128xf32>
    %49 = vector.extract_strided_slice %30 {offsets = [0, 0], sizes = [1, 128], strides = [1, 1]} : vector<144x128xf32> to vector<1x128xf32>
    %50 = tpu.concatenate %48, %49 in 0 : vector<143x128xf32>, vector<1x128xf32> -> vector<144x128xf32>
    %51 = arith.truncf %50 : vector<144x128xf32> to vector<144x128xbf16>
    %52 = vector.extract_strided_slice %30 {offsets = [7, 0], sizes = [137, 128], strides = [1, 1]} : vector<144x128xf32> to vector<137x128xf32>
    %53 = vector.extract_strided_slice %30 {offsets = [0, 0], sizes = [7, 128], strides = [1, 1]} : vector<144x128xf32> to vector<7x128xf32>
    %54 = tpu.concatenate %52, %53 in 0 : vector<137x128xf32>, vector<7x128xf32> -> vector<144x128xf32>
    %55 = arith.truncf %54 : vector<144x128xf32> to vector<144x128xbf16>
    %56 = vector.extract_strided_slice %30 {offsets = [8, 0], sizes = [136, 128], strides = [1, 1]} : vector<144x128xf32> to vector<136x128xf32>
    %57 = vector.extract_strided_slice %30 {offsets = [0, 0], sizes = [8, 128], strides = [1, 1]} : vector<144x128xf32> to vector<8x128xf32>
    %58 = tpu.concatenate %56, %57 in 0 : vector<136x128xf32>, vector<8x128xf32> -> vector<144x128xf32>
    %59 = arith.truncf %58 : vector<144x128xf32> to vector<144x128xbf16>
    %60 = vector.extract_strided_slice %30 {offsets = [9, 0], sizes = [135, 128], strides = [1, 1]} : vector<144x128xf32> to vector<135x128xf32>
    %61 = vector.extract_strided_slice %30 {offsets = [0, 0], sizes = [9, 128], strides = [1, 1]} : vector<144x128xf32> to vector<9x128xf32>
    %62 = tpu.concatenate %60, %61 in 0 : vector<135x128xf32>, vector<9x128xf32> -> vector<144x128xf32>
    %63 = arith.truncf %62 : vector<144x128xf32> to vector<144x128xbf16>
    %64 = tpu.concatenate %34, %38, %42, %46, %47, %51, %55, %59, %63 in 1 : vector<144x128xbf16>, vector<144x128xbf16>, vector<144x128xbf16>, vector<144x128xbf16>, vector<144x128xbf16>, vector<144x128xbf16>, vector<144x128xbf16>, vector<144x128xbf16>, vector<144x128xbf16> -> vector<144x1152xbf16>
    %c0_6 = arith.constant 0 : index
    %c0_7 = arith.constant 0 : index
    %65 = vector.load %arg3[%c0_6, %c0_7] : memref<1152x128xbf16, #tpu.memory_space<vmem>>, vector<1152x128xbf16>
    %cst_8 = arith.constant dense<0.000000e+00> : vector<144x128xf32>
    %66 = tpu.matmul %64, %65, %cst_8 {dimension_numbers = #tpu.dot_dimension_numbers<[1], [0], [0], [1], [0, 0, 1, 1], [], []>} : vector<144x1152xbf16>, vector<1152x128xbf16>, vector<144x128xf32> -> vector<144x128xf32>
    %67 = vector.broadcast %0 : vector<144x1xf32> to vector<144x128xf32>
    %68 = arith.mulf %66, %67 : vector<144x128xf32>
    %cst_9 = arith.constant dense<0.000000e+00> : vector<128xf32>
    %69 = vector.multi_reduction <add>, %68, %cst_9 [0] : vector<144x128xf32> to vector<128xf32>
    %70 = vector.shape_cast %69 : vector<128xf32> to vector<1x128xf32>
    %cst_10 = arith.constant 0.0102040814 : f32
    %71 = vector.broadcast %cst_10 : f32 to vector<1x128xf32>
    %72 = arith.mulf %70, %71 : vector<1x128xf32>
    %73 = vector.broadcast %72 : vector<1x128xf32> to vector<144x128xf32>
    %74 = arith.subf %68, %73 : vector<144x128xf32>
    %75 = vector.broadcast %0 : vector<144x1xf32> to vector<144x128xf32>
    %76 = arith.mulf %74, %75 : vector<144x128xf32>
    %77 = arith.mulf %76, %76 : vector<144x128xf32>
    %cst_11 = arith.constant dense<0.000000e+00> : vector<128xf32>
    %78 = vector.multi_reduction <add>, %77, %cst_11 [0] : vector<144x128xf32> to vector<128xf32>
    %79 = vector.shape_cast %78 : vector<128xf32> to vector<1x128xf32>
    %cst_12 = arith.constant 0.0102040814 : f32
    %80 = vector.broadcast %cst_12 : f32 to vector<1x128xf32>
    %81 = arith.mulf %79, %80 : vector<1x128xf32>
    %cst_13 = arith.constant 9.99999974E-6 : f32
    %82 = vector.broadcast %cst_13 : f32 to vector<1x128xf32>
    %83 = arith.addf %81, %82 : vector<1x128xf32>
    %84 = math.rsqrt %83 : vector<1x128xf32>
    %85 = vector.broadcast %84 : vector<1x128xf32> to vector<144x128xf32>
    %86 = arith.mulf %76, %85 : vector<144x128xf32>
    %c0_14 = arith.constant 0 : index
    %c0_15 = arith.constant 0 : index
    %87 = vector.load %arg4[%c0_14, %c0_15] : memref<1x128xf32, #tpu.memory_space<vmem>>, vector<1x128xf32>
    %88 = vector.broadcast %87 : vector<1x128xf32> to vector<144x128xf32>
    %89 = arith.mulf %86, %88 : vector<144x128xf32>
    %c0_16 = arith.constant 0 : index
    %c0_17 = arith.constant 0 : index
    %90 = vector.load %arg5[%c0_16, %c0_17] : memref<1x128xf32, #tpu.memory_space<vmem>>, vector<1x128xf32>
    %91 = vector.broadcast %90 : vector<1x128xf32> to vector<144x128xf32>
    %92 = arith.addf %89, %91 : vector<144x128xf32>
    %cst_18 = arith.constant 0.000000e+00 : f32
    %93 = vector.broadcast %cst_18 : f32 to vector<144x128xf32>
    %94 = arith.maximumf %92, %93 : vector<144x128xf32>
    %95 = vector.broadcast %0 : vector<144x1xf32> to vector<144x128xf32>
    %96 = arith.mulf %94, %95 : vector<144x128xf32>
    %97 = vector.extract_strided_slice %96 {offsets = [135, 0], sizes = [9, 128], strides = [1, 1]} : vector<144x128xf32> to vector<9x128xf32>
    %98 = vector.extract_strided_slice %96 {offsets = [0, 0], sizes = [135, 128], strides = [1, 1]} : vector<144x128xf32> to vector<135x128xf32>
    %99 = tpu.concatenate %97, %98 in 0 : vector<9x128xf32>, vector<135x128xf32> -> vector<144x128xf32>
    %100 = arith.truncf %99 : vector<144x128xf32> to vector<144x128xbf16>
    %101 = vector.extract_strided_slice %96 {offsets = [136, 0], sizes = [8, 128], strides = [1, 1]} : vector<144x128xf32> to vector<8x128xf32>
    %102 = vector.extract_strided_slice %96 {offsets = [0, 0], sizes = [136, 128], strides = [1, 1]} : vector<144x128xf32> to vector<136x128xf32>
    %103 = tpu.concatenate %101, %102 in 0 : vector<8x128xf32>, vector<136x128xf32> -> vector<144x128xf32>
    %104 = arith.truncf %103 : vector<144x128xf32> to vector<144x128xbf16>
    %105 = vector.extract_strided_slice %96 {offsets = [137, 0], sizes = [7, 128], strides = [1, 1]} : vector<144x128xf32> to vector<7x128xf32>
    %106 = vector.extract_strided_slice %96 {offsets = [0, 0], sizes = [137, 128], strides = [1, 1]} : vector<144x128xf32> to vector<137x128xf32>
    %107 = tpu.concatenate %105, %106 in 0 : vector<7x128xf32>, vector<137x128xf32> -> vector<144x128xf32>
    %108 = arith.truncf %107 : vector<144x128xf32> to vector<144x128xbf16>
    %109 = vector.extract_strided_slice %96 {offsets = [143, 0], sizes = [1, 128], strides = [1, 1]} : vector<144x128xf32> to vector<1x128xf32>
    %110 = vector.extract_strided_slice %96 {offsets = [0, 0], sizes = [143, 128], strides = [1, 1]} : vector<144x128xf32> to vector<143x128xf32>
    %111 = tpu.concatenate %109, %110 in 0 : vector<1x128xf32>, vector<143x128xf32> -> vector<144x128xf32>
    %112 = arith.truncf %111 : vector<144x128xf32> to vector<144x128xbf16>
    %113 = arith.truncf %96 : vector<144x128xf32> to vector<144x128xbf16>
    %114 = vector.extract_strided_slice %96 {offsets = [1, 0], sizes = [143, 128], strides = [1, 1]} : vector<144x128xf32> to vector<143x128xf32>
    %115 = vector.extract_strided_slice %96 {offsets = [0, 0], sizes = [1, 128], strides = [1, 1]} : vector<144x128xf32> to vector<1x128xf32>
    %116 = tpu.concatenate %114, %115 in 0 : vector<143x128xf32>, vector<1x128xf32> -> vector<144x128xf32>
    %117 = arith.truncf %116 : vector<144x128xf32> to vector<144x128xbf16>
    %118 = vector.extract_strided_slice %96 {offsets = [7, 0], sizes = [137, 128], strides = [1, 1]} : vector<144x128xf32> to vector<137x128xf32>
    %119 = vector.extract_strided_slice %96 {offsets = [0, 0], sizes = [7, 128], strides = [1, 1]} : vector<144x128xf32> to vector<7x128xf32>
    %120 = tpu.concatenate %118, %119 in 0 : vector<137x128xf32>, vector<7x128xf32> -> vector<144x128xf32>
    %121 = arith.truncf %120 : vector<144x128xf32> to vector<144x128xbf16>
    %122 = vector.extract_strided_slice %96 {offsets = [8, 0], sizes = [136, 128], strides = [1, 1]} : vector<144x128xf32> to vector<136x128xf32>
    %123 = vector.extract_strided_slice %96 {offsets = [0, 0], sizes = [8, 128], strides = [1, 1]} : vector<144x128xf32> to vector<8x128xf32>
    %124 = tpu.concatenate %122, %123 in 0 : vector<136x128xf32>, vector<8x128xf32> -> vector<144x128xf32>
    %125 = arith.truncf %124 : vector<144x128xf32> to vector<144x128xbf16>
    %126 = vector.extract_strided_slice %96 {offsets = [9, 0], sizes = [135, 128], strides = [1, 1]} : vector<144x128xf32> to vector<135x128xf32>
    %127 = vector.extract_strided_slice %96 {offsets = [0, 0], sizes = [9, 128], strides = [1, 1]} : vector<144x128xf32> to vector<9x128xf32>
    %128 = tpu.concatenate %126, %127 in 0 : vector<135x128xf32>, vector<9x128xf32> -> vector<144x128xf32>
    %129 = arith.truncf %128 : vector<144x128xf32> to vector<144x128xbf16>
    %130 = tpu.concatenate %100, %104, %108, %112, %113, %117, %121, %125, %129 in 1 : vector<144x128xbf16>, vector<144x128xbf16>, vector<144x128xbf16>, vector<144x128xbf16>, vector<144x128xbf16>, vector<144x128xbf16>, vector<144x128xbf16>, vector<144x128xbf16>, vector<144x128xbf16> -> vector<144x1152xbf16>
    %c0_19 = arith.constant 0 : index
    %c0_20 = arith.constant 0 : index
    %131 = vector.load %arg6[%c0_19, %c0_20] : memref<1152x128xbf16, #tpu.memory_space<vmem>>, vector<1152x128xbf16>
    %cst_21 = arith.constant dense<0.000000e+00> : vector<144x128xf32>
    %132 = tpu.matmul %130, %131, %cst_21 {dimension_numbers = #tpu.dot_dimension_numbers<[1], [0], [0], [1], [0, 0, 1, 1], [], []>} : vector<144x1152xbf16>, vector<1152x128xbf16>, vector<144x128xf32> -> vector<144x128xf32>
    %133 = vector.broadcast %0 : vector<144x1xf32> to vector<144x128xf32>
    %134 = arith.mulf %132, %133 : vector<144x128xf32>
    %cst_22 = arith.constant dense<0.000000e+00> : vector<128xf32>
    %135 = vector.multi_reduction <add>, %134, %cst_22 [0] : vector<144x128xf32> to vector<128xf32>
    %136 = vector.shape_cast %135 : vector<128xf32> to vector<1x128xf32>
    %cst_23 = arith.constant 0.0102040814 : f32
    %137 = vector.broadcast %cst_23 : f32 to vector<1x128xf32>
    %138 = arith.mulf %136, %137 : vector<1x128xf32>
    %139 = vector.broadcast %138 : vector<1x128xf32> to vector<144x128xf32>
    %140 = arith.subf %134, %139 : vector<144x128xf32>
    %141 = vector.broadcast %0 : vector<144x1xf32> to vector<144x128xf32>
    %142 = arith.mulf %140, %141 : vector<144x128xf32>
    %143 = arith.mulf %142, %142 : vector<144x128xf32>
    %cst_24 = arith.constant dense<0.000000e+00> : vector<128xf32>
    %144 = vector.multi_reduction <add>, %143, %cst_24 [0] : vector<144x128xf32> to vector<128xf32>
    %145 = vector.shape_cast %144 : vector<128xf32> to vector<1x128xf32>
    %cst_25 = arith.constant 0.0102040814 : f32
    %146 = vector.broadcast %cst_25 : f32 to vector<1x128xf32>
    %147 = arith.mulf %145, %146 : vector<1x128xf32>
    %cst_26 = arith.constant 9.99999974E-6 : f32
    %148 = vector.broadcast %cst_26 : f32 to vector<1x128xf32>
    %149 = arith.addf %147, %148 : vector<1x128xf32>
    %150 = math.rsqrt %149 : vector<1x128xf32>
    %151 = vector.broadcast %150 : vector<1x128xf32> to vector<144x128xf32>
    %152 = arith.mulf %142, %151 : vector<144x128xf32>
    %c0_27 = arith.constant 0 : index
    %c0_28 = arith.constant 0 : index
    %153 = vector.load %arg7[%c0_27, %c0_28] : memref<1x128xf32, #tpu.memory_space<vmem>>, vector<1x128xf32>
    %154 = vector.broadcast %153 : vector<1x128xf32> to vector<144x128xf32>
    %155 = arith.mulf %152, %154 : vector<144x128xf32>
    %c0_29 = arith.constant 0 : index
    %c0_30 = arith.constant 0 : index
    %156 = vector.load %arg8[%c0_29, %c0_30] : memref<1x128xf32, #tpu.memory_space<vmem>>, vector<1x128xf32>
    %157 = vector.broadcast %156 : vector<1x128xf32> to vector<144x128xf32>
    %158 = arith.addf %155, %157 : vector<144x128xf32>
    %cst_31 = arith.constant 0.000000e+00 : f32
    %159 = vector.broadcast %cst_31 : f32 to vector<144x128xf32>
    %160 = arith.maximumf %158, %159 : vector<144x128xf32>
    %161 = vector.broadcast %0 : vector<144x1xf32> to vector<144x128xf32>
    %162 = arith.mulf %160, %161 : vector<144x128xf32>
    %163 = vector.shape_cast %162 : vector<144x128xf32> to vector<2x72x128xf32>
    %cst_32 = arith.constant dense<0xFF800000> : vector<2x128xf32>
    %164 = vector.multi_reduction <maximumf>, %163, %cst_32 [1] : vector<2x72x128xf32> to vector<2x128xf32>
    %cst_33 = arith.constant 0.000000e+00 : f32
    %165 = vector.broadcast %cst_33 : f32 to vector<2x128xf32>
    %166 = arith.maximumf %164, %165 : vector<2x128xf32>
    %167 = arith.truncf %166 : vector<2x128xf32> to vector<2x128xbf16>
    %c0_34 = arith.constant 0 : index
    %c0_35 = arith.constant 0 : index
    %168 = vector.load %arg9[%c0_34, %c0_35] : memref<128x128xbf16, #tpu.memory_space<vmem>>, vector<128x128xbf16>
    %cst_36 = arith.constant dense<0.000000e+00> : vector<2x128xf32>
    %169 = tpu.matmul %167, %168, %cst_36 {dimension_numbers = #tpu.dot_dimension_numbers<[1], [0], [0], [1], [0, 0, 1, 1], [], []>} : vector<2x128xbf16>, vector<128x128xbf16>, vector<2x128xf32> -> vector<2x128xf32>
    %c0_37 = arith.constant 0 : index
    %c0_38 = arith.constant 0 : index
    %170 = vector.load %arg10[%c0_37, %c0_38] : memref<1x128xf32, #tpu.memory_space<vmem>>, vector<1x128xf32>
    %171 = vector.broadcast %170 : vector<1x128xf32> to vector<2x128xf32>
    %172 = arith.addf %169, %171 : vector<2x128xf32>
    %173 = math.tanh %172 : vector<2x128xf32>
    %174 = arith.truncf %173 : vector<2x128xf32> to vector<2x128xbf16>
    %c0_39 = arith.constant 0 : index
    %c0_40 = arith.constant 0 : index
    %175 = vector.load %arg11[%c0_39, %c0_40] : memref<128x128xbf16, #tpu.memory_space<vmem>>, vector<128x128xbf16>
    %cst_41 = arith.constant dense<0.000000e+00> : vector<2x128xf32>
    %176 = tpu.matmul %174, %175, %cst_41 {dimension_numbers = #tpu.dot_dimension_numbers<[1], [0], [0], [1], [0, 0, 1, 1], [], []>} : vector<2x128xbf16>, vector<128x128xbf16>, vector<2x128xf32> -> vector<2x128xf32>
    %c0_42 = arith.constant 0 : index
    %c0_43 = arith.constant 0 : index
    %177 = vector.load %arg12[%c0_42, %c0_43] : memref<1x128xf32, #tpu.memory_space<vmem>>, vector<1x128xf32>
    %178 = vector.broadcast %177 : vector<1x128xf32> to vector<2x128xf32>
    %179 = arith.addf %176, %178 : vector<2x128xf32>
    %180 = tpu.iota {dimensions = array<i32: 1>} : vector<2x128xi32>
    %c7_i32 = arith.constant 7 : i32
    %181 = vector.broadcast %c7_i32 : i32 to vector<2x128xi32>
    %182 = arith.cmpi slt, %180, %181 : vector<2x128xi32>
    %c7_i32_44 = arith.constant 7 : i32
    %183 = vector.broadcast %c7_i32_44 : i32 to vector<2x128xi32>
    %184 = arith.cmpi eq, %180, %183 : vector<2x128xi32>
    %cst_45 = arith.constant 0xFF800000 : f32
    %185 = vector.broadcast %cst_45 : f32 to vector<2x128xf32>
    %186 = arith.select %182, %179, %185 : vector<2x128xi1>, vector<2x128xf32>
    %cst_46 = arith.constant dense<0xFF800000> : vector<2xf32>
    %187 = vector.multi_reduction <maximumf>, %186, %cst_46 [1] : vector<2x128xf32> to vector<2xf32>
    %188 = vector.shape_cast %187 : vector<2xf32> to vector<2x1xf32>
    %189 = vector.broadcast %188 : vector<2x1xf32> to vector<2x128xf32>
    %190 = arith.subf %186, %189 : vector<2x128xf32>
    %191 = math.exp %190 : vector<2x128xf32>
    %cst_47 = arith.constant dense<0.000000e+00> : vector<2xf32>
    %192 = vector.multi_reduction <add>, %191, %cst_47 [1] : vector<2x128xf32> to vector<2xf32>
    %193 = vector.shape_cast %192 : vector<2xf32> to vector<2x1xf32>
    %194 = math.log %193 : vector<2x1xf32>
    %195 = arith.addf %188, %194 : vector<2x1xf32>
    %196 = vector.broadcast %195 : vector<2x1xf32> to vector<2x128xf32>
    %197 = arith.subf %179, %196 : vector<2x128xf32>
    %cst_48 = arith.constant 0.000000e+00 : f32
    %198 = vector.broadcast %cst_48 : f32 to vector<2x128xf32>
    %199 = arith.select %184, %179, %198 : vector<2x128xi1>, vector<2x128xf32>
    %200 = arith.select %182, %197, %199 : vector<2x128xi1>, vector<2x128xf32>
    %c0_49 = arith.constant 0 : index
    %c0_50 = arith.constant 0 : index
    %201 = vector.load %arg13[%c0_49, %c0_50] : memref<2x128xf32, #tpu.memory_space<vmem>>, vector<2x128xf32>
    tpu.vector_store %arg13[%c0_49, %c0_50], %200 {strides = array<i32>} : memref<2x128xf32, #tpu.memory_space<vmem>>, vector<2x128xf32>,
    return
  }
}

</mosaic_0001>

<bundles_post_ra>
// kernel: tpu_custom_call.1
= control target key start
LH: loop header
LB: loop body
LE: loop exit
PB: predicated region body
PF: predicated region fallthrough
CT: control target
= control target key end

     0   :  { %18 = vsyncpa [#allocation3], 0  ;;  %s7647_s0 = inlined_call_operand.vmem [shape: s32[144,3], index: 0, kind: input, shape index: {}]   ;;  %s7648_s1 = inlined_call_operand.vmem [shape: f32[144,1], index: 1, kind: input, shape index: {}]   ;;  %s7649_s2 = inlined_call_operand.vmem [shape: bf16[24,128], index: 2, kind: input, shape index: {}]   ;;  %s7650_s3 = inlined_call_operand.hbm [shape: bf16[1152,128], index: 3, kind: input, shape index: {}]   ;;  %s7651_s4 = inlined_call_operand.vmem [shape: f32[1,128], index: 4, kind: input, shape index: {}]   ;;  %s7652_s5 = inlined_call_operand.vmem [shape: f32[1,128], index: 5, kind: input, shape index: {}]   ;;  %s7653_s6 = inlined_call_operand.hbm [shape: bf16[1152,128], index: 6, kind: input, shape index: {}]   ;;  %s7654_s7 = inlined_call_operand.vmem [shape: f32[1,128], index: 7, kind: input, shape index: {}]   ;;  %s7655_s8 = inlined_call_operand.vmem [shape: f32[1,128], index: 8, kind: input, shape index: {}]   ;;  %s7656_s9 = inlined_call_operand.vmem [shape: bf16[128,128], index: 9, kind: input, shape index: {}]   ;;  %s7657_s10 = inlined_call_operand.vmem [shape: f32[1,128], index: 10, kind: input, shape index: {}]   ;;  %s7658_s11 = inlined_call_operand.vmem [shape: bf16[128,128], index: 11, kind: input, shape index: {}]   ;;  %s7659_s12 = inlined_call_operand.vmem [shape: f32[1,128], index: 12, kind: input, shape index: {}]   ;;  %s7660_s13 = inlined_call_operand.hbm [shape: f32[2,128], index: 13, kind: output, shape index: {}]  }
   0x1   :  { %19 = vsyncpa [#allocation6], 0 }
   0x2   :  { %20 = vsyncpa [#allocation4], 0  ;;  %s5420_s25 = smov [#allocation2]   ;;  %s5348_s29 = scalar_lea.hbm %s7650_s3, 9216 }
   0x3   :  { %s32_s26 = sshll.u32 %s5420_s25, 4  ;;  %p5349_p0 = scmp.ne.s32.totalorder %s7650_s3, %s5348_s29  ;;  %s33_s26 = int_to_ptr.vmem [resolvable:$true] %s32_s26 }
   0x4   :  { %p5352_p1 = scmp.lt.u32.totalorder %s5348_s29, %s7650_s3 }
   0x6   :  { %p5354_p2 = pnand %p5352_p1, %p5349_p0 }
   0x8   :  { %5357 = shalt.err (!%p5354_p2)
}
   0x9   :  { %s5358_s17 = scalar_lea.vmem %s33_s26, 9216  ;;  %p5363_p4 = scmp.lt.s32.totalorder %s33_s26, %s33_s26 }
   0xa   :  { %p5359_p3 = scmp.ne.s32.totalorder %s33_s26, %s5358_s17  ;;  %p5364_p5 = scmp.lt.s32.totalorder %s5358_s17, %s5358_s17 }
   0xc   :  { %p5365_p6 = por %p5364_p5, %p5363_p4 }
   0xe   :  { %p5366_p7 = pnand %p5365_p6, %p5359_p3 }
  0x10   :  { %5369 = shalt.err (!%p5366_p7)
}
  0x11   :  { %s5421_s18 = smov 64   ;;  %s5422_s19 = smov 4  }
  0x12   :  { %38 = dma.hbm_to_vmem [thread:$0]  %s7650_s3, 9216, %s33_s26, [#allocation3], %s5421_s18, %s5421_s18, %s5422_s19  }
  0x13   :  { %s5423_s22 = smov [#allocation5]   ;;  %s5370_s27 = scalar_lea.hbm %s7653_s6, 9216 }
  0x14   :  { %s48_s23 = sshll.u32 %s5423_s22, 4  ;;  %p5371_p8 = scmp.ne.s32.totalorder %s7653_s6, %s5370_s27  ;;  %s49_s23 = int_to_ptr.vmem [resolvable:$true] %s48_s23 }
  0x15   :  { %p5374_p9 = scmp.lt.u32.totalorder %s5370_s27, %s7653_s6 }
  0x17   :  { %p5376_p10 = pnand %p5374_p9, %p5371_p8 }
  0x19   :  { %5379 = shalt.err (!%p5376_p10)
}
  0x1a   :  { %s5380_s15 = scalar_lea.vmem %s49_s23, 9216  ;;  %p5385_p12 = scmp.lt.s32.totalorder %s49_s23, %s49_s23 }
  0x1b   :  { %p5381_p11 = scmp.ne.s32.totalorder %s49_s23, %s5380_s15  ;;  %p5386_p13 = scmp.lt.s32.totalorder %s5380_s15, %s5380_s15 }
  0x1d   :  { %p5387_p0 = por %p5386_p13, %p5385_p12 }
  0x1f   :  { %p5388_p1 = pnand %p5387_p0, %p5381_p11 }
  0x21   :  { %5391 = shalt.err (!%p5388_p1)
}
  0x22   :  { %54 = dma.hbm_to_vmem [thread:$0]  %s7653_s6, 9216, %s49_s23, [#allocation6], %s5421_s18, %s5421_s18, %s5422_s19  }
  0x23   :  { %5414 = dma.done.wait [#allocation3], 9216  }
  0x24   :  { %5415 = vsyncadd [#allocation3], 4294958080 }
  0x25   :  { %5416 = dma.done.wait [#allocation6], 9216  }
  0x26   :  { %5417 = vsyncadd [#allocation6], 4294958080  ;;  %v5424_v0 = vmov 0   ;;  %v5425_v1 = vmov 1   ;;  %v7661_v2 = vmov 0.0   ;;  %v92_v3 = vld [vmem:[%s7647_s0] sm:$0xff]  ;;  %v110_v55 = vlaneseq }
  0x27   :  { %5142 = vset.pattern.permute.xlu0 %v5424_v0  ;;  %5143 = vset.pattern.permute.xlu1 %v5425_v1  ;;  %v93_v4 = vld [vmem:[%s7647_s0 + $0x8] sm:$0xff]  ;;  %v238_v5 = vadd.s32 8, %v92_v3  ;;  %v94_v7 = vld [vmem:[%s7647_s0 + $0x10] sm:$0xff]  ;;  %v5539_v8 = vld [vmem:[%s7647_s0 + $0x20] sm:$0xff]  ;;  %v382_v11 = vadd.s32 16, %v92_v3  ;;  %v5427_v19 = vmov 2  }
  0x28   :  { %4948 = vmatprep.subr.bf16.mxu0 %v7661_v2  ;;  %113 = vperm.xlu0 %5142, %v92_v3   ;;  %v239_v6 = vadd.s32 8, %v93_v4  ;;  %v5544_v9 = vld [vmem:[%s7647_s0 + $0x30] sm:$0xff]  ;;  %v95_v10 = vld [vmem:[%s7647_s0 + $0x18] sm:$0xff]  ;;  %v97_v12 = vld [vmem:[%s7647_s0 + $0x28] sm:$0xff]  ;;  %v383_v13 = vadd.s32 16, %v93_v4  ;;  %v384_v14 = vadd.s32 16, %v94_v7 }
  0x29   :  { %257 = vperm.xlu1 %5143, %v238_v5   ;;  %v386_v15 = vadd.s32 16, %v5539_v8  ;;  %v388_v16 = vadd.s32 16, %v5544_v9  ;;  %v240_v17 = vadd.s32 8, %v94_v7  ;;  %v241_v18 = vadd.s32 8, %v95_v10  ;;  %v5176_v23 = vld [vmem:[%s7649_s2] sm:$0xff]   ;;  %v99_v25 = vld [vmem:[%s7647_s0 + $0x38] sm:$0xff] }
  0x2a   :  { %v385_v20 = vadd.s32 16, %v95_v10  ;;  %v242_v21 = vadd.s32 8, %v5539_v8  ;;  %v243_v22 = vadd.s32 8, %v97_v12  ;;  %v387_v24 = vadd.s32 16, %v97_v12  ;;  %4949 = vmatpush3.bf16.msra.mxu0 %v5176_v23  ;;  %v5177_v26 = vld [vmem:[%s7649_s2 + $0x8] ss:$0 sps:$4 sm:$0xff]  }
  0x2b   :  { %4950 = vmatprep.subr.bf16.mxu0 %v7661_v2  ;;  %v244_v27 = vadd.s32 8, %v5544_v9  ;;  %vm575_vm0 = vcmask 1043456   ;;  %v245_v28 = vadd.s32 8, %v99_v25  ;;  %v101_v29 = vld [vmem:[%s7647_s0 + $0x48] sm:$0xff]  ;;  %v389_v31 = vadd.s32 16, %v99_v25  ;;  %v5574_v32 = vld [vmem:[%s7647_s0 + $0x40] sm:$0xff] }
  0x2c   :  { %116 = vperm.xlu0 %5142, %v93_v4   ;;  %v577_v30 = vsel %vm575_vm0, %v5177_v26, 0  ;;  %v5578_v33 = vadd.s32 8, %v5574_v32  ;;  %v390_v34 = vadd.s32 16, %v5574_v32  ;;  %v5581_v35 = vadd.s32 8, %v101_v29  ;;  %v102_v37 = vld [vmem:[%s7647_s0 + $0x50] sm:$0xff]  ;;  %v103_v38 = vld [vmem:[%s7647_s0 + $0x58] sm:$0xff] }
  0x2d   :  { %260 = vperm.xlu1 %5143, %v239_v6   ;;  %vm5428_vm1 = vmmov 0   ;;  %v391_v36 = vadd.s32 16, %v101_v29  ;;  %v248_v39 = vadd.s32 8, %v102_v37  ;;  %v392_v40 = vadd.s32 16, %v102_v37  ;;  %v104_v42 = vld [vmem:[%s7647_s0 + $0x60] sm:$0xff]  ;;  %v105_v43 = vld [vmem:[%s7647_s0 + $0x68] sm:$0xff] }
  0x2e   :  { %4951 = vmatpush3.bf16.msra.mxu0 %v577_v30  ;;  %4952 = vmatprep.mubr.msk.bf16.mxu0 %vm5428_vm1, %v7661_v2  ;;  %v249_v41 = vadd.s32 8, %v103_v38  ;;  %v393_v44 = vadd.s32 16, %v103_v38  ;;  %v250_v45 = vadd.s32 8, %v104_v42  ;;  %v394_v46 = vadd.s32 16, %v104_v42  ;;  %v5602_v48 = vld [vmem:[%s7647_s0 + $0x70] sm:$0xff]  ;;  %v5608_v49 = vld [vmem:[%s7647_s0 + $0x80] sm:$0xff] }
  0x2f   :  { %v251_v47 = vadd.s32 8, %v105_v43  ;;  %v396_v50 = vadd.s32 16, %v5602_v48  ;;  %v398_v51 = vadd.s32 16, %v5608_v49  ;;  %v107_v52 = vld [vmem:[%s7647_s0 + $0x78] sm:$0xff]  ;;  %v5628_v53 = vld [vmem:[%s7647_s0 + $0x88] sm:$0xff]  ;;  %v395_v54 = vadd.s32 16, %v105_v43 }
  0x30   :  { %5144 = vset.pattern.permute.xlu0 %v5427_v19  ;;  %v5645_v57 = vand.u32 127, %v110_v55  ;;  %v252_v60 = vadd.s32 8, %v5602_v48  ;;  %v253_v62 = vadd.s32 8, %v107_v52  ;;  %vm547_vm8 = vcmask 195584  }
  0x31   :  { %401 = vperm.xlu0 %5144, %v382_v11   ;;  %5145 = vset.pattern.permute.xlu1 %v5427_v19  ;;  %v255_v26 = vadd.s32 8, %v5628_v53 }
  0x32   :  { %404 = vperm.xlu1 %5145, %v383_v13   ;;  %7744 = vst [vmem:[#allocation11_spill] sm:$0xff] %v5645_v57  ;;  %v397_v13 = vadd.s32 16, %v107_v52 }
  0x35   :  { %407 = vperm.xlu0 %5144, %v384_v14  }
  0x36   :  { %5146 = vset.pattern.permute.xlu1 %v5424_v0 }
  0x37   :  { %119 = vperm.xlu1 %5146, %v94_v7  }
  0x39   :  { %413 = vperm.xlu0 %5144, %v386_v15  }
  0x3b   :  { %5147 = vset.pattern.permute.xlu1 %v5425_v1 }
  0x3c   :  { %263 = vperm.xlu1 %5147, %v240_v17  }
  0x3d   :  { %419 = vperm.xlu0 %5144, %v388_v16  }
  0x40   :  { %266 = vperm.xlu1 %5147, %v241_v18  }
  0x41   :  { %5154 = vset.pattern.permute.xlu0 %v5424_v0 }
  0x42   :  { %122 = vperm.xlu0 %5154, %v95_v10  }
  0x44   :  { %5148 = vset.pattern.permute.xlu1 %v5427_v19 }
  0x45   :  { %410 = vperm.xlu1 %5148, %v385_v20  }
  0x46   :  { %128 = vperm.xlu0 %5154, %v97_v12  }
  0x49   :  { %5149 = vset.pattern.permute.xlu1 %v5424_v0 }
  0x4a   :  { %134 = vperm.xlu0 %5154, %v99_v25   ;;  %125 = vperm.xlu1 %5149, %v5539_v8  }
  0x4e   :  { %140 = vperm.xlu0 %5154, %v101_v29   ;;  %5150 = vset.pattern.permute.xlu1 %v5425_v1 }
  0x4f   :  { %269 = vperm.xlu1 %5150, %v242_v21  }
  0x52   :  { %146 = vperm.xlu0 %5154, %v103_v38  }
  0x53   :  { %272 = vperm.xlu1 %5150, %v243_v22   ;;  %v254_v22 = vadd.s32 8, %v5608_v49 }
  0x56   :  { %152 = vperm.xlu0 %5154, %v105_v43  }
  0x57   :  { %5151 = vset.pattern.permute.xlu1 %v5427_v19 }
  0x58   :  { %416 = vperm.xlu1 %5151, %v387_v24  }
  0x5a   :  { %5163 = vset.pattern.permute.xlu0 %v5427_v19 }
  0x5b   :  { %425 = vperm.xlu0 %5163, %v390_v34   ;;  %v399_v34 = vadd.s32 16, %v5628_v53 }
  0x5c   :  { %5152 = vset.pattern.permute.xlu1 %v5424_v0 }
  0x5d   :  { %131 = vperm.xlu1 %5152, %v5544_v9  }
  0x5f   :  { %431 = vperm.xlu0 %5163, %v392_v40  }
  0x61   :  { %5153 = vset.pattern.permute.xlu1 %v5425_v1 }
  0x62   :  { %275 = vperm.xlu1 %5153, %v244_v27  }
  0x63   :  { %437 = vperm.xlu0 %5163, %v394_v46  }
  0x66   :  { %278 = vperm.xlu1 %5153, %v245_v28  }
  0x67   :  { %443 = vperm.xlu0 %5163, %v396_v50  }
  0x6a   :  { %5155 = vset.pattern.permute.xlu1 %v5427_v19 }
  0x6b   :  { %5168 = vset.pattern.permute.xlu0 %v5424_v0  ;;  %422 = vperm.xlu1 %5155, %v389_v31  }
  0x6c   :  { %158 = vperm.xlu0 %5168, %v107_v52  }
  0x6f   :  { %5156 = vset.pattern.permute.xlu1 %v5424_v0 }
  0x70   :  { %164 = vperm.xlu0 %5168, %v5628_v53   ;;  %137 = vperm.xlu1 %5156, %v5574_v32  }
  0x74   :  { %5172 = vset.pattern.permute.xlu0 %v5427_v19  ;;  %5157 = vset.pattern.permute.xlu1 %v5425_v1 }
  0x75   :  { %449 = vperm.xlu0 %5172, %v398_v51   ;;  %281 = vperm.xlu1 %5157, %v5578_v33  }
  0x79   :  { %5175 = vset.pattern.permute.xlu0 %v5424_v0  ;;  %284 = vperm.xlu1 %5157, %v5581_v35  }
  0x7d   :  { %5158 = vset.pattern.permute.xlu1 %v5427_v19 }
  0x7e   :  { %428 = vperm.xlu1 %5158, %v391_v36  }
  0x82   :  { %5159 = vset.pattern.permute.xlu1 %v5424_v0 }
  0x83   :  { %143 = vperm.xlu1 %5159, %v102_v37  }
  0x87   :  { %5160 = vset.pattern.permute.xlu1 %v5425_v1 }
  0x88   :  { %287 = vperm.xlu1 %5160, %v248_v39  }
  0x8c   :  { %290 = vperm.xlu1 %5160, %v249_v41  }
  0x90   :  { %5161 = vset.pattern.permute.xlu1 %v5427_v19 }
  0x91   :  { %434 = vperm.xlu1 %5161, %v393_v44  }
  0x95   :  { %5162 = vset.pattern.permute.xlu1 %v5424_v0 }
  0x96   :  { %149 = vperm.xlu1 %5162, %v104_v42  }
  0x9a   :  { %5164 = vset.pattern.permute.xlu1 %v5425_v1 }
  0x9b   :  { %293 = vperm.xlu1 %5164, %v250_v45  }
  0x9f   :  { %296 = vperm.xlu1 %5164, %v251_v47  }
  0xa3   :  { %5165 = vset.pattern.permute.xlu1 %v5427_v19 }
  0xa4   :  { %440 = vperm.xlu1 %5165, %v395_v54  }
  0xa7   :  { %v114_v56 = vpop.permute.xlu0 %113 }
  0xa8   :  { %5166 = vset.pattern.permute.xlu1 %v5424_v0  ;;  %v258_v58 = vpop.permute.xlu1 %257  ;;  %vm166_vm2 = vcmp.eq.s32.totalorder %v5645_v57, %v114_v56 }
  0xa9   :  { %155 = vperm.xlu1 %5166, %v5602_v48   ;;  %vm310_vm3 = vcmp.eq.s32.totalorder %v5645_v57, %v258_v58  ;;  %v4094_v63 = vsel %vm166_vm2, 1.0, %v7661_v2 }
  0xaa   :  { %v4112_v3 = vsel %vm310_vm3, 1.0, %v7661_v2 }
  0xab   :  { %v117_v59 = vpop.permute.xlu0 %116  ;;  %v364_v9 = vadd.f32 %v4112_v3, %v4094_v63 }
  0xac   :  { %vm167_vm4 = vcmp.eq.s32.totalorder %v5645_v57, %v117_v59  ;;  %v261_v61 = vpop.permute.xlu1 %260 }
  0xad   :  { %vm311_vm5 = vcmp.eq.s32.totalorder %v5645_v57, %v261_v61  ;;  %5167 = vset.pattern.permute.xlu1 %v5425_v1  ;;  %v4095_v4 = vsel %vm167_vm4, 1.0, %v7661_v2 }
  0xae   :  { %299 = vperm.xlu1 %5167, %v252_v60   ;;  %v4113_v5 = vsel %vm311_vm5, 1.0, %v7661_v2 }
  0xaf   :  { %v365_v10 = vadd.f32 %v4113_v5, %v4095_v4 }
  0xb0   :  { %v402_v6 = vpop.permute.xlu0 %401 }
  0xb1   :  { %vm454_vm6 = vcmp.eq.s32.totalorder %v5645_v57, %v402_v6  ;;  %v405_v8 = vpop.permute.xlu1 %404 }
  0xb2   :  { %v4130_v7 = vsel %vm454_vm6, 1.0, %v7661_v2  ;;  %vm455_vm7 = vcmp.eq.s32.totalorder %v5645_v57, %v405_v8  ;;  %302 = vperm.xlu1 %5167, %v253_v62  }
  0xb3   :  { %v4131_v11 = vsel %vm455_vm7, 1.0, %v7661_v2  ;;  %v508_v14 = vadd.f32 %v4130_v7, %v364_v9 }
  0xb4   :  { %v408_v12 = vpop.permute.xlu0 %407  ;;  %v509_v15 = vadd.f32 %v4131_v11, %v365_v10 }
  0xb5   :  { %vm456_vm12 = vcmp.eq.s32.totalorder %v5645_v57, %v408_v12 }
  0xb6   :  { %v526_v16 = vpack.c.bf16 %v509_v15, %v508_v14  ;;  %5169 = vset.pattern.permute.xlu1 %v5427_v19  ;;  %v120_v17 = vpop.permute.xlu1 %119  ;;  %v4132_v31 = vsel %vm456_vm12, 1.0, %v7661_v2 }
  0xb7   :  { %446 = vperm.xlu1 %5169, %v397_v13   ;;  %vm168_vm10 = vcmp.eq.s32.totalorder %v5645_v57, %v120_v17 }
  0xb8   :  { %v414_v18 = vpop.permute.xlu0 %413  ;;  %4953 = vmatmul.mubr.msk.bf16.vlgmr.msra.gmra.mrb[0].mxu0 %vm547_vm8, %v526_v16  ;;  %v4096_v27 = vsel %vm168_vm10, 1.0, %v7661_v2 }
  0xb9   :  { %4956 = vmatprep.mubr.msk.bf16.mxu0 %vm5428_vm1, %v7661_v2  ;;  %vm458_vm4 = vcmp.eq.s32.totalorder %v5645_v57, %v414_v18 }
  0xba   :  { %v4134_v45 = vsel %vm458_vm4, 1.0, %v7661_v2 }
  0xbb   :  { %5170 = vset.pattern.permute.xlu1 %v5424_v0  ;;  %v264_v20 = vpop.permute.xlu1 %263 }
  0xbc   :  { %v5668_v21 = vpop.permute.xlu0 %419  ;;  %161 = vperm.xlu1 %5170, %v5608_v49   ;;  %vm312_vm9 = vcmp.eq.s32.totalorder %v5645_v57, %v264_v20 }
  0xbd   :  { %v4114_v24 = vsel %vm312_vm9, 1.0, %v7661_v2 }
  0xbe   :  { %v366_v30 = vadd.f32 %v4114_v24, %v4096_v27 }
  0xbf   :  { %v267_v23 = vpop.permute.xlu1 %266 }
  0xc0   :  { %vm313_vm11 = vcmp.eq.s32.totalorder %v5645_v57, %v267_v23  ;;  %5171 = vset.pattern.permute.xlu1 %v5425_v1  ;;  %v510_v35 = vadd.f32 %v4132_v31, %v366_v30 }
  0xc1   :  { %v123_v25 = vpop.permute.xlu0 %122  ;;  %305 = vperm.xlu1 %5171, %v254_v22   ;;  %v4115_v28 = vsel %vm313_vm11, 1.0, %v7661_v2  ;;  %vm460_vm11 = vcmp.eq.s32.totalorder %v5645_v57, %v5668_v21 }
  0xc2   :  { %vm169_vm13 = vcmp.eq.s32.totalorder %v5645_v57, %v123_v25  ;;  %v4136_v63 = vsel %vm460_vm11, 1.0, %v7661_v2 }
  0xc3   :  { %v4097_v29 = vsel %vm169_vm13, 1.0, %v7661_v2 }
  0xc4   :  { %v411_v32 = vpop.permute.xlu1 %410  ;;  %v367_v33 = vadd.f32 %v4115_v28, %v4097_v29 }
  0xc5   :  { %vm457_vm14 = vcmp.eq.s32.totalorder %v5645_v57, %v411_v32  ;;  %308 = vperm.xlu1 %5171, %v255_v26   ;;  %v129_v40 = vpop.permute.xlu0 %128 }
  0xc6   :  { %v4133_v1 = vsel %vm457_vm14, 1.0, %v7661_v2  ;;  %vm171_vm2 = vcmp.eq.s32.totalorder %v5645_v57, %v129_v40 }
  0xc7   :  { %v511_v36 = vadd.f32 %v4133_v1, %v367_v33  ;;  %v4099_v43 = vsel %vm171_vm2, 1.0, %v7661_v2 }
  0xc9   :  { %v527_v37 = vpack.c.bf16 %v511_v36, %v510_v35  ;;  %5173 = vset.pattern.permute.xlu1 %v5427_v19  ;;  %v126_v38 = vpop.permute.xlu1 %125  ;;  %v135_v53 = vpop.permute.xlu0 %134 }
  0xca   :  { %452 = vperm.xlu1 %5173, %v399_v34   ;;  %vm170_vm0 = vcmp.eq.s32.totalorder %v5645_v57, %v126_v38  ;;  %vm173_vm9 = vcmp.eq.s32.totalorder %v5645_v57, %v135_v53 }
  0xcb   :  { %4957 = vmatmul.mubr.msk.bf16.gmra.mrb[4].mxu0 %vm547_vm8, %v527_v37  ;;  %v4098_v42 = vsel %vm170_vm0, 1.0, %v7661_v2  ;;  %v4101_v60 = vsel %vm173_vm9, 1.0, %v7661_v2 }
  0xcc   :  { %4960 = vmatprep.mubr.msk.bf16.mxu0 %vm5428_vm1, %v7661_v2 }
  0xcd   :  { %v141_v56 = vpop.permute.xlu0 %140 }
  0xce   :  { %v270_v39 = vpop.permute.xlu1 %269  ;;  %5174 = vset.pattern.permute.xlu1 %v5424_v0  ;;  %vm175_vm14 = vcmp.eq.s32.totalorder %v5645_v57, %v141_v56 }
  0xcf   :  { %vm314_vm15 = vcmp.eq.s32.totalorder %v5645_v57, %v270_v39  ;;  %v4103_v16 = vsel %vm175_vm14, 1.0, %v7661_v2 }
  0xd0   :  { %v4116_v19 = vsel %vm314_vm15, 1.0, %v7661_v2 }
  0xd1   :  { %v368_v44 = vadd.f32 %v4116_v19, %v4098_v42  ;;  %v147_v5 = vpop.permute.xlu0 %146 }
  0xd2   :  { %v273_v41 = vpop.permute.xlu1 %272 }
  0xd3   :  { %vm315_vm3 = vcmp.eq.s32.totalorder %v5645_v57, %v273_v41  ;;  %v512_v49 = vadd.f32 %v4134_v45, %v368_v44 }
  0xd4   :  { %v4117_v0 = vsel %vm315_vm3, 1.0, %v7661_v2 }
  0xd5   :  { %v369_v47 = vadd.f32 %v4117_v0, %v4099_v43  ;;  %v5721_v11 = vpop.permute.xlu0 %152 }
  0xd6   :  { %vm179_vm14 = vcmp.eq.s32.totalorder %v5645_v57, %v5721_v11 }
  0xd7   :  { %v417_v46 = vpop.permute.xlu1 %416 }
  0xd8   :  { %vm459_vm5 = vcmp.eq.s32.totalorder %v5645_v57, %v417_v46 }
  0xd9   :  { %v4135_v48 = vsel %vm459_vm5, 1.0, %v7661_v2  ;;  %vm177_vm5 = vcmp.eq.s32.totalorder %v5645_v57, %v147_v5 }
  0xda   :  { %v513_v50 = vadd.f32 %v4135_v48, %v369_v47  ;;  %v426_v13 = vpop.permute.xlu0 %425  ;;  %v4105_v33 = vsel %vm177_vm5, 1.0, %v7661_v2 }
  0xdb   :  { %vm462_vm2 = vcmp.eq.s32.totalorder %v5645_v57, %v426_v13 }
  0xdc   :  { %v528_v51 = vpack.c.bf16 %v513_v50, %v512_v49  ;;  %v132_v52 = vpop.permute.xlu1 %131  ;;  %v4138_v21 = vsel %vm462_vm2, 1.0, %v7661_v2  ;;  %v4107_v49 = vsel %vm179_vm14, 1.0, %v7661_v2 }
  0xdd   :  { %vm172_vm7 = vcmp.eq.s32.totalorder %v5645_v57, %v132_v52 }
  0xde   :  { %4961 = vmatmul.mubr.msk.bf16.gmra.mrb[8].mxu0 %vm547_vm8, %v528_v51  ;;  %v4100_v59 = vsel %vm172_vm7, 1.0, %v7661_v2  ;;  %v432_v30 = vpop.permute.xlu0 %431 }
  0xdf   :  { %4964 = vmatprep.mubr.msk.bf16.mxu0 %vm5428_vm1, %v7661_v2  ;;  %vm464_vm9 = vcmp.eq.s32.totalorder %v5645_v57, %v432_v30 }
  0xe0   :  { %v4140_v36 = vsel %vm464_vm9, 1.0, %v7661_v2 }
  0xe1   :  { %v276_v54 = vpop.permute.xlu1 %275 }
  0xe2   :  { %vm316_vm6 = vcmp.eq.s32.totalorder %v5645_v57, %v276_v54  ;;  %v438_v0 = vpop.permute.xlu0 %437 }
  0xe3   :  { %v4118_v58 = vsel %vm316_vm6, 1.0, %v7661_v2 }
  0xe4   :  { %v370_v62 = vadd.f32 %v4118_v58, %v4100_v59 }
  0xe5   :  { %v279_v55 = vpop.permute.xlu1 %278 }
  0xe6   :  { %vm317_vm10 = vcmp.eq.s32.totalorder %v5645_v57, %v279_v55  ;;  %v514_v7 = vadd.f32 %v4136_v63, %v370_v62  ;;  %v444_v59 = vpop.permute.xlu0 %443 }
  0xe7   :  { %v4119_v61 = vsel %vm317_vm10, 1.0, %v7661_v2 }
  0xe8   :  { %v371_v4 = vadd.f32 %v4119_v61, %v4101_v60 }
  0xea   :  { %v423_v3 = vpop.permute.xlu1 %422 }
  0xeb   :  { %vm461_vm12 = vcmp.eq.s32.totalorder %v5645_v57, %v423_v3  ;;  %v159_v61 = vpop.permute.xlu0 %158 }
  0xec   :  { %v4137_v6 = vsel %vm461_vm12, 1.0, %v7661_v2 }
  0xed   :  { %v515_v8 = vadd.f32 %v4137_v6, %v371_v4 }
  0xef   :  { %v529_v9 = vpack.c.bf16 %v515_v8, %v514_v7  ;;  %v138_v10 = vpop.permute.xlu1 %137 }
  0xf0   :  { %vm174_vm15 = vcmp.eq.s32.totalorder %v5645_v57, %v138_v10 }
  0xf1   :  { %4965 = vmatmul.mubr.msk.bf16.gmra.mrb[12].mxu0 %vm547_vm8, %v529_v9  ;;  %v4102_v17 = vsel %vm174_vm15, 1.0, %v7661_v2  ;;  %vm466_vm15 = vcmp.eq.s32.totalorder %v5645_v57, %v438_v0 }
  0xf2   :  { %4968 = vmatprep.mubr.msk.bf16.mxu0 %vm5428_vm1, %v7661_v2  ;;  %v4142_v50 = vsel %vm466_vm15, 1.0, %v7661_v2  ;;  %vm686_vm15 = vcmask 1040384  }
  0xf4   :  { %v282_v12 = vpop.permute.xlu1 %281 }
  0xf5   :  { %vm318_vm13 = vcmp.eq.s32.totalorder %v5645_v57, %v282_v12 }
  0xf6   :  { %v4120_v15 = vsel %vm318_vm13, 1.0, %v7661_v2 }
  0xf7   :  { %v372_v20 = vadd.f32 %v4120_v15, %v4102_v17  ;;  %v165_v15 = vpop.permute.xlu0 %164 }
  0xf8   :  { %v285_v14 = vpop.permute.xlu1 %284 }
  0xf9   :  { %vm319_vm0 = vcmp.eq.s32.totalorder %v5645_v57, %v285_v14  ;;  %v516_v25 = vadd.f32 %v4138_v21, %v372_v20 }
  0xfa   :  { %v4121_v18 = vsel %vm319_vm0, 1.0, %v7661_v2 }
  0xfb   :  { %v373_v23 = vadd.f32 %v4121_v18, %v4103_v16  ;;  %v450_v17 = vpop.permute.xlu0 %449 }
  0xfd   :  { %v429_v22 = vpop.permute.xlu1 %428 }
  0xfe   :  { %vm463_vm3 = vcmp.eq.s32.totalorder %v5645_v57, %v429_v22 }
  0xff   :  { %v4139_v24 = vsel %vm463_vm3, 1.0, %v7661_v2 }
 0x100   :  { %v517_v26 = vadd.f32 %v4139_v24, %v373_v23 }
 0x102   :  { %v530_v27 = vpack.c.bf16 %v517_v26, %v516_v25  ;;  %v144_v28 = vpop.permute.xlu1 %143 }
 0x103   :  { %vm176_vm6 = vcmp.eq.s32.totalorder %v5645_v57, %v144_v28 }
 0x104   :  { %4969 = vmatmul.mubr.msk.bf16.gmra.mrb[16].mxu0 %vm547_vm8, %v530_v27  ;;  %v4104_v1 = vsel %vm176_vm6, 1.0, %v7661_v2  ;;  %vm468_vm6 = vcmp.eq.s32.totalorder %v5645_v57, %v444_v59  ;;  %v5195_v59 = vld [vmem:[#allocation2 + $0x20] sm:$0xff]  }
 0x105   :  { %4972 = vmatprep.mubr.msk.bf16.mxu0 %vm5428_vm1, %v7661_v2  ;;  %v4144_v9 = vsel %vm468_vm6, 1.0, %v7661_v2 }
 0x107   :  { %v288_v29 = vpop.permute.xlu1 %287 }
 0x108   :  { %vm320_vm4 = vcmp.eq.s32.totalorder %v5645_v57, %v288_v29 }
 0x109   :  { %v4122_v32 = vsel %vm320_vm4, 1.0, %v7661_v2  ;;  %vm181_vm4 = vcmp.eq.s32.totalorder %v5645_v57, %v159_v61  ;;  %v5198_v61 = vld [vmem:[#allocation2 + $0x68] sm:$0xff]  }
 0x10a   :  { %v374_v35 = vadd.f32 %v4122_v32, %v4104_v1  ;;  %v4109_v4 = vsel %vm181_vm4, 1.0, %v7661_v2  ;;  %v5178_v32 = vld [vmem:[#allocation2 + $0x40] sm:$0xff]  }
 0x10b   :  { %v291_v31 = vpop.permute.xlu1 %290  ;;  %v5180_v1 = vld [vmem:[#allocation2 + $0xc0] sm:$0xff]   ;;  %4336 = vmatprep.subr.bf16.mxu1 %v5178_v32 }
 0x10c   :  { %vm321_vm7 = vcmp.eq.s32.totalorder %v5645_v57, %v291_v31  ;;  %v518_v40 = vadd.f32 %v4140_v36, %v374_v35  ;;  %v5182_v35 = vld [vmem:[#allocation2 + $0x48] sm:$0xff]   ;;  %4406 = vmatprep.subr.bf16.mxu0 %v5180_v1 }
 0x10d   :  { %v4123_v34 = vsel %vm321_vm7, 1.0, %v7661_v2  ;;  %v5183_v36 = vld [vmem:[#allocation2 + $0x8] sm:$0xff]  }
 0x10e   :  { %v375_v38 = vadd.f32 %v4123_v34, %v4105_v33  ;;  %v5179_v33 = vld [vmem:[#allocation2] sm:$0xff]  }
 0x10f   :  { %v5181_v34 = vld [vmem:[#allocation2 + $0x80] sm:$0xff]   ;;  %4337 = vmatpush3.bf16.msra.mxu1 %v5179_v33 }
 0x110   :  { %v435_v37 = vpop.permute.xlu1 %434  ;;  %4407 = vmatpush3.bf16.msra.mxu0 %v5181_v34  ;;  %4338 = vmatprep.subr.bf16.mxu1 %v5182_v35 }
 0x111   :  { %vm465_vm10 = vcmp.eq.s32.totalorder %v5645_v57, %v435_v37 }
 0x112   :  { %v4141_v39 = vsel %vm465_vm10, 1.0, %v7661_v2 }
 0x113   :  { %v519_v41 = vadd.f32 %v4141_v39, %v375_v38  ;;  %4339 = vmatpush3.bf16.msra.mxu1 %v5183_v36 }
 0x115   :  { %v531_v19 = vpack.c.bf16 %v519_v41, %v518_v40  ;;  %v150_v42 = vpop.permute.xlu1 %149 }
 0x116   :  { %vm178_vm12 = vcmp.eq.s32.totalorder %v5645_v57, %v150_v42 }
 0x117   :  { %4973 = vmatmul.mubr.msk.bf16.gmra.mrb[20].mxu0 %vm547_vm8, %v531_v19  ;;  %v4106_v46 = vsel %vm178_vm12, 1.0, %v7661_v2  ;;  %vm183_vm12 = vcmp.eq.s32.totalorder %v5645_v57, %v165_v15 }
 0x118   :  { %4976 = vmatprep.mubr.msk.bf16.mxu0 %vm5428_vm1, %v7661_v2  ;;  %v4111_v24 = vsel %vm183_vm12, 1.0, %v7661_v2 }
 0x11a   :  { %v294_v43 = vpop.permute.xlu1 %293 }
 0x11b   :  { %vm322_vm11 = vcmp.eq.s32.totalorder %v5645_v57, %v294_v43 }
 0x11c   :  { %v4124_v45 = vsel %vm322_vm11, 1.0, %v7661_v2 }
 0x11d   :  { %v376_v48 = vadd.f32 %v4124_v45, %v4106_v46  ;;  %v5185_v45 = vld [vmem:[#allocation2 + $0x88] sm:$0xff]  }
 0x11e   :  { %v297_v44 = vpop.permute.xlu1 %296 }
 0x11f   :  { %vm323_vm13 = vcmp.eq.s32.totalorder %v5645_v57, %v297_v44  ;;  %v520_v54 = vadd.f32 %v4142_v50, %v376_v48  ;;  %v5184_v44 = vld [vmem:[#allocation2 + $0xc8] sm:$0xff]   ;;  %v5186_v48 = vld [vmem:[#allocation2 + $0x50] sm:$0xff]  }
 0x120   :  { %v4125_v47 = vsel %vm323_vm13, 1.0, %v7661_v2  ;;  %vm470_vm13 = vcmp.eq.s32.totalorder %v5645_v57, %v450_v17  ;;  %4408 = vmatprep.subr.bf16.mxu0 %v5184_v44  ;;  %v5188_v50 = vld [vmem:[#allocation2 + $0xd0] sm:$0xff]   ;;  %4340 = vmatprep.subr.bf16.mxu1 %v5186_v48 }
 0x121   :  { %v377_v52 = vadd.f32 %v4125_v47, %v4107_v49  ;;  %v4146_v25 = vsel %vm470_vm13, 1.0, %v7661_v2  ;;  %4409 = vmatpush3.bf16.msra.mxu0 %v5185_v45  ;;  %v5187_v49 = vld [vmem:[#allocation2 + $0x10] sm:$0xff]  }
 0x122   :  { %4341 = vmatpush3.bf16.msra.mxu1 %v5187_v49  ;;  %4410 = vmatprep.subr.bf16.mxu0 %v5188_v50  ;;  %v5204_v17 = vld [vmem:[#allocation2 + $0xf0] sm:$0xff]  }
 0x123   :  { %v441_v51 = vpop.permute.xlu1 %440 }
 0x124   :  { %vm467_vm0 = vcmp.eq.s32.totalorder %v5645_v57, %v441_v51  ;;  %v5189_v51 = vld [vmem:[#allocation2 + $0x90] sm:$0xff]  }
 0x125   :  { %v4143_v53 = vsel %vm467_vm0, 1.0, %v7661_v2  ;;  %4411 = vmatpush3.bf16.msra.mxu0 %v5189_v51  ;;  %vm3853_vm0 = vcmask 1041409  }
 0x126   :  { %v521_v55 = vadd.f32 %v4143_v53, %v377_v52  ;;  %v5190_v52 = vld [vmem:[#allocation2 + $0x58] sm:$0xff]  }
 0x127   :  { %v5191_v53 = vld [vmem:[#allocation2 + $0x18] sm:$0xff]   ;;  %4342 = vmatprep.subr.bf16.mxu1 %v5190_v52 }
 0x128   :  { %v532_v56 = vpack.c.bf16 %v521_v55, %v520_v54  ;;  %v156_v58 = vpop.permute.xlu1 %155  ;;  %v5192_v54 = vld [vmem:[#allocation2 + $0xd8] sm:$0xff]   ;;  %4343 = vmatpush3.bf16.msra.mxu1 %v5191_v53 }
 0x129   :  { %vm180_vm3 = vcmp.eq.s32.totalorder %v5645_v57, %v156_v58  ;;  %v5193_v55 = vld [vmem:[#allocation2 + $0x98] sm:$0xff]   ;;  %4412 = vmatprep.subr.bf16.mxu0 %v5192_v54  ;;  %v5196_v58 = vld [vmem:[#allocation2 + $0xe0] sm:$0xff]  }
 0x12a   :  { %4977 = vmatmul.mubr.msk.bf16.gmra.mrb[24].mxu0 %vm547_vm8, %v532_v56  ;;  %v4108_v3 = vsel %vm180_vm3, 1.0, %v7661_v2  ;;  %v5194_v56 = vld [vmem:[#allocation2 + $0x60] sm:$0xff]  }
 0x12b   :  { %4980 = vmatprep.mubr.msk.bf16.mxu0 %vm5428_vm1, %v7661_v2  ;;  %4413 = vmatpush3.bf16.msra.mxu0 %v5193_v55 }
 0x12c   :  { %4344 = vmatprep.subr.bf16.mxu1 %v5194_v56  ;;  %4414 = vmatprep.subr.bf16.mxu0 %v5196_v58 }
 0x12d   :  { %v300_v60 = vpop.permute.xlu1 %299  ;;  %4345 = vmatpush3.bf16.msra.mxu1 %v5195_v59 }
 0x12e   :  { %vm324_vm2 = vcmp.eq.s32.totalorder %v5645_v57, %v300_v60  ;;  %v5197_v60 = vld [vmem:[#allocation2 + $0xa0] sm:$0xff]   ;;  %4346 = vmatprep.subr.bf16.mxu1 %v5198_v61 }
 0x12f   :  { %v4126_v63 = vsel %vm324_vm2, 1.0, %v7661_v2  ;;  %4415 = vmatpush3.bf16.msra.mxu0 %v5197_v60  ;;  %vm4061_vm2 = vcmask 1041408  }
 0x130   :  { %v378_v6 = vadd.f32 %v4126_v63, %v4108_v3  ;;  %v5199_v63 = vld [vmem:[#allocation2 + $0x28] sm:$0xff]  }
 0x131   :  { %v303_v62 = vpop.permute.xlu1 %302  ;;  %v5201_v3 = vld [vmem:[#allocation2 + $0xa8] sm:$0xff]   ;;  %4347 = vmatpush3.bf16.msra.mxu1 %v5199_v63 }
 0x132   :  { %vm325_vm5 = vcmp.eq.s32.totalorder %v5645_v57, %v303_v62  ;;  %v522_v11 = vadd.f32 %v4144_v9, %v378_v6  ;;  %v5200_v62 = vld [vmem:[#allocation2 + $0xe8] sm:$0xff]  }
 0x133   :  { %v4127_v5 = vsel %vm325_vm5, 1.0, %v7661_v2  ;;  %4416 = vmatprep.subr.bf16.mxu0 %v5200_v62 }
 0x134   :  { %v379_v8 = vadd.f32 %v4127_v5, %v4109_v4  ;;  %v5202_v4 = vld [vmem:[#allocation2 + $0x70] sm:$0xff]   ;;  %4417 = vmatpush3.bf16.msra.mxu0 %v5201_v3 }
 0x135   :  { %4348 = vmatprep.subr.bf16.mxu1 %v5202_v4  ;;  %4418 = vmatprep.subr.bf16.mxu0 %v5204_v17  ;;  %v5220_v17 = vld [vmem:[#allocation2 + $0x1c0] sm:$0xff]  }
 0x136   :  { %v447_v7 = vpop.permute.xlu1 %446 }
 0x137   :  { %vm469_vm7 = vcmp.eq.s32.totalorder %v5645_v57, %v447_v7 }
 0x138   :  { %v4145_v10 = vsel %vm469_vm7, 1.0, %v7661_v2 }
 0x139   :  { %v523_v12 = vadd.f32 %v4145_v10, %v379_v8 }
 0x13b   :  { %v533_v13 = vpack.c.bf16 %v523_v12, %v522_v11  ;;  %v162_v14 = vpop.permute.xlu1 %161 }
 0x13c   :  { %vm182_vm10 = vcmp.eq.s32.totalorder %v5645_v57, %v162_v14 }
 0x13d   :  { %4981 = vmatmul.mubr.msk.bf16.gmra.mrb[28].mxu0 %vm547_vm8, %v533_v13  ;;  %v4110_v21 = vsel %vm182_vm10, 1.0, %v7661_v2 }
 0x13e   :  { %4984 = vmatprep.mubr.msk.bf16.mxu0 %vm5428_vm1, %v7661_v2 }
 0x140   :  { %v306_v16 = vpop.permute.xlu1 %305 }
 0x141   :  { %vm326_vm9 = vcmp.eq.s32.totalorder %v5645_v57, %v306_v16  ;;  %v5203_v16 = vld [vmem:[#allocation2 + $0x30] sm:$0xff]  }
 0x142   :  { %v4128_v20 = vsel %vm326_vm9, 1.0, %v7661_v2  ;;  %4349 = vmatpush3.bf16.msra.mxu1 %v5203_v16 }
 0x143   :  { %v380_v23 = vadd.f32 %v4128_v20, %v4110_v21 }
 0x144   :  { %v309_v18 = vpop.permute.xlu1 %308 }
 0x145   :  { %vm327_vm11 = vcmp.eq.s32.totalorder %v5645_v57, %v309_v18  ;;  %v524_v29 = vadd.f32 %v4146_v25, %v380_v23 }
 0x146   :  { %v4129_v22 = vsel %vm327_vm11, 1.0, %v7661_v2 }
 0x147   :  { %v381_v27 = vadd.f32 %v4129_v22, %v4111_v24  ;;  %v5205_v22 = vld [vmem:[#allocation2 + $0xb0] sm:$0xff]  }
 0x148   :  { %4419 = vmatpush3.bf16.msra.mxu0 %v5205_v22 }
 0x149   :  { %v453_v26 = vpop.permute.xlu1 %452 }
 0x14a   :  { %vm471_vm14 = vcmp.eq.s32.totalorder %v5645_v57, %v453_v26 }
 0x14b   :  { %v4147_v28 = vsel %vm471_vm14, 1.0, %v7661_v2 }
 0x14c   :  { %v525_v30 = vadd.f32 %v4147_v28, %v381_v27  ;;  %v5206_v27 = vld [vmem:[#allocation2 + $0x78] sm:$0xff]  }
 0x14d   :  { %v5207_v28 = vld [vmem:[#allocation2 + $0x38] sm:$0xff]   ;;  %4350 = vmatprep.subr.bf16.mxu1 %v5206_v27 }
 0x14e   :  { %v534_v31 = vpack.c.bf16 %v525_v30, %v524_v29  ;;  %v5208_v29 = vld [vmem:[#allocation2 + $0xf8] sm:$0xff]   ;;  %4351 = vmatpush3.bf16.msra.mxu1 %v5207_v28 }
 0x14f   :  { %v5209_v30 = vld [vmem:[#allocation2 + $0xb8] sm:$0xff]   ;;  %4420 = vmatprep.subr.bf16.mxu0 %v5208_v29 }
 0x150   :  { %4985 = vmatmul.mubr.msk.bf16.gmra.mrb[32].mxu0 %vm547_vm8, %v534_v31  ;;  %vm778_vm8 = vcmask 1046528   ;;  %v5210_v31 = vld [vmem:[#allocation2 + $0x140] sm:$0xff]  }
 0x151   :  { %4421 = vmatpush3.bf16.msra.mxu0 %v5209_v30  ;;  %4476 = vmatprep.subr.bf16.mxu1 %v5210_v31 }
 0x152   :  { %4546 = vmatprep.subr.bf16.mxu0 %v5220_v17 }
 0x18b   :  { %v5799_v37 = vpop.f32.mrb[0].mxu0 }
 0x18c   :  { %v4954_v38 = vpop.f32.mrb[1].mxu0  ;;  %v7663_v39 = vrot.slane %v5799_v37, 7  ;;  %v7664_v41 = vrot.slane %v5799_v37, 1 }
 0x18d   :  { %v5802_v40 = vpop.f32.mrb[2].mxu0 }
 0x18e   :  { %v709_v19 = vrot.slane %v5802_v40, 7  ;;  %v780_v42 = vrot.slane %v5802_v40, 1  ;;  %v4955_v0 = vpop.f32.mrb[3].mxu0 }
 0x190   :  { %v5812_v46 = vsel %vm778_vm8, %v7664_v41, %v780_v42  ;;  %v5817_v47 = vsel %vm686_vm15, %v7663_v39, %v709_v19 }
 0x19e   :  { %v5819_v5 = vpop.f32.mrb[4].mxu0 }
 0x19f   :  { %v711_v6 = vrot.slane %v5819_v5, 7  ;;  %v782_v7 = vrot.slane %v5819_v5, 1  ;;  %v4958_v8 = vpop.f32.mrb[5].mxu0  ;;  %v5825_v9 = vpack.c.bf16 %v5819_v5, %v5802_v40 }
 0x1a0   :  { %v5827_v10 = vpop.f32.mrb[6].mxu0 }
 0x1a1   :  { %v713_v11 = vrot.slane %v5827_v10, 7  ;;  %v784_v12 = vrot.slane %v5827_v10, 1  ;;  %v4959_v13 = vpop.f32.mrb[7].mxu0  ;;  %v5832_v14 = vsel %vm686_vm15, %v709_v19, %v711_v6  ;;  %v5835_v15 = vsel %vm778_vm8, %v780_v42, %v782_v7 }
 0x1a2   :  { %v5839_v18 = vpack.c.bf16 %v5832_v14, %v5817_v47 }
 0x1a3   :  { %v5846_v23 = vsel %vm686_vm15, %v711_v6, %v713_v11  ;;  %v5849_v24 = vsel %vm778_vm8, %v782_v7, %v784_v12 }
 0x1a4   :  { %v5855_v26 = vpack.c.bf16 %v5849_v24, %v5835_v15 }
 0x1b1   :  { %v5857_v32 = vpop.f32.mrb[8].mxu0 }
 0x1b2   :  { %7745 = vst [vmem:[#allocation12_spill] sm:$0xff] %v5857_v32  ;;  %v715_v33 = vrot.slane %v5857_v32, 7  ;;  %v786_v1 = vrot.slane %v5857_v32, 1  ;;  %v4962_v34 = vpop.f32.mrb[9].mxu0  ;;  %v5863_v35 = vpack.c.bf16 %v5857_v32, %v5827_v10  ;;  %v7770_v32 = vrot.slane %v5799_v37, 1 }
 0x1b3   :  { %v5865_v36 = vpop.f32.mrb[10].mxu0 }
 0x1b4   :  { %7746 = vst [vmem:[#allocation13_spill] sm:$0xff] %v5865_v36  ;;  %v717_v38 = vrot.slane %v5865_v36, 7  ;;  %v788_v19 = vrot.slane %v5865_v36, 1  ;;  %v4963_v42 = vpop.f32.mrb[11].mxu0  ;;  %v5870_v0 = vsel %vm686_vm15, %v713_v11, %v715_v33  ;;  %v5873_v44 = vsel %vm778_vm8, %v784_v12, %v786_v1 }
 0x1b5   :  { %v5877_v45 = vpack.c.bf16 %v5870_v0, %v5846_v23 }
 0x1b6   :  { %v5884_v50 = vsel %vm686_vm15, %v715_v33, %v717_v38  ;;  %v5887_v51 = vsel %vm778_vm8, %v786_v1, %v788_v19 }
 0x1b7   :  { %7747 = vst [vmem:[#allocation14_spill] sm:$0xff] %v5887_v51  ;;  %v5893_v53 = vpack.c.bf16 %v5887_v51, %v5873_v44 }
 0x1c4   :  { %v5895_v54 = vpop.f32.mrb[12].mxu0 }
 0x1c5   :  { %7748 = vst [vmem:[#allocation15_spill] sm:$0xff] %v5895_v54  ;;  %v719_v55 = vrot.slane %v5895_v54, 7  ;;  %v790_v56 = vrot.slane %v5895_v54, 1  ;;  %v4966_v58 = vpop.f32.mrb[13].mxu0  ;;  %v5901_v59 = vpack.c.bf16 %v5895_v54, %v5865_v36  ;;  %v7771_v36 = vrot.slane %v5799_v37, 7 }
 0x1c6   :  { %v5903_v60 = vpop.f32.mrb[14].mxu0 }
 0x1c7   :  { %7749 = vst [vmem:[#allocation16_spill] sm:$0xff] %v5903_v60  ;;  %v721_v61 = vrot.slane %v5903_v60, 7  ;;  %v792_v62 = vrot.slane %v5903_v60, 1  ;;  %v4967_v63 = vpop.f32.mrb[15].mxu0  ;;  %v5908_v3 = vsel %vm686_vm15, %v717_v38, %v719_v55  ;;  %v5911_v4 = vsel %vm778_vm8, %v788_v19, %v790_v56 }
 0x1c8   :  { %7750 = vst [vmem:[#allocation17_spill] sm:$0xff] %v5911_v4  ;;  %v5915_v6 = vpack.c.bf16 %v5908_v3, %v5884_v50 }
 0x1c9   :  { %v5922_v11 = vsel %vm686_vm15, %v719_v55, %v721_v61  ;;  %v5925_v12 = vsel %vm778_vm8, %v790_v56, %v792_v62 }
 0x1ca   :  { %7751 = vst [vmem:[#allocation18_spill] sm:$0xff] %v5925_v12  ;;  %v5931_v16 = vpack.c.bf16 %v5925_v12, %v5911_v4  ;;  %v5211_v4 = vld [vmem:[#allocation2 + $0x100] sm:$0xff]  }
 0x1d7   :  { %v5933_v22 = vpop.f32.mrb[16].mxu0 }
 0x1d8   :  { %7752 = vst [vmem:[#allocation19_spill] sm:$0xff] %v5933_v22  ;;  %v723_v27 = vrot.slane %v5933_v22, 7  ;;  %v794_v28 = vrot.slane %v5933_v22, 1  ;;  %v4970_v29 = vpop.f32.mrb[17].mxu0  ;;  %v5939_v30 = vpack.c.bf16 %v5933_v22, %v5903_v60 }
 0x1d9   :  { %v5941_v31 = vpop.f32.mrb[18].mxu0 }
 0x1da   :  { %7753 = vst [vmem:[#allocation20_spill] sm:$0xff] %v5941_v31  ;;  %v725_v33 = vrot.slane %v5941_v31, 7  ;;  %v796_v1 = vrot.slane %v5941_v31, 1  ;;  %v4971_v34 = vpop.f32.mrb[19].mxu0  ;;  %v5946_v38 = vsel %vm686_vm15, %v721_v61, %v723_v27  ;;  %v5949_v19 = vsel %vm778_vm8, %v792_v62, %v794_v28 }
 0x1db   :  { %7754 = vst [vmem:[#allocation21_spill] sm:$0xff] %v5949_v19  ;;  %v5953_v42 = vpack.c.bf16 %v5946_v38, %v5922_v11 }
 0x1dc   :  { %v5960_v58 = vsel %vm686_vm15, %v723_v27, %v725_v33  ;;  %v5963_v63 = vsel %vm778_vm8, %v794_v28, %v796_v1 }
 0x1dd   :  { %7755 = vst [vmem:[#allocation22_spill] sm:$0xff] %v5963_v63  ;;  %v5969_v62 = vpack.c.bf16 %v5963_v63, %v5949_v19 }
 0x1ea   :  { %v5971_v17 = vpop.f32.mrb[20].mxu0 }
 0x1eb   :  { %7756 = vst [vmem:[#allocation23_spill] sm:$0xff] %v5971_v17  ;;  %v727_v29 = vrot.slane %v5971_v17, 7  ;;  %v798_v34 = vrot.slane %v5971_v17, 1  ;;  %v4974_v56 = vpop.f32.mrb[21].mxu0  ;;  %v5977_v27 = vpack.c.bf16 %v5971_v17, %v5941_v31 }
 0x1ec   :  { %v5979_v28 = vpop.f32.mrb[22].mxu0 }
 0x1ed   :  { %7757 = vst [vmem:[#allocation24_spill] sm:$0xff] %v5979_v28  ;;  %v729_v8 = vrot.slane %v5979_v28, 7  ;;  %v800_v55 = vrot.slane %v5979_v28, 1  ;;  %v4975_v49 = vpop.f32.mrb[23].mxu0  ;;  %v5984_v7 = vsel %vm686_vm15, %v725_v33, %v727_v29  ;;  %v5987_v21 = vsel %vm778_vm8, %v796_v1, %v798_v34 }
 0x1ee   :  { %7758 = vst [vmem:[#allocation25_spill] sm:$0xff] %v5987_v21  ;;  %v5991_v56 = vpack.c.bf16 %v5984_v7, %v5960_v58 }
 0x1ef   :  { %v5998_v20 = vsel %vm686_vm15, %v727_v29, %v729_v8  ;;  %v6001_v49 = vsel %vm778_vm8, %v798_v34, %v800_v55 }
 0x1f0   :  { %7759 = vst [vmem:[#allocation26_spill] sm:$0xff] %v6001_v49  ;;  %v6007_v1 = vpack.c.bf16 %v6001_v49, %v5987_v21 }
 0x1fd   :  { %v6009_v2 = vpop.f32.mrb[24].mxu0 }
 0x1fe   :  { %7760 = vst [vmem:[#allocation27_spill] sm:$0xff] %v6009_v2  ;;  %v731_v48 = vrot.slane %v6009_v2, 7  ;;  %v802_v61 = vrot.slane %v6009_v2, 1  ;;  %v4978_v43 = vpop.f32.mrb[25].mxu0  ;;  %v6015_v29 = vpack.c.bf16 %v6009_v2, %v5979_v28 }
 0x1ff   :  { %v6017_v34 = vpop.f32.mrb[26].mxu0 }
 0x200   :  { %7761 = vst [vmem:[#allocation28_spill] sm:$0xff] %v6017_v34  ;;  %v733_v13 = vrot.slane %v6017_v34, 7  ;;  %v804_v33 = vrot.slane %v6017_v34, 1  ;;  %v4979_v52 = vpop.f32.mrb[27].mxu0  ;;  %v6022_v25 = vsel %vm686_vm15, %v729_v8, %v731_v48  ;;  %v6025_v39 = vsel %vm778_vm8, %v800_v55, %v802_v61 }
 0x201   :  { %7762 = vst [vmem:[#allocation29_spill] sm:$0xff] %v6025_v39  ;;  %v6029_v43 = vpack.c.bf16 %v6022_v25, %v5998_v20 }
 0x202   :  { %v6036_v17 = vsel %vm686_vm15, %v731_v48, %v733_v13  ;;  %v6039_v52 = vsel %vm778_vm8, %v802_v61, %v804_v33 }
 0x203   :  { %7763 = vst [vmem:[#allocation30_spill] sm:$0xff] %v6039_v52  ;;  %v6045_v55 = vpack.c.bf16 %v6039_v52, %v6025_v39 }
 0x210   :  { %v6047_v28 = vpop.f32.mrb[28].mxu0 }
 0x211   :  { %7764 = vst [vmem:[#allocation31_spill] sm:$0xff] %v6047_v28  ;;  %v735_v41 = vrot.slane %v6047_v28, 7  ;;  %v806_v49 = vrot.slane %v6047_v28, 1  ;;  %v4982_v57 = vpop.f32.mrb[29].mxu0  ;;  %v6053_v48 = vpack.c.bf16 %v6047_v28, %v6017_v34 }
 0x212   :  { %v6055_v61 = vpop.f32.mrb[30].mxu0 }
 0x213   :  { %7765 = vst [vmem:[#allocation32_spill] sm:$0xff] %v6055_v61  ;;  %v737_v2 = vrot.slane %v6055_v61, 7  ;;  %v808_v8 = vrot.slane %v6055_v61, 1  ;;  %v4983_v22 = vpop.f32.mrb[31].mxu0  ;;  %v6060_v39 = vsel %vm686_vm15, %v733_v13, %v735_v41  ;;  %v6063_v31 = vsel %vm778_vm8, %v804_v33, %v806_v49 }
 0x214   :  { %7766 = vst [vmem:[#allocation33_spill] sm:$0xff] %v6063_v31  ;;  %v6067_v57 = vpack.c.bf16 %v6060_v39, %v6036_v17 }
 0x215   :  { %v6074_v21 = vsel %vm686_vm15, %v735_v41, %v737_v2  ;;  %v6077_v22 = vsel %vm778_vm8, %v806_v49, %v808_v8 }
 0x216   :  { %v6083_v33 = vpack.c.bf16 %v6077_v22, %v6063_v31 }
 0x223   :  { %v6085_v54 = vpop.f32.mrb[32].mxu0 }
 0x224   :  { %7767 = vst [vmem:[#allocation34_spill] sm:$0xff] %v6085_v54  ;;  %v687_v34 = vrot.slane %v6085_v54, 7  ;;  %v810_v52 = vrot.slane %v6085_v54, 1  ;;  %v4986_v63 = vpop.f32.mrb[33].mxu0  ;;  %v6091_v41 = vpack.c.bf16 %v6085_v54, %v6055_v61 }
 0x225   :  { %v6093_v49 = vpop.f32.mrb[34].mxu0 }
 0x226   :  { %7768 = vst [vmem:[#allocation35_spill] sm:$0xff] %v6093_v49  ;;  %v688_v28 = vrot.slane %v6093_v49, 7  ;;  %v776_v13 = vrot.slane %v6093_v49, 1  ;;  %v4987_v60 = vpop.f32.mrb[35].mxu0  ;;  %v6099_v31 = vpack.c.bf16 %v5799_v37, %v6093_v49  ;;  %v6102_v12 = vsel %vm686_vm15, %v737_v2, %v687_v34  ;;  %v5212_v49 = vld [vmem:[#allocation2 + $0x148] sm:$0xff]  }
 0x227   :  { %v6106_v63 = vpack.c.bf16 %v6102_v12, %v6074_v21  ;;  %v6109_v61 = vsel %vm778_vm8, %v808_v8, %v810_v52 }
 0x228   :  { %7769 = vst [vmem:[#allocation36_spill] sm:$0xff] %v6099_v31  ;;  %v6116_v60 = vsel %vm778_vm8, %v776_v13, %v7770_v32  ;;  %1476 = vmatprep.mubr.bf16.mxu1 %v6099_v31  ;;  %v6120_v2 = vsel %vm686_vm15, %v687_v34, %v688_v28  ;;  %v757_v51 = vsel %vm686_vm15, %v688_v28, %v7771_v36  ;;  %v5221_v31 = vld [vmem:[#allocation2 + $0x180] sm:$0xff]   ;;  %v5225_v28 = vld [vmem:[#allocation2 + $0x188] sm:$0xff]  }
 0x229   :  { %v6126_v8 = vsel %vm778_vm8, %v810_v52, %v776_v13  ;;  %v6130_v19 = vpack.c.bf16 %v5812_v46, %v6116_v60  ;;  %v6133_v32 = vpack.c.bf16 %v757_v51, %v6120_v2  ;;  %v841_v54 = vpack.c.bf16 %v5817_v47, %v757_v51  ;;  %v5224_v13 = vld [vmem:[#allocation2 + $0x1c8] sm:$0xff]   ;;  %v5214_v51 = vld [vmem:[#allocation2 + $0x150] sm:$0xff]  }
 0x22a   :  { %v6140_v36 = vpack.c.bf16 %v6126_v8, %v6109_v61  ;;  %v5213_v47 = vld [vmem:[#allocation2 + $0x108] sm:$0xff]   ;;  %v7774_v34 = vpack.c.bf16 %v5846_v23, %v5832_v14  ;;  %v5226_v52 = vld [vmem:[#allocation2 + $0x1d0] sm:$0xff]   ;;  %v5218_v14 = vld [vmem:[#allocation2 + $0x160] sm:$0xff]   ;;  %v7775_v23 = vpack.c.bf16 %v5884_v50, %v5870_v0  ;;  %v7776_v50 = vpack.c.bf16 %v5922_v11, %v5908_v3 }
 0x22b   :  { %7772 = vst [vmem:[#allocation37_spill] sm:$0xff] %v6130_v19  ;;  %7773 = vst [vmem:[#allocation38_spill] sm:$0xff] %v6133_v32  ;;  %1477 = vmatmul.mubr.bf16.vlgmr.msra.gmra.mrb[0].mxu1 %v6133_v32  ;;  %1581 = vmatprep.mubr.bf16.mxu0 %v841_v54  ;;  %v5215_v32 = vld [vmem:[#allocation2 + $0x110] sm:$0xff]   ;;  %v5216_v54 = vld [vmem:[#allocation2 + $0x158] sm:$0xff]   ;;  %v7777_v3 = vpack.c.bf16 %v5960_v58, %v5946_v38  ;;  %v7780_v38 = vpack.c.bf16 %v6036_v17, %v6022_v25 }
 0x22c   :  { %4477 = vmatpush3.bf16.msra.mxu1 %v5211_v4  ;;  %1484 = vmatprep.mubr.bf16.mxu1 %v5825_v9  ;;  %v5227_v4 = vld [vmem:[#allocation2 + $0x190] sm:$0xff]   ;;  %v5241_v11 = vld [vmem:[#allocation2 + $0x1b8] sm:$0xff]   ;;  %v7782_v25 = vpack.c.bf16 %v6120_v2, %v6102_v12  ;;  %v7785_v12 = vpack.c.bf16 %v5873_v44, %v5849_v24  ;;  %v5243_v58 = vld [vmem:[#allocation2 + $0x208] sm:$0xff]  }
 0x22d   :  { %1582 = vmatmul.mubr.bf16.vlgmr.msra.gmra.mrb[36].mxu0 %v6130_v19  ;;  %4478 = vmatprep.subr.bf16.mxu1 %v5212_v49  ;;  %v5229_v19 = vld [vmem:[#allocation2 + $0x1d8] sm:$0xff]   ;;  %v5228_v0 = vld [vmem:[#allocation2 + $0x170] sm:$0xff]  }
 0x22e   :  { %1589 = vmatprep.mubr.bf16.mxu0 %v7774_v34  ;;  %4547 = vmatpush3.bf16.msra.mxu0 %v5221_v31  ;;  %v5217_v49 = vld [vmem:[#allocation2 + $0x118] sm:$0xff]   ;;  %v5232_v34 = vld [vmem:[#allocation2 + $0x1e0] sm:$0xff]   ;;  %v7791_v44 = vld [vmem:[#allocation12_spill] sm:$0xff] }
 0x22f   :  { %4548 = vmatprep.subr.bf16.mxu0 %v5224_v13  ;;  %v5231_v31 = vld [vmem:[#allocation2 + $0x198] sm:$0xff]   ;;  %v5233_v13 = vld [vmem:[#allocation2 + $0x1a0] sm:$0xff]  }
 0x230   :  { %4479 = vmatpush3.bf16.msra.mxu1 %v5213_v47  ;;  %v5223_v47 = vld [vmem:[#allocation2 + $0x128] sm:$0xff]   ;;  %v5245_v24 = vld [vmem:[#allocation2 + $0x218] sm:$0xff]  }
 0x231   :  { %4480 = vmatprep.subr.bf16.mxu1 %v5214_v51  ;;  %v5238_v51 = vld [vmem:[#allocation2 + $0x1f0] sm:$0xff]   ;;  %v7794_v17 = vld [vmem:[#allocation18_spill] sm:$0xff] }
 0x232   :  { %4549 = vmatpush3.bf16.msra.mxu0 %v5225_v28  ;;  %v5219_v28 = vld [vmem:[#allocation2 + $0x120] sm:$0xff]  }
 0x233   :  { %1485 = vmatmul.mubr.bf16.gmra.mrb[4].mxu1 %v5839_v18  ;;  %4550 = vmatprep.subr.bf16.mxu0 %v5226_v52  ;;  %v5222_v52 = vld [vmem:[#allocation2 + $0x168] sm:$0xff]  }
 0x234   :  { %1492 = vmatprep.mubr.bf16.mxu1 %v5863_v35  ;;  %4481 = vmatpush3.bf16.msra.mxu1 %v5215_v32  ;;  %v5234_v32 = vld [vmem:[#allocation2 + $0x1e8] sm:$0xff]  }
 0x235   :  { %1590 = vmatmul.mubr.bf16.gmra.mrb[40].mxu0 %v5855_v26  ;;  %4482 = vmatprep.subr.bf16.mxu1 %v5216_v54  ;;  %v5230_v54 = vld [vmem:[#allocation2 + $0x130] sm:$0xff]  }
 0x236   :  { %1597 = vmatprep.mubr.bf16.mxu0 %v7775_v23  ;;  %4551 = vmatpush3.bf16.msra.mxu0 %v5227_v4  ;;  %v5235_v4 = vld [vmem:[#allocation2 + $0x178] sm:$0xff]  }
 0x237   :  { %4552 = vmatprep.subr.bf16.mxu0 %v5229_v19  ;;  %v5236_v19 = vld [vmem:[#allocation2 + $0x1a8] sm:$0xff]   ;;  %v5237_v23 = vld [vmem:[#allocation2 + $0x138] sm:$0xff]  }
 0x238   :  { %4483 = vmatpush3.bf16.msra.mxu1 %v5217_v49  ;;  %v5239_v49 = vld [vmem:[#allocation2 + $0x1b0] sm:$0xff]  }
 0x239   :  { %4484 = vmatprep.subr.bf16.mxu1 %v5218_v14  ;;  %v5240_v14 = vld [vmem:[#allocation2 + $0x1f8] sm:$0xff]  }
 0x23a   :  { %4553 = vmatpush3.bf16.msra.mxu0 %v5231_v31  ;;  %v7778_v31 = vmov 0.0  }
 0x23b   :  { %1493 = vmatmul.mubr.bf16.gmra.mrb[8].mxu1 %v5877_v45  ;;  %4554 = vmatprep.subr.bf16.mxu0 %v5232_v34  ;;  %v7779_v34 = vpack.c.bf16 %v5998_v20, %v5984_v7  ;;  %v7781_v20 = vpack.c.bf16 %v6074_v21, %v6060_v39  ;;  %v7783_v7 = vpack.c.bf16 %v5835_v15, %v5812_v46  ;;  %v5242_v39 = vld [vmem:[#allocation2 + $0x200] sm:$0xff]   ;;  %v5244_v46 = vld [vmem:[#allocation2 + $0x210] sm:$0xff]  }
 0x23c   :  { %1500 = vmatprep.mubr.bf16.mxu1 %v5901_v59  ;;  %4485 = vmatpush3.bf16.msra.mxu1 %v5219_v28  ;;  %v7784_v21 = vpack.c.bf16 %v5802_v40, %v5799_v37  ;;  %v7786_v37 = vpack.c.bf16 %v5827_v10, %v5819_v5  ;;  %v7787_v40 = vld [vmem:[#allocation17_spill] sm:$0xff]  ;;  %v5247_v28 = vld [vmem:[#allocation2 + $0x228] sm:$0xff]  }
 0x23d   :  { %1598 = vmatmul.mubr.bf16.gmra.mrb[44].mxu0 %v5893_v53  ;;  %4486 = vmatprep.subr.bf16.mxu1 %v5222_v52  ;;  %v7793_v10 = vld [vmem:[#allocation21_spill] sm:$0xff]  ;;  %v7797_v52 = vld [vmem:[#allocation15_spill] sm:$0xff] }
 0x23e   :  { %1605 = vmatprep.mubr.bf16.mxu0 %v7776_v50  ;;  %4555 = vmatpush3.bf16.msra.mxu0 %v5233_v13  ;;  %v7795_v2 = vpack.c.bf16 %v7793_v10, %v7794_v17  ;;  %v5249_v50 = vld [vmem:[#allocation2 + $0x238] sm:$0xff]  }
 0x23f   :  { %4556 = vmatprep.subr.bf16.mxu0 %v5234_v32  ;;  %v7799_v32 = vld [vmem:[#allocation25_spill] sm:$0xff] }
 0x240   :  { %4487 = vmatpush3.bf16.msra.mxu1 %v5223_v47  ;;  %v7800_v47 = vld [vmem:[#allocation22_spill] sm:$0xff] }
 0x241   :  { %4488 = vmatprep.subr.bf16.mxu1 %v5228_v0  ;;  %v7801_v0 = vpack.c.bf16 %v7799_v32, %v7800_v47 }
 0x242   :  { %4557 = vmatpush3.bf16.msra.mxu0 %v5236_v19  ;;  %v7802_v19 = vld [vmem:[#allocation20_spill] sm:$0xff] }
 0x243   :  { %1501 = vmatmul.mubr.bf16.gmra.mrb[12].mxu1 %v5915_v6  ;;  %4558 = vmatprep.subr.bf16.mxu0 %v5238_v51  ;;  %v7803_v51 = vld [vmem:[#allocation19_spill] sm:$0xff] }
 0x244   :  { %1508 = vmatprep.mubr.bf16.mxu1 %v5939_v30  ;;  %4489 = vmatpush3.bf16.msra.mxu1 %v5230_v54  ;;  %v7804_v54 = vpack.c.bf16 %v7802_v19, %v7803_v51 }
 0x245   :  { %1606 = vmatmul.mubr.bf16.gmra.mrb[48].mxu0 %v5931_v16  ;;  %4490 = vmatprep.subr.bf16.mxu1 %v5235_v4  ;;  %v7806_v4 = vld [vmem:[#allocation26_spill] sm:$0xff] }
 0x246   :  { %1613 = vmatprep.mubr.bf16.mxu0 %v7777_v3  ;;  %4559 = vmatpush3.bf16.msra.mxu0 %v5239_v49  ;;  %v7808_v3 = vld [vmem:[#allocation24_spill] sm:$0xff] }
 0x247   :  { %4560 = vmatprep.subr.bf16.mxu0 %v5240_v14  ;;  %v77_v14 = vld [vmem:[%s7648_s1 + $0x18] sm:$0xff] }
 0x248   :  { %4491 = vmatpush3.bf16.msra.mxu1 %v5237_v23  ;;  %v79_v23 = vld [vmem:[%s7648_s1 + $0x28] sm:$0xff] }
 0x249   :  { %4988 = vmatprep.subr.bf16.mxu1 %v7778_v31 }
 0x24a   :  { %4561 = vmatpush3.bf16.msra.mxu0 %v5241_v11  ;;  %v7809_v11 = vld [vmem:[#allocation23_spill] sm:$0xff] }
 0x24b   :  { %1509 = vmatmul.mubr.bf16.gmra.mrb[16].mxu1 %v5953_v42 }
 0x24c   :  { %1516 = vmatprep.mubr.bf16.mxu1 %v5977_v27 }
 0x24d   :  { %1614 = vmatmul.mubr.bf16.gmra.mrb[52].mxu0 %v5969_v62 }
 0x24e   :  { %1621 = vmatprep.mubr.bf16.mxu0 %v7779_v34  ;;  %v7810_v34 = vpack.c.bf16 %v7808_v3, %v7809_v11 }
 0x253   :  { %1517 = vmatmul.mubr.bf16.gmra.mrb[20].mxu1 %v5991_v56 }
 0x254   :  { %1524 = vmatprep.mubr.bf16.mxu1 %v6015_v29 }
 0x255   :  { %1622 = vmatmul.mubr.bf16.gmra.mrb[56].mxu0 %v6007_v1 }
 0x256   :  { %1629 = vmatprep.mubr.bf16.mxu0 %v7780_v38  ;;  %v7812_v38 = vld [vmem:[#allocation30_spill] sm:$0xff] }
 0x25b   :  { %1525 = vmatmul.mubr.bf16.gmra.mrb[24].mxu1 %v6029_v43 }
 0x25c   :  { %1532 = vmatprep.mubr.bf16.mxu1 %v6053_v48 }
 0x25d   :  { %1630 = vmatmul.mubr.bf16.gmra.mrb[60].mxu0 %v6045_v55 }
 0x25e   :  { %1637 = vmatprep.mubr.bf16.mxu0 %v7781_v20 }
 0x263   :  { %1533 = vmatmul.mubr.bf16.gmra.mrb[28].mxu1 %v6067_v57 }
 0x264   :  { %1540 = vmatprep.mubr.bf16.mxu1 %v6091_v41 }
 0x265   :  { %1638 = vmatmul.mubr.bf16.gmra.mrb[64].mxu0 %v6083_v33 }
 0x266   :  { %1645 = vmatprep.mubr.bf16.mxu0 %v7782_v25  ;;  %v81_v25 = vld [vmem:[%s7648_s1 + $0x38] sm:$0xff] }
 0x26b   :  { %1541 = vmatmul.mubr.bf16.gmra.mrb[32].mxu1 %v6106_v63 }
 0x26c   :  { %1686 = vmatprep.mubr.bf16.mxu1 %v7783_v7  ;;  %v80_v7 = vld [vmem:[%s7648_s1 + $0x30] sm:$0xff] }
 0x26d   :  { %1646 = vmatmul.mubr.bf16.gmra.mrb[68].mxu0 %v6140_v36 }
 0x26e   :  { %1791 = vmatprep.mubr.bf16.mxu0 %v5825_v9  ;;  %v7788_v9 = vld [vmem:[#allocation14_spill] sm:$0xff] }
 0x26f   :  { %v7789_v15 = vpack.c.bf16 %v7787_v40, %v7788_v9  ;;  %v7821_v9 = vpack.c.bf16 %v6116_v60, %v6126_v8  ;;  %v7823_v60 = vld [vmem:[#allocation35_spill] sm:$0xff]  ;;  %v7824_v8 = vld [vmem:[#allocation34_spill] sm:$0xff] }
 0x273   :  { %1687 = vmatmul.mubr.bf16.vlgmr.msra.gmra.mrb[36].mxu1 %v7784_v21  ;;  %v7815_v21 = vld [vmem:[#allocation27_spill] sm:$0xff] }
 0x274   :  { %4989 = vmatpush3.bf16.msra.mxu1 %v5242_v39  ;;  %1694 = vmatprep.mubr.bf16.mxu1 %v7785_v12  ;;  %v7814_v39 = vld [vmem:[#allocation28_spill] sm:$0xff] }
 0x275   :  { %1792 = vmatmul.mubr.bf16.vlgmr.msra.gmra.mrb[72].mxu0 %v5839_v18  ;;  %4990 = vmatprep.subr.bf16.mxu1 %v7778_v31  ;;  %v5246_v18 = vld [vmem:[#allocation2 + $0x220] sm:$0xff]   ;;  %v7816_v12 = vpack.c.bf16 %v7814_v39, %v7815_v21 }
 0x276   :  { %1799 = vmatprep.mubr.bf16.mxu0 %v5863_v35  ;;  %v7790_v35 = vld [vmem:[#allocation13_spill] sm:$0xff] }
 0x277   :  { %v7792_v5 = vpack.c.bf16 %v7790_v35, %v7791_v44  ;;  %v7825_v35 = vpack.c.bf16 %v7823_v60, %v7824_v8  ;;  %v7826_v44 = vld [vmem:[#allocation38_spill] sm:$0xff] }
 0x278   :  { %4991 = vmatpush3.bf16.msra.mxu1 %v5243_v58  ;;  %v7817_v58 = vpack.c.bf16 %v6109_v61, %v6077_v22  ;;  %v87_v61 = vld [vmem:[%s7648_s1 + $0x68] sm:$0xff]  ;;  %v7819_v22 = vld [vmem:[#allocation31_spill] sm:$0xff] }
 0x279   :  { %4992 = vmatprep.subr.bf16.mxu1 %v7778_v31 }
 0x27b   :  { %1695 = vmatmul.mubr.bf16.gmra.mrb[40].mxu1 %v7786_v37  ;;  %v84_v37 = vld [vmem:[%s7648_s1 + $0x50] sm:$0xff] }
 0x27c   :  { %1702 = vmatprep.mubr.bf16.mxu1 %v7789_v15  ;;  %4993 = vmatpush3.bf16.msra.mxu1 %v5244_v46  ;;  %v85_v46 = vld [vmem:[%s7648_s1 + $0x58] sm:$0xff] }
 0x27d   :  { %1800 = vmatmul.mubr.bf16.gmra.mrb[76].mxu0 %v5877_v45  ;;  %4994 = vmatprep.subr.bf16.mxu1 %v7778_v31  ;;  %v5248_v45 = vld [vmem:[#allocation2 + $0x230] sm:$0xff]   ;;  %v89_v15 = vld [vmem:[%s7648_s1 + $0x78] sm:$0xff] }
 0x27e   :  { %1807 = vmatprep.mubr.bf16.mxu0 %v5901_v59  ;;  %v7796_v59 = vld [vmem:[#allocation16_spill] sm:$0xff] }
 0x27f   :  { %v7798_v13 = vpack.c.bf16 %v7796_v59, %v7797_v52 }
 0x280   :  { %4995 = vmatpush3.bf16.msra.mxu1 %v5245_v24  ;;  %v7822_v24 = vld [vmem:[#allocation36_spill] sm:$0xff] }
 0x281   :  { %4996 = vmatprep.subr.bf16.mxu1 %v7778_v31 }
 0x283   :  { %1703 = vmatmul.mubr.bf16.gmra.mrb[44].mxu1 %v7792_v5  ;;  %v90_v5 = vld [vmem:[%s7648_s1 + $0x80] sm:$0xff] }
 0x284   :  { %1710 = vmatprep.mubr.bf16.mxu1 %v7795_v2  ;;  %4997 = vmatpush3.bf16.msra.mxu1 %v5246_v18  ;;  %v88_v18 = vld [vmem:[%s7648_s1 + $0x70] sm:$0xff] }
 0x285   :  { %1808 = vmatmul.mubr.bf16.gmra.mrb[80].mxu0 %v5915_v6  ;;  %4998 = vmatprep.subr.bf16.mxu1 %v7778_v31  ;;  %v74_v6 = vld [vmem:[%s7648_s1] sm:$0xff] }
 0x286   :  { %1815 = vmatprep.mubr.bf16.mxu0 %v5939_v30  ;;  %1971 = vperm.xlu1 %5174, %v74_v6   ;;  %v76_v30 = vld [vmem:[%s7648_s1 + $0x10] sm:$0xff] }
 0x288   :  { %4999 = vmatpush3.bf16.msra.mxu1 %v5247_v28 }
 0x289   :  { %5000 = vmatprep.subr.bf16.mxu1 %v7778_v31 }
 0x28a   :  { %1981 = vperm.xlu1 %5174, %v76_v30  }
 0x28b   :  { %1711 = vmatmul.mubr.bf16.gmra.mrb[48].mxu1 %v7798_v13 }
 0x28c   :  { %1718 = vmatprep.mubr.bf16.mxu1 %v7801_v0  ;;  %5001 = vmatpush3.bf16.msra.mxu1 %v5248_v45 }
 0x28d   :  { %1816 = vmatmul.mubr.bf16.gmra.mrb[84].mxu0 %v5953_v42  ;;  %5002 = vmatprep.subr.bf16.mxu1 %v7778_v31  ;;  %v7805_v42 = vld [vmem:[#allocation29_spill] sm:$0xff] }
 0x28e   :  { %1823 = vmatprep.mubr.bf16.mxu0 %v5977_v27  ;;  %v7807_v49 = vpack.c.bf16 %v7805_v42, %v7806_v4  ;;  %v75_v27 = vld [vmem:[%s7648_s1 + $0x8] sm:$0xff]  ;;  %1986 = vperm.xlu1 %5174, %v77_v14  }
 0x28f   :  { %1976 = vperm.xlu0 %5175, %v75_v27  }
 0x290   :  { %5003 = vmatpush3.bf16.msra.mxu1 %v5249_v50 }
 0x292   :  { %1996 = vperm.xlu1 %5174, %v79_v23  }
 0x293   :  { %1719 = vmatmul.mubr.bf16.gmra.mrb[52].mxu1 %v7804_v54 }
 0x294   :  { %1726 = vmatprep.mubr.bf16.mxu1 %v7807_v49 }
 0x295   :  { %1824 = vmatmul.mubr.bf16.gmra.mrb[88].mxu0 %v5991_v56  ;;  %v7811_v56 = vld [vmem:[#allocation33_spill] sm:$0xff] }
 0x296   :  { %1831 = vmatprep.mubr.bf16.mxu0 %v6015_v29  ;;  %v7813_v20 = vpack.c.bf16 %v7811_v56, %v7812_v38  ;;  %v78_v29 = vld [vmem:[%s7648_s1 + $0x20] sm:$0xff]  ;;  %2006 = vperm.xlu1 %5174, %v81_v25  }
 0x297   :  { %1991 = vperm.xlu0 %5175, %v78_v29  }
 0x29b   :  { %1727 = vmatmul.mubr.bf16.gmra.mrb[56].mxu1 %v7810_v34  ;;  %2001 = vperm.xlu0 %5175, %v80_v7  }
 0x29c   :  { %1734 = vmatprep.mubr.bf16.mxu1 %v7813_v20 }
 0x29d   :  { %1832 = vmatmul.mubr.bf16.gmra.mrb[92].mxu0 %v6029_v43  ;;  %v83_v43 = vld [vmem:[%s7648_s1 + $0x48] sm:$0xff] }
 0x29e   :  { %1839 = vmatprep.mubr.bf16.mxu0 %v6053_v48  ;;  %2016 = vperm.xlu1 %5174, %v83_v43   ;;  %v82_v48 = vld [vmem:[%s7648_s1 + $0x40] sm:$0xff] }
 0x29f   :  { %2011 = vperm.xlu0 %5175, %v82_v48  }
 0x2a2   :  { %2026 = vperm.xlu1 %5174, %v85_v46  }
 0x2a3   :  { %1735 = vmatmul.mubr.bf16.gmra.mrb[60].mxu1 %v7816_v12  ;;  %2021 = vperm.xlu0 %5175, %v84_v37  }
 0x2a4   :  { %1742 = vmatprep.mubr.bf16.mxu1 %v7817_v58 }
 0x2a5   :  { %1840 = vmatmul.mubr.bf16.gmra.mrb[96].mxu0 %v6067_v57  ;;  %v7818_v57 = vld [vmem:[#allocation32_spill] sm:$0xff] }
 0x2a6   :  { %1847 = vmatprep.mubr.bf16.mxu0 %v6091_v41  ;;  %v7820_v40 = vpack.c.bf16 %v7818_v57, %v7819_v22  ;;  %2036 = vperm.xlu1 %5174, %v87_v61   ;;  %v86_v41 = vld [vmem:[%s7648_s1 + $0x60] sm:$0xff] }
 0x2a7   :  { %2031 = vperm.xlu0 %5175, %v86_v41  }
 0x2aa   :  { %2046 = vperm.xlu1 %5174, %v89_v15  }
 0x2ab   :  { %1743 = vmatmul.mubr.bf16.gmra.mrb[64].mxu1 %v7820_v40  ;;  %2041 = vperm.xlu0 %5175, %v88_v18  }
 0x2ac   :  { %1750 = vmatprep.mubr.bf16.mxu1 %v7821_v9 }
 0x2ad   :  { %1848 = vmatmul.mubr.bf16.gmra.mrb[100].mxu0 %v6106_v63  ;;  %v91_v63 = vld [vmem:[%s7648_s1 + $0x88] sm:$0xff] }
 0x2ae   :  { %1855 = vmatprep.mubr.bf16.mxu0 %v7822_v24  ;;  %2056 = vperm.xlu1 %5174, %v91_v63  }
 0x2af   :  { %2051 = vperm.xlu0 %5175, %v90_v5  }
 0x2b3   :  { %1751 = vmatmul.mubr.bf16.gmra.mrb[68].mxu1 %v7825_v35 }
 0x2b4   :  { %5004 = vmatprep.mubr.msk.bf16.mxu1 %vm5428_vm1, %v7778_v31 }
 0x2b5   :  { %1856 = vmatmul.mubr.bf16.gmra.mrb[104].mxu0 %v7826_v44 }
 0x2bb   :  { %5005 = vmatmul.mubr.bf16.vlgmr.msra.gmra.mrb[72].mxu1 %v5855_v26  ;;  %v7827_v26 = vld [vmem:[#allocation37_spill] sm:$0xff] }
 0x2bc   :  { %5008 = vmatprep.mubr.msk.bf16.mxu1 %vm5428_vm1, %v7778_v31 }
 0x2c3   :  { %5009 = vmatmul.mubr.bf16.gmra.mrb[76].mxu1 %v5893_v53 }
 0x2c4   :  { %5012 = vmatprep.mubr.msk.bf16.mxu1 %vm5428_vm1, %v7778_v31 }
 0x2cb   :  { %5013 = vmatmul.mubr.bf16.gmra.mrb[80].mxu1 %v5931_v16 }
 0x2cc   :  { %5016 = vmatprep.mubr.msk.bf16.mxu1 %vm5428_vm1, %v7778_v31 }
 0x2d3   :  { %5017 = vmatmul.mubr.bf16.gmra.mrb[84].mxu1 %v5969_v62 }
 0x2d4   :  { %5020 = vmatprep.mubr.msk.bf16.mxu1 %vm5428_vm1, %v7778_v31 }
 0x2db   :  { %5021 = vmatmul.mubr.bf16.gmra.mrb[88].mxu1 %v6007_v1 }
 0x2dc   :  { %5024 = vmatprep.mubr.msk.bf16.mxu1 %vm5428_vm1, %v7778_v31 }
 0x2e3   :  { %5025 = vmatmul.mubr.bf16.gmra.mrb[92].mxu1 %v6045_v55 }
 0x2e4   :  { %5028 = vmatprep.mubr.msk.bf16.mxu1 %vm5428_vm1, %v7778_v31 }
 0x2eb   :  { %5029 = vmatmul.mubr.bf16.gmra.mrb[96].mxu1 %v6083_v33 }
 0x2ec   :  { %5032 = vmatprep.mubr.msk.bf16.mxu1 %vm5428_vm1, %v7778_v31 }
 0x2f3   :  { %5033 = vmatmul.mubr.bf16.gmra.mrb[100].mxu1 %v6140_v36 }
 0x2f4   :  { %5036 = vmatprep.mubr.msk.bf16.mxu1 %vm5428_vm1, %v7778_v31 }
 0x2fb   :  { %5037 = vmatmul.mubr.bf16.gmra.mrb[104].mxu1 %v7827_v26 }
 0x2fe   :  { %v4352_v53 = vpop.f32.mrb[0].mxu1 }
 0x2ff   :  { %v4353_v16 = vpop.f32.mrb[1].mxu1 }
 0x300   :  { %v4354_v62 = vadd.f32 %v4353_v16, %v4352_v53  ;;  %v4422_v1 = vpop.f32.mrb[36].mxu0  ;;  %v4355_v55 = vpop.f32.mrb[2].mxu1 }
 0x301   :  { %v4423_v10 = vpop.f32.mrb[37].mxu0  ;;  %v4356_v17 = vpop.f32.mrb[3].mxu1 }
 0x302   :  { %v4424_v2 = vadd.f32 %v4423_v10, %v4422_v1  ;;  %v4357_v28 = vadd.f32 %v4356_v17, %v4355_v55  ;;  %v4425_v33 = vpop.f32.mrb[38].mxu0 }
 0x303   :  { %v4426_v45 = vpop.f32.mrb[39].mxu0 }
 0x304   :  { %v6357_v59 = vadd.f32 %v4424_v2, %v4354_v62  ;;  %v4427_v52 = vadd.f32 %v4426_v45, %v4425_v33 }
 0x306   :  { %v6359_v36 = vadd.f32 %v4427_v52, %v4357_v28  ;;  %v4358_v13 = vpop.f32.mrb[4].mxu1 }
 0x307   :  { %v4359_v32 = vpop.f32.mrb[5].mxu1 }
 0x308   :  { %v4360_v47 = vadd.f32 %v4359_v32, %v4358_v13  ;;  %v4428_v0 = vpop.f32.mrb[40].mxu0  ;;  %v4361_v50 = vpop.f32.mrb[6].mxu1 }
 0x309   :  { %v4429_v6 = vpop.f32.mrb[41].mxu0  ;;  %v4362_v30 = vpop.f32.mrb[7].mxu1 }
 0x30a   :  { %v4430_v19 = vadd.f32 %v4429_v6, %v4428_v0  ;;  %v4363_v51 = vadd.f32 %v4362_v30, %v4361_v50  ;;  %v4431_v54 = vpop.f32.mrb[42].mxu0 }
 0x30b   :  { %v4432_v42 = vpop.f32.mrb[43].mxu0 }
 0x30c   :  { %v6361_v4 = vadd.f32 %v4430_v19, %v4360_v47  ;;  %v4433_v49 = vadd.f32 %v4432_v42, %v4431_v54 }
 0x30e   :  { %v6363_v27 = vadd.f32 %v4433_v49, %v4363_v51  ;;  %v4364_v14 = vpop.f32.mrb[8].mxu1 }
 0x30f   :  { %v4365_v23 = vpop.f32.mrb[9].mxu1 }
 0x310   :  { %v4366_v3 = vadd.f32 %v4365_v23, %v4364_v14  ;;  %v4434_v11 = vpop.f32.mrb[44].mxu0  ;;  %v4367_v34 = vpop.f32.mrb[10].mxu1 }
 0x311   :  { %v4435_v56 = vpop.f32.mrb[45].mxu0  ;;  %v4368_v38 = vpop.f32.mrb[11].mxu1 }
 0x312   :  { %v4436_v20 = vadd.f32 %v4435_v56, %v4434_v11  ;;  %v4369_v29 = vadd.f32 %v4368_v38, %v4367_v34  ;;  %v4437_v25 = vpop.f32.mrb[46].mxu0 }
 0x313   :  { %v4438_v7 = vpop.f32.mrb[47].mxu0 }
 0x314   :  { %v6365_v43 = vadd.f32 %v4436_v20, %v4366_v3  ;;  %v4439_v39 = vadd.f32 %v4438_v7, %v4437_v25 }
 0x316   :  { %v6367_v21 = vadd.f32 %v4439_v39, %v4369_v29  ;;  %v4370_v12 = vpop.f32.mrb[12].mxu1 }
 0x317   :  { %v4371_v58 = vpop.f32.mrb[13].mxu1 }
 0x318   :  { %v4372_v48 = vadd.f32 %v4371_v58, %v4370_v12  ;;  %v4440_v46 = vpop.f32.mrb[48].mxu0  ;;  %v4373_v37 = vpop.f32.mrb[14].mxu1 }
 0x319   :  { %v4441_v61 = vpop.f32.mrb[49].mxu0  ;;  %v4374_v57 = vpop.f32.mrb[15].mxu1 }
 0x31a   :  { %v4442_v22 = vadd.f32 %v4441_v61, %v4440_v46  ;;  %v4375_v40 = vadd.f32 %v4374_v57, %v4373_v37  ;;  %v4443_v9 = vpop.f32.mrb[50].mxu0 }
 0x31b   :  { %v4444_v41 = vpop.f32.mrb[51].mxu0 }
 0x31c   :  { %v6369_v15 = vadd.f32 %v4442_v22, %v4372_v48  ;;  %v4445_v24 = vadd.f32 %v4444_v41, %v4443_v9 }
 0x31e   :  { %v6371_v18 = vadd.f32 %v4445_v24, %v4375_v40  ;;  %v4376_v63 = vpop.f32.mrb[16].mxu1 }
 0x31f   :  { %v4377_v60 = vpop.f32.mrb[17].mxu1 }
 0x320   :  { %v4378_v8 = vadd.f32 %v4377_v60, %v4376_v63  ;;  %v4446_v35 = vpop.f32.mrb[52].mxu0  ;;  %v4379_v44 = vpop.f32.mrb[18].mxu1 }
 0x321   :  { %v4447_v5 = vpop.f32.mrb[53].mxu0  ;;  %v4380_v26 = vpop.f32.mrb[19].mxu1 }
 0x322   :  { %v4448_v53 = vadd.f32 %v4447_v5, %v4446_v35  ;;  %v4381_v16 = vadd.f32 %v4380_v26, %v4379_v44  ;;  %v4449_v62 = vpop.f32.mrb[54].mxu0 }
 0x323   :  { %v4450_v1 = vpop.f32.mrb[55].mxu0 }
 0x324   :  { %v6373_v55 = vadd.f32 %v4448_v53, %v4378_v8  ;;  %v4451_v10 = vadd.f32 %v4450_v1, %v4449_v62 }
 0x326   :  { %v6375_v17 = vadd.f32 %v4451_v10, %v4381_v16  ;;  %v4382_v2 = vpop.f32.mrb[20].mxu1 }
 0x327   :  { %v4383_v28 = vpop.f32.mrb[21].mxu1 }
 0x328   :  { %v4384_v33 = vadd.f32 %v4383_v28, %v4382_v2  ;;  %v4452_v45 = vpop.f32.mrb[56].mxu0  ;;  %v4385_v52 = vpop.f32.mrb[22].mxu1 }
 0x329   :  { %v4453_v13 = vpop.f32.mrb[57].mxu0  ;;  %v4386_v32 = vpop.f32.mrb[23].mxu1 }
 0x32a   :  { %v4454_v47 = vadd.f32 %v4453_v13, %v4452_v45  ;;  %v4387_v0 = vadd.f32 %v4386_v32, %v4385_v52  ;;  %v4455_v50 = vpop.f32.mrb[58].mxu0 }
 0x32b   :  { %v4456_v6 = vpop.f32.mrb[59].mxu0 }
 0x32c   :  { %v6377_v30 = vadd.f32 %v4454_v47, %v4384_v33  ;;  %v4457_v19 = vadd.f32 %v4456_v6, %v4455_v50 }
 0x32e   :  { %v6379_v51 = vadd.f32 %v4457_v19, %v4387_v0  ;;  %v4388_v54 = vpop.f32.mrb[24].mxu1 }
 0x32f   :  { %v4389_v42 = vpop.f32.mrb[25].mxu1 }
 0x330   :  { %v4390_v49 = vadd.f32 %v4389_v42, %v4388_v54  ;;  %v4458_v14 = vpop.f32.mrb[60].mxu0  ;;  %v4391_v23 = vpop.f32.mrb[26].mxu1 }
 0x331   :  { %v4459_v3 = vpop.f32.mrb[61].mxu0  ;;  %v4392_v11 = vpop.f32.mrb[27].mxu1 }
 0x332   :  { %v4460_v34 = vadd.f32 %v4459_v3, %v4458_v14  ;;  %v4393_v56 = vadd.f32 %v4392_v11, %v4391_v23  ;;  %v4461_v38 = vpop.f32.mrb[62].mxu0 }
 0x333   :  { %v4462_v20 = vpop.f32.mrb[63].mxu0 }
 0x334   :  { %v6381_v29 = vadd.f32 %v4460_v34, %v4390_v49  ;;  %v4463_v25 = vadd.f32 %v4462_v20, %v4461_v38 }
 0x336   :  { %v6383_v7 = vadd.f32 %v4463_v25, %v4393_v56  ;;  %v4394_v39 = vpop.f32.mrb[28].mxu1 }
 0x337   :  { %v4395_v12 = vpop.f32.mrb[29].mxu1 }
 0x338   :  { %v4396_v58 = vadd.f32 %v4395_v12, %v4394_v39  ;;  %v4464_v48 = vpop.f32.mrb[64].mxu0  ;;  %v4397_v46 = vpop.f32.mrb[30].mxu1 }
 0x339   :  { %v4465_v37 = vpop.f32.mrb[65].mxu0  ;;  %v4398_v61 = vpop.f32.mrb[31].mxu1 }
 0x33a   :  { %v4466_v57 = vadd.f32 %v4465_v37, %v4464_v48  ;;  %v4399_v22 = vadd.f32 %v4398_v61, %v4397_v46  ;;  %v4467_v40 = vpop.f32.mrb[66].mxu0 }
 0x33b   :  { %v4468_v9 = vpop.f32.mrb[67].mxu0 }
 0x33c   :  { %v6385_v41 = vadd.f32 %v4466_v57, %v4396_v58  ;;  %v4469_v24 = vadd.f32 %v4468_v9, %v4467_v40 }
 0x33e   :  { %v6387_v63 = vadd.f32 %v4469_v24, %v4399_v22  ;;  %v4400_v60 = vpop.f32.mrb[32].mxu1 }
 0x33f   :  { %v4401_v8 = vpop.f32.mrb[33].mxu1 }
 0x340   :  { %v4402_v35 = vadd.f32 %v4401_v8, %v4400_v60  ;;  %v4470_v44 = vpop.f32.mrb[68].mxu0  ;;  %v4403_v5 = vpop.f32.mrb[34].mxu1 }
 0x341   :  { %v4471_v26 = vpop.f32.mrb[69].mxu0  ;;  %v4404_v53 = vpop.f32.mrb[35].mxu1 }
 0x342   :  { %v4472_v16 = vadd.f32 %v4471_v26, %v4470_v44  ;;  %v4405_v62 = vadd.f32 %v4404_v53, %v4403_v5  ;;  %v4473_v1 = vpop.f32.mrb[70].mxu0 }
 0x343   :  { %v4474_v10 = vpop.f32.mrb[71].mxu0 }
 0x344   :  { %v6389_v2 = vadd.f32 %v4472_v16, %v4402_v35  ;;  %v4475_v28 = vadd.f32 %v4474_v10, %v4473_v1 }
 0x346   :  { %v6391_v33 = vadd.f32 %v4475_v28, %v4405_v62  ;;  %v4492_v45 = vpop.f32.mrb[36].mxu1 }
 0x347   :  { %v4493_v52 = vpop.f32.mrb[37].mxu1 }
 0x348   :  { %v4494_v13 = vadd.f32 %v4493_v52, %v4492_v45  ;;  %v4562_v32 = vpop.f32.mrb[72].mxu0  ;;  %v4495_v47 = vpop.f32.mrb[38].mxu1 }
 0x349   :  { %v4563_v0 = vpop.f32.mrb[73].mxu0  ;;  %v4496_v50 = vpop.f32.mrb[39].mxu1 }
 0x34a   :  { %v1689_v6 = vadd.f32 %v4494_v13, %v6357_v59  ;;  %v4564_v19 = vadd.f32 %v4563_v0, %v4562_v32  ;;  %v4497_v54 = vadd.f32 %v4496_v50, %v4495_v47  ;;  %v4565_v42 = vpop.f32.mrb[74].mxu0 }
 0x34b   :  { %v4566_v49 = vpop.f32.mrb[75].mxu0 }
 0x34c   :  { %v1692_v14 = vadd.f32 %v4497_v54, %v6359_v36  ;;  %v4567_v23 = vadd.f32 %v4566_v49, %v4565_v42  ;;  %v6395_v3 = vadd.f32 %v4564_v19, %v1689_v6 }
 0x34e   :  { %v4498_v11 = vpop.f32.mrb[40].mxu1  ;;  %v6397_v34 = vadd.f32 %v4567_v23, %v1692_v14 }
 0x34f   :  { %v4499_v56 = vpop.f32.mrb[41].mxu1 }
 0x350   :  { %v4500_v38 = vadd.f32 %v4499_v56, %v4498_v11  ;;  %v4568_v20 = vpop.f32.mrb[76].mxu0  ;;  %v4501_v25 = vpop.f32.mrb[42].mxu1 }
 0x351   :  { %v4569_v39 = vpop.f32.mrb[77].mxu0  ;;  %v4502_v12 = vpop.f32.mrb[43].mxu1 }
 0x352   :  { %v1697_v59 = vadd.f32 %v4500_v38, %v6361_v4  ;;  %v4570_v58 = vadd.f32 %v4569_v39, %v4568_v20  ;;  %v4503_v48 = vadd.f32 %v4502_v12, %v4501_v25  ;;  %v4571_v46 = vpop.f32.mrb[78].mxu0 }
 0x353   :  { %v4572_v37 = vpop.f32.mrb[79].mxu0 }
 0x354   :  { %v1700_v36 = vadd.f32 %v4503_v48, %v6363_v27  ;;  %v4573_v61 = vadd.f32 %v4572_v37, %v4571_v46  ;;  %v6401_v57 = vadd.f32 %v4570_v58, %v1697_v59 }
 0x356   :  { %v4504_v22 = vpop.f32.mrb[44].mxu1  ;;  %v6403_v40 = vadd.f32 %v4573_v61, %v1700_v36 }
 0x357   :  { %v4505_v9 = vpop.f32.mrb[45].mxu1 }
 0x358   :  { %v4506_v24 = vadd.f32 %v4505_v9, %v4504_v22  ;;  %v4574_v60 = vpop.f32.mrb[80].mxu0  ;;  %v4507_v8 = vpop.f32.mrb[46].mxu1 }
 0x359   :  { %v4575_v35 = vpop.f32.mrb[81].mxu0  ;;  %v4508_v44 = vpop.f32.mrb[47].mxu1 }
 0x35a   :  { %v1705_v4 = vadd.f32 %v4506_v24, %v6365_v43  ;;  %v4576_v5 = vadd.f32 %v4575_v35, %v4574_v60  ;;  %v4509_v26 = vadd.f32 %v4508_v44, %v4507_v8  ;;  %v4577_v53 = vpop.f32.mrb[82].mxu0 }
 0x35b   :  { %v4578_v16 = vpop.f32.mrb[83].mxu0 }
 0x35c   :  { %v1708_v27 = vadd.f32 %v4509_v26, %v6367_v21  ;;  %v4579_v62 = vadd.f32 %v4578_v16, %v4577_v53  ;;  %v6407_v1 = vadd.f32 %v4576_v5, %v1705_v4 }
 0x35e   :  { %v4510_v10 = vpop.f32.mrb[48].mxu1  ;;  %v6409_v28 = vadd.f32 %v4579_v62, %v1708_v27 }
 0x35f   :  { %v4511_v45 = vpop.f32.mrb[49].mxu1 }
 0x360   :  { %v4512_v52 = vadd.f32 %v4511_v45, %v4510_v10  ;;  %v4580_v13 = vpop.f32.mrb[84].mxu0  ;;  %v4513_v32 = vpop.f32.mrb[50].mxu1 }
 0x361   :  { %v4581_v47 = vpop.f32.mrb[85].mxu0  ;;  %v4514_v0 = vpop.f32.mrb[51].mxu1 }
 0x362   :  { %v1713_v43 = vadd.f32 %v4512_v52, %v6369_v15  ;;  %v4582_v50 = vadd.f32 %v4581_v47, %v4580_v13  ;;  %v4515_v6 = vadd.f32 %v4514_v0, %v4513_v32  ;;  %v4583_v19 = vpop.f32.mrb[86].mxu0 }
 0x363   :  { %v4584_v54 = vpop.f32.mrb[87].mxu0 }
 0x364   :  { %v1716_v21 = vadd.f32 %v4515_v6, %v6371_v18  ;;  %v4585_v42 = vadd.f32 %v4584_v54, %v4583_v19  ;;  %v6413_v49 = vadd.f32 %v4582_v50, %v1713_v43 }
 0x366   :  { %v4516_v14 = vpop.f32.mrb[52].mxu1  ;;  %v6415_v23 = vadd.f32 %v4585_v42, %v1716_v21 }
 0x367   :  { %v4517_v11 = vpop.f32.mrb[53].mxu1 }
 0x368   :  { %v4518_v56 = vadd.f32 %v4517_v11, %v4516_v14  ;;  %v4586_v38 = vpop.f32.mrb[88].mxu0  ;;  %v4519_v20 = vpop.f32.mrb[54].mxu1 }
 0x369   :  { %v4587_v25 = vpop.f32.mrb[89].mxu0  ;;  %v4520_v39 = vpop.f32.mrb[55].mxu1 }
 0x36a   :  { %v1721_v15 = vadd.f32 %v4518_v56, %v6373_v55  ;;  %v4588_v12 = vadd.f32 %v4587_v25, %v4586_v38  ;;  %v4521_v59 = vadd.f32 %v4520_v39, %v4519_v20  ;;  %v4589_v58 = vpop.f32.mrb[90].mxu0 }
 0x36b   :  { %v4590_v48 = vpop.f32.mrb[91].mxu0 }
 0x36c   :  { %v1724_v18 = vadd.f32 %v4521_v59, %v6375_v17  ;;  %v4591_v46 = vadd.f32 %v4590_v48, %v4589_v58  ;;  %v6419_v37 = vadd.f32 %v4588_v12, %v1721_v15 }
 0x36e   :  { %v4522_v36 = vpop.f32.mrb[56].mxu1  ;;  %v6421_v61 = vadd.f32 %v4591_v46, %v1724_v18 }
 0x36f   :  { %v4523_v22 = vpop.f32.mrb[57].mxu1 }
 0x370   :  { %v4524_v9 = vadd.f32 %v4523_v22, %v4522_v36  ;;  %v4592_v24 = vpop.f32.mrb[92].mxu0  ;;  %v4525_v60 = vpop.f32.mrb[58].mxu1 }
 0x371   :  { %v4593_v8 = vpop.f32.mrb[93].mxu0  ;;  %v4526_v35 = vpop.f32.mrb[59].mxu1 }
 0x372   :  { %v1729_v55 = vadd.f32 %v4524_v9, %v6377_v30  ;;  %v4594_v44 = vadd.f32 %v4593_v8, %v4592_v24  ;;  %v4527_v4 = vadd.f32 %v4526_v35, %v4525_v60  ;;  %v4595_v5 = vpop.f32.mrb[94].mxu0 }
 0x373   :  { %v4596_v26 = vpop.f32.mrb[95].mxu0 }
 0x374   :  { %v1732_v17 = vadd.f32 %v4527_v4, %v6379_v51  ;;  %v4597_v53 = vadd.f32 %v4596_v26, %v4595_v5  ;;  %v6425_v16 = vadd.f32 %v4594_v44, %v1729_v55 }
 0x376   :  { %v4528_v27 = vpop.f32.mrb[60].mxu1  ;;  %v6427_v62 = vadd.f32 %v4597_v53, %v1732_v17  ;;  %v6445_v17 = vpop.permute.xlu1 %1971 }
 0x377   :  { %v4529_v10 = vpop.f32.mrb[61].mxu1  ;;  %7828 = vst [vmem:[#allocation17_spill] sm:$0xff] %v6445_v17 }
 0x378   :  { %v4530_v45 = vadd.f32 %v4529_v10, %v4528_v27  ;;  %v4598_v52 = vpop.f32.mrb[96].mxu0  ;;  %v4531_v13 = vpop.f32.mrb[62].mxu1 }
 0x379   :  { %v4599_v32 = vpop.f32.mrb[97].mxu0  ;;  %v4532_v47 = vpop.f32.mrb[63].mxu1 }
 0x37a   :  { %v1737_v30 = vadd.f32 %v4530_v45, %v6381_v29  ;;  %v4600_v0 = vadd.f32 %v4599_v32, %v4598_v52  ;;  %v4533_v43 = vadd.f32 %v4532_v47, %v4531_v13  ;;  %v4601_v50 = vpop.f32.mrb[98].mxu0  ;;  %v6450_v13 = vpop.permute.xlu0 %1976 }
 0x37b   :  { %v4602_v6 = vpop.f32.mrb[99].mxu0  ;;  %7829 = vst [vmem:[#allocation14_spill] sm:$0xff] %v6450_v13 }
 0x37c   :  { %v1740_v51 = vadd.f32 %v4533_v43, %v6383_v7  ;;  %v4603_v19 = vadd.f32 %v4602_v6, %v4601_v50  ;;  %v6431_v54 = vadd.f32 %v4600_v0, %v1737_v30  ;;  %v6459_v30 = vpop.permute.xlu1 %1981 }
 0x37d   :  { %7830 = vst [vmem:[#allocation13_spill] sm:$0xff] %v6459_v30 }
 0x37e   :  { %v4534_v21 = vpop.f32.mrb[64].mxu1  ;;  %v6433_v42 = vadd.f32 %v4603_v19, %v1740_v51 }
 0x37f   :  { %v4535_v14 = vpop.f32.mrb[65].mxu1 }
 0x380   :  { %v4536_v11 = vadd.f32 %v4535_v14, %v4534_v21  ;;  %v4604_v56 = vpop.f32.mrb[100].mxu0  ;;  %v4537_v38 = vpop.f32.mrb[66].mxu1 }
 0x381   :  { %v4605_v20 = vpop.f32.mrb[101].mxu0  ;;  %v4538_v25 = vpop.f32.mrb[67].mxu1 }
 0x382   :  { %v1745_v29 = vadd.f32 %v4536_v11, %v6385_v41  ;;  %v4606_v39 = vadd.f32 %v4605_v20, %v4604_v56  ;;  %v4539_v15 = vadd.f32 %v4538_v25, %v4537_v38  ;;  %v4607_v12 = vpop.f32.mrb[102].mxu0  ;;  %v6468_v21 = vpop.permute.xlu1 %1986  ;;  %v5250_v20 = vld [vmem:[#allocation5 + $0x40] sm:$0xff]  }
 0x383   :  { %v4608_v59 = vpop.f32.mrb[103].mxu0  ;;  %7831 = vst [vmem:[#allocation12_spill] sm:$0xff] %v6468_v21  ;;  %4633 = vmatprep.subr.bf16.mxu0 %v5250_v20 }
 0x384   :  { %v1748_v7 = vadd.f32 %v4539_v15, %v6387_v63  ;;  %v4609_v58 = vadd.f32 %v4608_v59, %v4607_v12  ;;  %v6437_v48 = vadd.f32 %v4606_v39, %v1745_v29  ;;  %v5251_v29 = vld [vmem:[#allocation5] sm:$0xff]   ;;  %v6476_v15 = vpop.permute.xlu0 %1991 }
 0x385   :  { %v5260_v39 = vld [vmem:[#allocation5 + $0xc0] sm:$0xff]   ;;  %7832 = vst [vmem:[#allocation21_spill] sm:$0xff] %v6476_v15  ;;  %4634 = vmatpush3.bf16.msra.mxu0 %v5251_v29 }
 0x386   :  { %v4540_v18 = vpop.f32.mrb[68].mxu1  ;;  %v6439_v46 = vadd.f32 %v4609_v58, %v1748_v7  ;;  %v5261_v12 = vld [vmem:[#allocation5 + $0x80] sm:$0xff]   ;;  %4703 = vmatprep.subr.bf16.mxu1 %v5260_v39 }
 0x387   :  { %v4541_v36 = vpop.f32.mrb[69].mxu1  ;;  %4704 = vmatpush3.bf16.msra.mxu1 %v5261_v12 }
 0x388   :  { %v4542_v22 = vadd.f32 %v4541_v36, %v4540_v18  ;;  %v4610_v9 = vpop.f32.mrb[104].mxu0  ;;  %v4543_v24 = vpop.f32.mrb[70].mxu1  ;;  %v5252_v36 = vld [vmem:[#allocation5 + $0x48] sm:$0xff]  }
 0x389   :  { %v4611_v60 = vpop.f32.mrb[105].mxu0  ;;  %v4544_v8 = vpop.f32.mrb[71].mxu1  ;;  %4635 = vmatprep.subr.bf16.mxu0 %v5252_v36  ;;  %v5263_v36 = vld [vmem:[#allocation5 + $0x28] sm:$0xff]  }
 0x38a   :  { %v1753_v41 = vadd.f32 %v4542_v22, %v6389_v2  ;;  %v4612_v35 = vadd.f32 %v4611_v60, %v4610_v9  ;;  %v4545_v55 = vadd.f32 %v4544_v8, %v4543_v24  ;;  %v4613_v44 = vpop.f32.mrb[106].mxu0  ;;  %v6482_v18 = vpop.permute.xlu1 %1996  ;;  %v5253_v9 = vld [vmem:[#allocation5 + $0x8] sm:$0xff]  }
 0x38b   :  { %v4614_v4 = vpop.f32.mrb[107].mxu0  ;;  %7833 = vst [vmem:[#allocation18_spill] sm:$0xff] %v6482_v18  ;;  %v5264_v24 = vld [vmem:[#allocation5 + $0xc8] sm:$0xff]   ;;  %4636 = vmatpush3.bf16.msra.mxu0 %v5253_v9 }
 0x38c   :  { %v1756_v63 = vadd.f32 %v4545_v55, %v6391_v33  ;;  %v4615_v5 = vadd.f32 %v4614_v4, %v4613_v44  ;;  %v6443_v26 = vadd.f32 %v4612_v35, %v1753_v41  ;;  %v5265_v60 = vld [vmem:[#allocation5 + $0x88] sm:$0xff]   ;;  %4705 = vmatprep.subr.bf16.mxu1 %v5264_v24  ;;  %v5254_v41 = vld [vmem:[#allocation5 + $0x50] sm:$0xff]  }
 0x38d   :  { %4706 = vmatpush3.bf16.msra.mxu1 %v5265_v60  ;;  %v5255_v44 = vld [vmem:[#allocation5 + $0x10] sm:$0xff]   ;;  %4637 = vmatprep.subr.bf16.mxu0 %v5254_v41  ;;  %v5276_v9 = vld [vmem:[#allocation5 + $0xa8] sm:$0xff]  }
 0x38e   :  { %v1898_v53 = vpop.f32.mrb[72].mxu1  ;;  %v6447_v27 = vadd.f32 %v4615_v5, %v1756_v63  ;;  %v5266_v4 = vld [vmem:[#allocation5 + $0xd0] sm:$0xff]   ;;  %v6490_v63 = vpop.permute.xlu0 %2001 }
 0x38f   :  { %v1899_v10 = vadd.f32 %v1898_v53, %v6395_v3  ;;  %v5006_v45 = vpop.f32.mrb[73].mxu1  ;;  %7834 = vst [vmem:[#allocation16_spill] sm:$0xff] %v6490_v63  ;;  %v5267_v53 = vld [vmem:[#allocation5 + $0x90] sm:$0xff]   ;;  %4638 = vmatpush3.bf16.msra.mxu0 %v5255_v44  ;;  %4707 = vmatprep.subr.bf16.mxu1 %v5266_v4 }
 0x390   :  { %v1901_v52 = vpop.f32.mrb[74].mxu1  ;;  %v5268_v60 = vld [vmem:[#allocation5 + $0x70] sm:$0xff]  }
 0x391   :  { %v1902_v2 = vadd.f32 %v1901_v52, %v6397_v34  ;;  %v5007_v32 = vpop.f32.mrb[75].mxu1  ;;  %v6454_v47 = vmul.f32 %v6445_v17, %v1899_v10  ;;  %4708 = vmatpush3.bf16.msra.mxu1 %v5267_v53  ;;  %v5270_v41 = vld [vmem:[#allocation5 + $0x30] sm:$0xff]  }
 0x392   :  { %v5256_v32 = vld [vmem:[#allocation5 + $0x58] sm:$0xff]   ;;  %v6504_v20 = vpop.permute.xlu0 %2011  ;;  %v5278_v4 = vld [vmem:[#allocation5 + $0xf0] sm:$0xff]  }
 0x393   :  { %v6457_v33 = vmul.f32 %v6450_v13, %v1902_v2  ;;  %v6496_v2 = vpop.permute.xlu1 %2006  ;;  %4639 = vmatprep.subr.bf16.mxu0 %v5256_v32  ;;  %7836 = vst [vmem:[#allocation25_spill] sm:$0xff] %v6504_v20  ;;  %v5277_v32 = vld [vmem:[#allocation5 + $0x38] sm:$0xff]  }
 0x394   :  { %7835 = vst [vmem:[#allocation15_spill] sm:$0xff] %v6496_v2 }
 0x395   :  { %v2077_v0 = vadd.f32 %v6457_v33, %v6454_v47 }
 0x396   :  { %v1906_v43 = vpop.f32.mrb[76].mxu1 }
 0x397   :  { %v1907_v3 = vadd.f32 %v1906_v43, %v6401_v57  ;;  %v5010_v50 = vpop.f32.mrb[77].mxu1  ;;  %v5257_v43 = vld [vmem:[#allocation5 + $0x18] sm:$0xff]   ;;  %v6510_v12 = vpop.permute.xlu1 %2016 }
 0x398   :  { %v1909_v6 = vpop.f32.mrb[78].mxu1  ;;  %v5271_v50 = vld [vmem:[#allocation5 + $0x98] sm:$0xff]   ;;  %4640 = vmatpush3.bf16.msra.mxu0 %v5257_v43  ;;  %7837 = vst [vmem:[#allocation22_spill] sm:$0xff] %v6510_v12 }
 0x399   :  { %v6465_v51 = vmul.f32 %v6459_v30, %v1907_v3  ;;  %v1910_v34 = vadd.f32 %v1909_v6, %v6403_v40  ;;  %v5011_v19 = vpop.f32.mrb[79].mxu1  ;;  %v5269_v3 = vld [vmem:[#allocation5 + $0xd8] sm:$0xff]  }
 0x39a   :  { %4709 = vmatprep.subr.bf16.mxu1 %v5269_v3  ;;  %v5280_v3 = vld [vmem:[#allocation5 + $0xf8] sm:$0xff]  }
 0x39b   :  { %v2078_v14 = vadd.f32 %v2077_v0, %v6465_v51  ;;  %v6472_v11 = vmul.f32 %v6468_v21, %v1910_v34  ;;  %v5258_v34 = vld [vmem:[#allocation5 + $0x60] sm:$0xff]   ;;  %4710 = vmatpush3.bf16.msra.mxu1 %v5271_v50  ;;  %v5281_v50 = vld [vmem:[#allocation5 + $0xb8] sm:$0xff]  }
 0x39c   :  { %4641 = vmatprep.subr.bf16.mxu0 %v5258_v34 }
 0x39d   :  { %v2079_v56 = vadd.f32 %v2078_v14, %v6472_v11 }
 0x39e   :  { %v1914_v38 = vpop.f32.mrb[80].mxu1 }
 0x39f   :  { %v1915_v57 = vadd.f32 %v1914_v38, %v6407_v1  ;;  %v5014_v25 = vpop.f32.mrb[81].mxu1  ;;  %v5272_v38 = vld [vmem:[#allocation5 + $0xe0] sm:$0xff]  }
 0x3a0   :  { %v1917_v40 = vpop.f32.mrb[82].mxu1  ;;  %v5273_v25 = vld [vmem:[#allocation5 + $0xa0] sm:$0xff]   ;;  %4711 = vmatprep.subr.bf16.mxu1 %v5272_v38 }
 0x3a1   :  { %v6479_v59 = vmul.f32 %v6476_v15, %v1915_v57  ;;  %v1918_v7 = vadd.f32 %v1917_v40, %v6409_v28  ;;  %v5015_v58 = vpop.f32.mrb[83].mxu1  ;;  %4712 = vmatpush3.bf16.msra.mxu1 %v5273_v25 }
 0x3a3   :  { %v2080_v1 = vadd.f32 %v2079_v56, %v6479_v59  ;;  %v6486_v22 = vmul.f32 %v6482_v18, %v1918_v7  ;;  %v5259_v56 = vld [vmem:[#allocation5 + $0x20] sm:$0xff]   ;;  %v5262_v7 = vld [vmem:[#allocation5 + $0x68] sm:$0xff]  }
 0x3a4   :  { %4642 = vmatpush3.bf16.msra.mxu0 %v5259_v56 }
 0x3a5   :  { %v2081_v8 = vadd.f32 %v2080_v1, %v6486_v22  ;;  %v5274_v1 = vld [vmem:[#allocation5 + $0xe8] sm:$0xff]   ;;  %4643 = vmatprep.subr.bf16.mxu0 %v5262_v7 }
 0x3a6   :  { %v1922_v28 = vpop.f32.mrb[84].mxu1  ;;  %4713 = vmatprep.subr.bf16.mxu1 %v5274_v1 }
 0x3a7   :  { %v1923_v35 = vadd.f32 %v1922_v28, %v6413_v49  ;;  %v5018_v55 = vpop.f32.mrb[85].mxu1  ;;  %4714 = vmatpush3.bf16.msra.mxu1 %v5276_v9 }
 0x3a8   :  { %v1925_v5 = vpop.f32.mrb[86].mxu1  ;;  %4644 = vmatpush3.bf16.msra.mxu0 %v5263_v36  ;;  %v6518_v55 = vpop.permute.xlu0 %2021  ;;  %4715 = vmatprep.subr.bf16.mxu1 %v5278_v4 }
 0x3a9   :  { %v6493_v10 = vmul.f32 %v6490_v63, %v1923_v35  ;;  %v1926_v45 = vadd.f32 %v1925_v5, %v6415_v23  ;;  %v5019_v52 = vpop.f32.mrb[87].mxu1  ;;  %v5275_v35 = vld [vmem:[#allocation5 + $0x78] sm:$0xff]   ;;  %7838 = vst [vmem:[#allocation20_spill] sm:$0xff] %v6518_v55  ;;  %4645 = vmatprep.subr.bf16.mxu0 %v5268_v60  ;;  %v5279_v5 = vld [vmem:[#allocation5 + $0xb0] sm:$0xff]  }
 0x3ab   :  { %v2082_v49 = vadd.f32 %v2081_v8, %v6493_v10  ;;  %v6500_v0 = vmul.f32 %v6496_v2, %v1926_v45  ;;  %4716 = vmatpush3.bf16.msra.mxu1 %v5279_v5 }
 0x3ac   :  { %4646 = vmatpush3.bf16.msra.mxu0 %v5270_v41  ;;  %4717 = vmatprep.subr.bf16.mxu1 %v5280_v3 }
 0x3ad   :  { %v2083_v6 = vadd.f32 %v2082_v49, %v6500_v0  ;;  %v6524_v49 = vpop.permute.xlu1 %2026  ;;  %4647 = vmatprep.subr.bf16.mxu0 %v5275_v35 }
 0x3ae   :  { %v1930_v23 = vpop.f32.mrb[88].mxu1  ;;  %7839 = vst [vmem:[#allocation19_spill] sm:$0xff] %v6524_v49 }
 0x3af   :  { %v1931_v19 = vadd.f32 %v1930_v23, %v6419_v37  ;;  %v5022_v14 = vpop.f32.mrb[89].mxu1  ;;  %4718 = vmatpush3.bf16.msra.mxu1 %v5281_v50 }
 0x3b0   :  { %v1933_v57 = vpop.f32.mrb[90].mxu1  ;;  %4648 = vmatpush3.bf16.msra.mxu0 %v5277_v32  ;;  %v6532_v14 = vpop.permute.xlu0 %2031 }
 0x3b1   :  { %v6507_v29 = vmul.f32 %v6504_v20, %v1931_v19  ;;  %v1934_v39 = vadd.f32 %v1933_v57, %v6421_v61  ;;  %v5023_v40 = vpop.f32.mrb[91].mxu1  ;;  %7840 = vst [vmem:[#allocation29_spill] sm:$0xff] %v6532_v14 }
 0x3b3   :  { %v2084_v37 = vadd.f32 %v2083_v6, %v6507_v29  ;;  %v6514_v58 = vmul.f32 %v6510_v12, %v1934_v39  ;;  %v5282_v6 = vld [vmem:[#allocation5 + $0x140] sm:$0xff]   ;;  %v6538_v39 = vpop.permute.xlu1 %2036 }
 0x3b4   :  { %4773 = vmatprep.subr.bf16.mxu0 %v5282_v6  ;;  %7841 = vst [vmem:[#allocation26_spill] sm:$0xff] %v6538_v39  ;;  %v6546_v9 = vpop.permute.xlu0 %2041 }
 0x3b5   :  { %v2085_v24 = vadd.f32 %v2084_v37, %v6514_v58  ;;  %7842 = vst [vmem:[#allocation24_spill] sm:$0xff] %v6546_v9 }
 0x3b6   :  { %v1938_v61 = vpop.f32.mrb[92].mxu1 }
 0x3b7   :  { %v1939_v8 = vadd.f32 %v1938_v61, %v6425_v16  ;;  %v5026_v28 = vpop.f32.mrb[93].mxu1 }
 0x3b8   :  { %v1941_v44 = vpop.f32.mrb[94].mxu1  ;;  %v6560_v5 = vpop.permute.xlu0 %2051 }
 0x3b9   :  { %v6521_v53 = vmul.f32 %v6518_v55, %v1939_v8  ;;  %v1942_v45 = vadd.f32 %v1941_v44, %v6427_v62  ;;  %v5027_v52 = vpop.f32.mrb[95].mxu1  ;;  %v6552_v8 = vpop.permute.xlu1 %2046  ;;  %7844 = vst [vmem:[#allocation33_spill] sm:$0xff] %v6560_v5 }
 0x3ba   :  { %7843 = vst [vmem:[#allocation23_spill] sm:$0xff] %v6552_v8 }
 0x3bb   :  { %v2086_v16 = vadd.f32 %v2085_v24, %v6521_v53  ;;  %v6528_v43 = vmul.f32 %v6524_v49, %v1942_v45 }
 0x3bd   :  { %v2087_v23 = vadd.f32 %v2086_v16, %v6528_v43  ;;  %v6566_v16 = vpop.permute.xlu1 %2056 }
 0x3be   :  { %v1946_v62 = vpop.f32.mrb[96].mxu1  ;;  %7845 = vst [vmem:[#allocation30_spill] sm:$0xff] %v6566_v16 }
 0x3bf   :  { %v1947_v34 = vadd.f32 %v1946_v62, %v6431_v54  ;;  %v5030_v19 = vpop.f32.mrb[97].mxu1 }
 0x3c0   :  { %v1949_v56 = vpop.f32.mrb[98].mxu1 }
 0x3c1   :  { %v6535_v38 = vmul.f32 %v6532_v14, %v1947_v34  ;;  %v1950_v57 = vadd.f32 %v1949_v56, %v6433_v42  ;;  %v5031_v25 = vpop.f32.mrb[99].mxu1 }
 0x3c3   :  { %v2088_v40 = vadd.f32 %v2087_v23, %v6535_v38  ;;  %v6542_v7 = vmul.f32 %v6538_v39, %v1950_v57 }
 0x3c5   :  { %v2089_v54 = vadd.f32 %v2088_v40, %v6542_v7 }
 0x3c6   :  { %v1954_v37 = vpop.f32.mrb[100].mxu1 }
 0x3c7   :  { %v1955_v36 = vadd.f32 %v1954_v37, %v6437_v48  ;;  %v5034_v1 = vpop.f32.mrb[101].mxu1 }
 0x3c8   :  { %v1957_v24 = vpop.f32.mrb[102].mxu1 }
 0x3c9   :  { %v6549_v61 = vmul.f32 %v6546_v9, %v1955_v36  ;;  %v1958_v42 = vadd.f32 %v1957_v24, %v6439_v46  ;;  %v5035_v60 = vpop.f32.mrb[103].mxu1  ;;  %v5292_v24 = vld [vmem:[#allocation5 + $0x1c0] sm:$0xff]  }
 0x3ca   :  { %4843 = vmatprep.subr.bf16.mxu1 %v5292_v24 }
 0x3cb   :  { %v2090_v28 = vadd.f32 %v2089_v54, %v6549_v61  ;;  %v6556_v41 = vmul.f32 %v6552_v8, %v1958_v42 }
 0x3cd   :  { %v2091_v35 = vadd.f32 %v2090_v28, %v6556_v41 }
 0x3ce   :  { %v1962_v48 = vpop.f32.mrb[104].mxu1 }
 0x3cf   :  { %v1963_v44 = vadd.f32 %v1962_v48, %v6443_v26  ;;  %v5038_v4 = vpop.f32.mrb[105].mxu1 }
 0x3d0   :  { %v1965_v45 = vpop.f32.mrb[106].mxu1 }
 0x3d1   :  { %v6563_v52 = vmul.f32 %v6560_v5, %v1963_v44  ;;  %v1966_v46 = vadd.f32 %v1965_v45, %v6447_v27  ;;  %v5039_v32 = vpop.f32.mrb[107].mxu1 }
 0x3d3   :  { %v2092_v3 = vadd.f32 %v2091_v35, %v6563_v52  ;;  %v6570_v50 = vmul.f32 %v6566_v16, %v1966_v46 }
 0x3d5   :  { %v2093_v6 = vadd.f32 %v2092_v3, %v6570_v50 }
 0x3d7   :  { %v2094_v26 = vrot.slane %v2093_v6, 4 }
 0x3d9   :  { %v2095_v23 = vadd.f32 %v2094_v26, %v2093_v6 }
 0x3db   :  { %v2096_v62 = vrot.slane %v2095_v23, 2 }
 0x3dd   :  { %v2097_v34 = vadd.f32 %v2096_v62, %v2095_v23 }
 0x3df   :  { %v2098_v19 = vrot.slane %v2097_v34, 1 }
 0x3e1   :  { %v2099_v56 = vadd.f32 %v2098_v19, %v2097_v34 }
 0x3e3   :  { %v6573_v57 = vmul.f32 0.010204081, %v2099_v56 }
 0x3e5   :  { %v2101_v27 = vsub.f32 %v6454_v47, %v6573_v57  ;;  %v2102_v25 = vsub.f32 %v6457_v33, %v6573_v57  ;;  %v2103_v40 = vsub.f32 %v6465_v51, %v6573_v57  ;;  %v2104_v54 = vsub.f32 %v6472_v11, %v6573_v57 }
 0x3e6   :  { %v2105_v37 = vsub.f32 %v6479_v59, %v6573_v57  ;;  %v2106_v36 = vsub.f32 %v6486_v22, %v6573_v57  ;;  %v2107_v1 = vsub.f32 %v6493_v10, %v6573_v57  ;;  %v2108_v47 = vsub.f32 %v6500_v0, %v6573_v57 }
 0x3e7   :  { %v2109_v33 = vsub.f32 %v6507_v29, %v6573_v57  ;;  %v2110_v51 = vsub.f32 %v6514_v58, %v6573_v57  ;;  %v2111_v11 = vsub.f32 %v6521_v53, %v6573_v57  ;;  %v2112_v59 = vsub.f32 %v6528_v43, %v6573_v57 }
 0x3e8   :  { %v2113_v22 = vsub.f32 %v6535_v38, %v6573_v57  ;;  %v2114_v10 = vsub.f32 %v6542_v7, %v6573_v57  ;;  %v2115_v0 = vsub.f32 %v6549_v61, %v6573_v57  ;;  %v2116_v29 = vsub.f32 %v6556_v41, %v6573_v57 }
 0x3e9   :  { %v2117_v58 = vsub.f32 %v6563_v52, %v6573_v57  ;;  %v2118_v53 = vsub.f32 %v6570_v50, %v6573_v57  ;;  %v6612_v43 = vmul.f32 %v2101_v27, %v6445_v17  ;;  %v6615_v38 = vmul.f32 %v2102_v25, %v6450_v13 }
 0x3ea   :  { %v6618_v7 = vmul.f32 %v2103_v40, %v6459_v30  ;;  %v6625_v60 = vmul.f32 %v2104_v54, %v6468_v21  ;;  %v6628_v28 = vmul.f32 %v2105_v37, %v6476_v15  ;;  %v6633_v48 = vmul.f32 %v2106_v36, %v6482_v18 }
 0x3eb   :  { %v2137_v61 = vmul.f32 %v6612_v43, %v6612_v43  ;;  %v2138_v42 = vmul.f32 %v6615_v38, %v6615_v38  ;;  %v6638_v45 = vmul.f32 %v2107_v1, %v6490_v63  ;;  %v6643_v32 = vmul.f32 %v2108_v47, %v6496_v2 }
 0x3ec   :  { %v2139_v41 = vmul.f32 %v6618_v7, %v6618_v7  ;;  %v2140_v44 = vmul.f32 %v6625_v60, %v6625_v60  ;;  %v2141_v52 = vmul.f32 %v6628_v28, %v6628_v28  ;;  %v2142_v3 = vmul.f32 %v6633_v48, %v6633_v48 }
 0x3ed   :  { %v2155_v35 = vadd.f32 %v2138_v42, %v2137_v61  ;;  %v6648_v6 = vmul.f32 %v2109_v33, %v6504_v20  ;;  %v2143_v26 = vmul.f32 %v6638_v45, %v6638_v45  ;;  %v6653_v62 = vmul.f32 %v2110_v51, %v6510_v12 }
 0x3ee   :  { %v2144_v34 = vmul.f32 %v6643_v32, %v6643_v32  ;;  %v6658_v56 = vmul.f32 %v2111_v11, %v6518_v55  ;;  %v6663_v25 = vmul.f32 %v2112_v59, %v6524_v49  ;;  %v6668_v37 = vmul.f32 %v2113_v22, %v6532_v14 }
 0x3ef   :  { %v2156_v4 = vadd.f32 %v2155_v35, %v2139_v41  ;;  %v2145_v57 = vmul.f32 %v6648_v6, %v6648_v6  ;;  %v2146_v40 = vmul.f32 %v6653_v62, %v6653_v62  ;;  %v6673_v47 = vmul.f32 %v2114_v10, %v6538_v39 }
 0x3f0   :  { %v2147_v36 = vmul.f32 %v6658_v56, %v6658_v56  ;;  %v2148_v33 = vmul.f32 %v6663_v25, %v6663_v25  ;;  %v6678_v11 = vmul.f32 %v2115_v0, %v6546_v9  ;;  %v2149_v59 = vmul.f32 %v6668_v37, %v6668_v37 }
 0x3f1   :  { %v2157_v46 = vadd.f32 %v2156_v4, %v2140_v44  ;;  %v2134_v22 = vmul.f32 %v2116_v29, %v6552_v8  ;;  %v2150_v61 = vmul.f32 %v6673_v47, %v6673_v47  ;;  %v2135_v10 = vmul.f32 %v2117_v58, %v6560_v5 }
 0x3f2   :  { %v2151_v41 = vmul.f32 %v6678_v11, %v6678_v11  ;;  %v2136_v44 = vmul.f32 %v2118_v53, %v6566_v16  ;;  %v6694_v53 = vld [vmem:[%s7651_s4] ss:$0 sm:$0xff] }
 0x3f3   :  { %v2158_v50 = vadd.f32 %v2157_v46, %v2141_v52  ;;  %v2152_v0 = vmul.f32 %v2134_v22, %v2134_v22  ;;  %v2153_v52 = vmul.f32 %v2135_v10, %v2135_v10 }
 0x3f5   :  { %v2159_v23 = vadd.f32 %v2158_v50, %v2142_v3  ;;  %v2154_v3 = vmul.f32 %v2136_v44, %v2136_v44 }
 0x3f7   :  { %v2160_v19 = vadd.f32 %v2159_v23, %v2143_v26 }
 0x3f9   :  { %v2161_v27 = vadd.f32 %v2160_v19, %v2144_v34 }
 0x3fb   :  { %v2162_v54 = vadd.f32 %v2161_v27, %v2145_v57 }
 0x3fd   :  { %v2163_v1 = vadd.f32 %v2162_v54, %v2146_v40 }
 0x3ff   :  { %v2164_v51 = vadd.f32 %v2163_v1, %v2147_v36 }
 0x401   :  { %v2165_v24 = vadd.f32 %v2164_v51, %v2148_v33 }
 0x403   :  { %v2166_v42 = vadd.f32 %v2165_v24, %v2149_v59  ;;  %v6706_v59 = vld [vmem:[%s7652_s5] ss:$0 sm:$0xff] }
 0x405   :  { %v2167_v35 = vadd.f32 %v2166_v42, %v2150_v61 }
 0x407   :  { %v2168_v4 = vadd.f32 %v2167_v35, %v2151_v41 }
 0x409   :  { %v2169_v46 = vadd.f32 %v2168_v4, %v2152_v0 }
 0x40b   :  { %v2170_v50 = vadd.f32 %v2169_v46, %v2153_v52 }
 0x40d   :  { %v2171_v26 = vadd.f32 %v2170_v50, %v2154_v3 }
 0x40f   :  { %v2172_v29 = vrot.slane %v2171_v26, 4 }
 0x411   :  { %v2173_v23 = vadd.f32 %v2172_v29, %v2171_v26 }
 0x413   :  { %v2174_v34 = vrot.slane %v2173_v23, 2 }
 0x415   :  { %v2175_v19 = vadd.f32 %v2174_v34, %v2173_v23 }
 0x417   :  { %v2176_v57 = vrot.slane %v2175_v19, 1 }
 0x419   :  { %v2177_v27 = vadd.f32 %v2176_v57, %v2175_v19 }
 0x41b   :  { %v2178_v58 = vmul.f32 0.010204081, %v2177_v27 }
 0x41d   :  { %v2179_v40 = vadd.f32 1e-05, %v2178_v58 }
 0x41f   :  { %5338 = vrsqrt.f32 %v2179_v40 }
 0x429   :  { %v6689_v54 = vpop.eup %5338 }
 0x42a   :  { %v6697_v36 = vmul.f32 %v6689_v54, %v2134_v22  ;;  %v2197_v1 = vmul.f32 %v6689_v54, %v2135_v10  ;;  %v2198_v33 = vmul.f32 %v6689_v54, %v2136_v44  ;;  %v2181_v51 = vmul.f32 %v6689_v54, %v6612_v43 }
 0x42b   :  { %v2182_v24 = vmul.f32 %v6689_v54, %v6615_v38  ;;  %v2183_v61 = vmul.f32 %v6689_v54, %v6618_v7  ;;  %v2184_v22 = vmul.f32 %v6689_v54, %v6625_v60  ;;  %v2185_v42 = vmul.f32 %v6689_v54, %v6628_v28 }
 0x42c   :  { %v2222_v10 = vmul.f32 %v6694_v53, %v2197_v1  ;;  %v2223_v43 = vmul.f32 %v6694_v53, %v2198_v33  ;;  %v2206_v41 = vmul.f32 %v6694_v53, %v2181_v51  ;;  %v2186_v35 = vmul.f32 %v6689_v54, %v6633_v48 }
 0x42d   :  { %v2207_v38 = vmul.f32 %v6694_v53, %v2182_v24  ;;  %v2208_v44 = vmul.f32 %v6694_v53, %v2183_v61  ;;  %v2209_v7 = vmul.f32 %v6694_v53, %v2184_v22  ;;  %v2210_v60 = vmul.f32 %v6694_v53, %v2185_v42 }
 0x42e   :  { %v2247_v0 = vadd.f32 %v6706_v59, %v2222_v10  ;;  %v2248_v28 = vadd.f32 %v6706_v59, %v2223_v43  ;;  %v2231_v4 = vadd.f32 %v6706_v59, %v2206_v41  ;;  %v2211_v52 = vmul.f32 %v6694_v53, %v2186_v35 }
 0x42f   :  { %v2232_v46 = vadd.f32 %v6706_v59, %v2207_v38  ;;  %v2233_v48 = vadd.f32 %v6706_v59, %v2208_v44  ;;  %v2234_v3 = vadd.f32 %v6706_v59, %v2209_v7  ;;  %v2235_v50 = vadd.f32 %v6706_v59, %v2210_v60 }
 0x430   :  { %v2265_v26 = vmax.f32 %v2247_v0, 0.0  ;;  %v2266_v29 = vmax.f32 %v2248_v28, 0.0  ;;  %v2249_v23 = vmax.f32 %v2231_v4, 0.0  ;;  %v2236_v34 = vadd.f32 %v6706_v59, %v2211_v52  ;;  %v5283_v4 = vld [vmem:[#allocation5 + $0x100] sm:$0xff]  }
 0x431   :  { %v2250_v19 = vmax.f32 %v2232_v46, 0.0  ;;  %v2251_v57 = vmax.f32 %v2233_v48, 0.0  ;;  %v2252_v27 = vmax.f32 %v2234_v3, 0.0  ;;  %v2253_v58 = vmax.f32 %v2235_v50, 0.0 }
 0x432   :  { %v6735_v40 = vmul.f32 %v2265_v26, %v6560_v5  ;;  %v6738_v1 = vmul.f32 %v2249_v23, %v6445_v17  ;;  %v6741_v33 = vmul.f32 %v2266_v29, %v6566_v16  ;;  %v2254_v51 = vmax.f32 %v2236_v34, 0.0 }
 0x433   :  { %v6744_v24 = vmul.f32 %v2250_v19, %v6450_v13  ;;  %v6747_v61 = vmul.f32 %v2251_v57, %v6459_v30  ;;  %v6750_v22 = vmul.f32 %v2252_v27, %v6468_v21  ;;  %v6753_v42 = vmul.f32 %v2253_v58, %v6476_v15  ;;  %v5284_v19 = vld [vmem:[#allocation5 + $0x148] sm:$0xff]   ;;  %v5287_v30 = vld [vmem:[#allocation5 + $0x110] sm:$0xff]   ;;  %v5289_v13 = vld [vmem:[#allocation5 + $0x118] sm:$0xff]  }
 0x434   :  { %7846 = vst [vmem:[#allocation28_spill] sm:$0xff] %v6735_v40  ;;  %v6757_v10 = vpack.c.bf16 %v6738_v1, %v6741_v33  ;;  %v7694_v43 = vrot.slane %v6735_v40, 7  ;;  %v2288_v41 = vrot.slane %v6741_v33, 7  ;;  %v2308_v35 = vrot.slane %v6738_v1, 7  ;;  %v5296_v15 = vld [vmem:[#allocation5 + $0x1c8] sm:$0xff]  }
 0x435   :  { %v2309_v38 = vrot.slane %v6744_v24, 7  ;;  %v6765_v44 = vpack.c.bf16 %v6747_v61, %v6744_v24  ;;  %v7695_v7 = vrot.slane %v6741_v33, 1  ;;  %v2378_v60 = vrot.slane %v6738_v1, 1 }
 0x436   :  { %7847 = vst [vmem:[#allocation27_spill] sm:$0xff] %v6757_v10  ;;  %3075 = vmatprep.mubr.bf16.mxu0 %v6757_v10  ;;  %v6773_v0 = vsel %vm686_vm15, %v7694_v43, %v2288_v41  ;;  %v2357_v28 = vsel %vm686_vm15, %v2288_v41, %v2308_v35  ;;  %v2379_v52 = vrot.slane %v6744_v24, 1  ;;  %v2311_v46 = vrot.slane %v6747_v61, 7  ;;  %v5285_v43 = vld [vmem:[#allocation5 + $0x108] sm:$0xff]  }
 0x437   :  { %v6779_v48 = vpack.c.bf16 %v2357_v28, %v6773_v0  ;;  %v2310_v3 = vsel %vm686_vm15, %v2308_v35, %v2309_v38  ;;  %v6785_v50 = vsel %vm778_vm8, %v7695_v7, %v2378_v60  ;;  %v2313_v26 = vrot.slane %v6750_v22, 7 }
 0x438   :  { %v2440_v29 = vpack.c.bf16 %v2310_v3, %v2357_v28  ;;  %v6789_v23 = vsel %vm778_vm8, %v2378_v60, %v2379_v52  ;;  %v2312_v34 = vsel %vm686_vm15, %v2309_v38, %v2311_v46  ;;  %v6794_v57 = vpack.c.bf16 %v6753_v42, %v6750_v22  ;;  %v5293_v60 = vld [vmem:[#allocation5 + $0x180] sm:$0xff]  }
 0x439   :  { %7848 = vst [vmem:[#allocation32_spill] sm:$0xff] %v6779_v48  ;;  %3076 = vmatmul.mubr.bf16.vlgmr.msra.gmra.mrb[108].mxu0 %v6779_v48  ;;  %v6799_v27 = vpack.c.bf16 %v6789_v23, %v6785_v50  ;;  %v2314_v58 = vsel %vm686_vm15, %v2311_v46, %v2313_v26  ;;  %v6802_v41 = vpack.c.bf16 %v2312_v34, %v2310_v3  ;;  %v2381_v35 = vrot.slane %v6747_v61, 1 }
 0x43a   :  { %3180 = vmatprep.mubr.bf16.mxu1 %v2440_v29  ;;  %4774 = vmatpush3.bf16.msra.mxu0 %v5283_v4  ;;  %v2441_v38 = vpack.c.bf16 %v2314_v58, %v2312_v34  ;;  %v2383_v28 = vrot.slane %v6750_v22, 1  ;;  %v6807_v7 = vmul.f32 %v2254_v51, %v6482_v18  ;;  %v2315_v16 = vrot.slane %v6753_v42, 7  ;;  %v5286_v29 = vld [vmem:[#allocation5 + $0x150] sm:$0xff]  }
 0x43b   :  { %7849 = vst [vmem:[#allocation31_spill] sm:$0xff] %v6799_v27  ;;  %3083 = vmatprep.mubr.bf16.mxu0 %v6765_v44  ;;  %3181 = vmatmul.mubr.bf16.vlgmr.msra.gmra.mrb[108].mxu1 %v6799_v27  ;;  %v6813_v46 = vsel %vm778_vm8, %v2379_v52, %v2381_v35  ;;  %v2187_v3 = vmul.f32 %v6689_v54, %v6638_v45  ;;  %v2385_v4 = vrot.slane %v6753_v42, 1 }
 0x43c   :  { %v2188_v34 = vmul.f32 %v6689_v54, %v6643_v32  ;;  %3188 = vmatprep.mubr.bf16.mxu1 %v2441_v38  ;;  %4775 = vmatprep.subr.bf16.mxu0 %v5284_v19  ;;  %v6821_v51 = vsel %vm778_vm8, %v2381_v35, %v2383_v28  ;;  %v2316_v5 = vsel %vm686_vm15, %v2313_v26, %v2315_v16  ;;  %v7709_v18 = vrot.slane %v6807_v7, 7  ;;  %v5297_v35 = vld [vmem:[#allocation5 + $0x188] sm:$0xff]  }
 0x43d   :  { %v7708_v52 = vrot.slane %v6807_v7, 1  ;;  %v6828_v45 = vpack.c.bf16 %v6821_v51, %v6813_v46  ;;  %v6830_v21 = vpack.c.bf16 %v2316_v5, %v2314_v58  ;;  %v2212_v32 = vmul.f32 %v6694_v53, %v2187_v3  ;;  %4844 = vmatpush3.bf16.msra.mxu1 %v5293_v60 }
 0x43e   :  { %v6834_v19 = vsel %vm778_vm8, %v2383_v28, %v2385_v4  ;;  %4776 = vmatpush3.bf16.msra.mxu0 %v5285_v43  ;;  %v6839_v26 = vsel %vm686_vm15, %v2315_v16, %v7709_v18  ;;  %v2213_v58 = vmul.f32 %v6694_v53, %v2188_v34  ;;  %v2189_v28 = vmul.f32 %v6689_v54, %v6648_v6 }
 0x43f   :  { %7850 = vst [vmem:[#allocation36_spill] sm:$0xff] %v6828_v45  ;;  %v6844_v38 = vsel %vm778_vm8, %v2385_v4, %v7708_v52  ;;  %v2442_v60 = vpack.c.bf16 %v6839_v26, %v2316_v5  ;;  %v2237_v43 = vadd.f32 %v6706_v59, %v2212_v32  ;;  %4777 = vmatprep.subr.bf16.mxu0 %v5286_v29  ;;  %v5288_v4 = vld [vmem:[#allocation5 + $0x158] sm:$0xff]   ;;  %v5298_v32 = vld [vmem:[#allocation5 + $0x1d0] sm:$0xff]  }
 0x440   :  { %v6853_v3 = vpack.c.bf16 %v6844_v38, %v6834_v19  ;;  %v2190_v16 = vmul.f32 %v6689_v54, %v6653_v62  ;;  %v2238_v52 = vadd.f32 %v6706_v59, %v2213_v58  ;;  %v2214_v34 = vmul.f32 %v6694_v53, %v2189_v28  ;;  %4845 = vmatprep.subr.bf16.mxu1 %v5296_v15  ;;  %v5299_v62 = vld [vmem:[#allocation5 + $0x190] sm:$0xff]   ;;  %v5301_v15 = vld [vmem:[#allocation5 + $0x1d8] sm:$0xff]  }
 0x441   :  { %v2191_v6 = vmul.f32 %v6689_v54, %v6658_v56  ;;  %v2192_v5 = vmul.f32 %v6689_v54, %v6663_v25  ;;  %3084 = vmatmul.mubr.bf16.gmra.mrb[112].mxu0 %v6802_v41  ;;  %v2255_v18 = vmax.f32 %v2237_v43, 0.0  ;;  %4846 = vmatpush3.bf16.msra.mxu1 %v5297_v35 }
 0x442   :  { %7851 = vst [vmem:[#allocation35_spill] sm:$0xff] %v6853_v3  ;;  %v2215_v29 = vmul.f32 %v6694_v53, %v2190_v16  ;;  %3091 = vmatprep.mubr.bf16.mxu0 %v6794_v57  ;;  %v2256_v58 = vmax.f32 %v2238_v52, 0.0  ;;  %4778 = vmatpush3.bf16.msra.mxu0 %v5287_v30  ;;  %v2239_v28 = vadd.f32 %v6706_v59, %v2214_v34  ;;  %v5290_v16 = vld [vmem:[#allocation5 + $0x160] sm:$0xff]  }
 0x443   :  { %v2216_v56 = vmul.f32 %v6694_v53, %v2191_v6  ;;  %v2217_v25 = vmul.f32 %v6694_v53, %v2192_v5  ;;  %3189 = vmatmul.mubr.bf16.gmra.mrb[112].mxu1 %v6828_v45  ;;  %v6871_v43 = vmul.f32 %v2255_v18, %v6490_v63  ;;  %4779 = vmatprep.subr.bf16.mxu0 %v5288_v4  ;;  %v5300_v63 = vld [vmem:[#allocation5 + $0x170] sm:$0xff]   ;;  %v5306_v45 = vld [vmem:[#allocation5 + $0x1e8] sm:$0xff]  }
 0x444   :  { %v2240_v35 = vadd.f32 %v6706_v59, %v2215_v29  ;;  %3196 = vmatprep.mubr.bf16.mxu1 %v2442_v60  ;;  %v6875_v30 = vmul.f32 %v2256_v58, %v6496_v2  ;;  %v2257_v52 = vmax.f32 %v2239_v28, 0.0  ;;  %4847 = vmatprep.subr.bf16.mxu1 %v5298_v32  ;;  %v2193_v18 = vmul.f32 %v6689_v54, %v6668_v37  ;;  %v5303_v29 = vld [vmem:[#allocation5 + $0x198] sm:$0xff]   ;;  %v5291_v58 = vld [vmem:[#allocation5 + $0x120] sm:$0xff]   ;;  %v5294_v2 = vld [vmem:[#allocation5 + $0x168] sm:$0xff]  }
 0x445   :  { %v2241_v34 = vadd.f32 %v6706_v59, %v2216_v56  ;;  %v2242_v6 = vadd.f32 %v6706_v59, %v2217_v25  ;;  %v2319_v5 = vrot.slane %v6871_v43, 7  ;;  %4848 = vmatpush3.bf16.msra.mxu1 %v5299_v62  ;;  %v2194_v28 = vmul.f32 %v6689_v54, %v6673_v47 }
 0x446   :  { %v2258_v17 = vmax.f32 %v2240_v35, 0.0  ;;  %v2321_v4 = vrot.slane %v6875_v30, 7  ;;  %v6884_v60 = vmul.f32 %v2257_v52, %v6504_v20  ;;  %4780 = vmatpush3.bf16.msra.mxu0 %v5289_v13  ;;  %4849 = vmatprep.subr.bf16.mxu1 %v5301_v15  ;;  %v6890_v32 = vpack.c.bf16 %v6871_v43, %v6807_v7 }
 0x447   :  { %v7853_v56 = vrot.slane %v6807_v7, 7  ;;  %v2259_v25 = vmax.f32 %v2241_v34, 0.0  ;;  %4781 = vmatprep.subr.bf16.mxu0 %v5290_v16  ;;  %v2389_v35 = vrot.slane %v6871_v43, 1  ;;  %v2391_v47 = vrot.slane %v6875_v30, 1  ;;  %v5295_v34 = vld [vmem:[#allocation5 + $0x128] sm:$0xff]  }
 0x448   :  { %7852 = vst [vmem:[#allocation34_spill] sm:$0xff] %v6884_v60  ;;  %v6896_v62 = vmul.f32 %v2258_v17, %v6510_v12  ;;  %v2322_v13 = vsel %vm686_vm15, %v2319_v5, %v2321_v4  ;;  %v2260_v15 = vmax.f32 %v2242_v6, 0.0  ;;  %v2323_v52 = vrot.slane %v6884_v60, 7  ;;  %v5304_v17 = vld [vmem:[#allocation5 + $0x1e0] sm:$0xff]  }
 0x449   :  { %v2320_v37 = vsel %vm686_vm15, %v7853_v56, %v2319_v5  ;;  %3092 = vmatmul.mubr.bf16.gmra.mrb[116].mxu0 %v6830_v21  ;;  %v2218_v56 = vmul.f32 %v6694_v53, %v2193_v18  ;;  %4850 = vmatpush3.bf16.msra.mxu1 %v5303_v29  ;;  %v5305_v5 = vld [vmem:[#allocation5 + $0x1a0] sm:$0xff]   ;;  %v6908_v6 = vmul.f32 %v2259_v25, %v6518_v55  ;;  %v7854_v18 = vrot.slane %v6807_v7, 1  ;;  %v5302_v55 = vld [vmem:[#allocation5 + $0x130] sm:$0xff]  }
 0x44a   :  { %v2325_v20 = vrot.slane %v6896_v62, 7  ;;  %3099 = vmatprep.mubr.bf16.mxu0 %v6890_v32  ;;  %v2443_v16 = vpack.c.bf16 %v2322_v13, %v2320_v37  ;;  %4782 = vmatpush3.bf16.msra.mxu0 %v5291_v58  ;;  %v2219_v12 = vmul.f32 %v6694_v53, %v2194_v28  ;;  %v6917_v27 = vsel %vm778_vm8, %v2389_v35, %v2391_v47 }
 0x44b   :  { %3197 = vmatmul.mubr.bf16.gmra.mrb[116].mxu1 %v6853_v3  ;;  %v6914_v29 = vsel %vm778_vm8, %v7854_v18, %v2389_v35  ;;  %v6920_v58 = vmul.f32 %v2260_v15, %v6524_v49  ;;  %v2324_v3 = vsel %vm686_vm15, %v2321_v4, %v2323_v52  ;;  %v2393_v28 = vrot.slane %v6884_v60, 1  ;;  %4783 = vmatprep.subr.bf16.mxu0 %v5294_v2  ;;  %v5307_v2 = vld [vmem:[#allocation5 + $0x178] sm:$0xff]  }
 0x44c   :  { %3204 = vmatprep.mubr.bf16.mxu1 %v2443_v16  ;;  %v2326_v25 = vsel %vm686_vm15, %v2323_v52, %v2325_v20  ;;  %v2243_v16 = vadd.f32 %v6706_v59, %v2218_v56  ;;  %4851 = vmatprep.subr.bf16.mxu1 %v5304_v17  ;;  %v2244_v18 = vadd.f32 %v6706_v59, %v2219_v12  ;;  %v7729_v35 = vrot.slane %v6735_v40, 1 }
 0x44d   :  { %4852 = vmatpush3.bf16.msra.mxu1 %v5305_v5  ;;  %v6929_v15 = vpack.c.bf16 %v2320_v37, %v6839_v26  ;;  %v2327_v52 = vrot.slane %v6908_v6, 7  ;;  %v2195_v49 = vmul.f32 %v6689_v54, %v6678_v11  ;;  %v6937_v12 = vpack.c.bf16 %v6884_v60, %v6875_v30  ;;  %v5309_v26 = vld [vmem:[#allocation5 + $0x138] sm:$0xff]  }
 0x44e   :  { %4784 = vmatpush3.bf16.msra.mxu0 %v5295_v34  ;;  %v6941_v56 = vpack.c.bf16 %v6917_v27, %v6914_v29  ;;  %v2444_v17 = vpack.c.bf16 %v2326_v25, %v2324_v3  ;;  %4853 = vmatprep.subr.bf16.mxu1 %v5306_v45  ;;  %v6945_v37 = vpack.c.bf16 %v2324_v3, %v2322_v13  ;;  %v2262_v54 = vmax.f32 %v2244_v18, 0.0  ;;  %v5308_v34 = vld [vmem:[#allocation5 + $0x1a8] sm:$0xff]   ;;  %v5310_v13 = vld [vmem:[#allocation5 + $0x1f0] sm:$0xff]  }
 0x44f   :  { %4785 = vmatprep.subr.bf16.mxu0 %v5300_v63  ;;  %v6948_v11 = vsel %vm778_vm8, %v2391_v47, %v2393_v28  ;;  %v2261_v63 = vmax.f32 %v2243_v16, 0.0  ;;  %v2220_v5 = vmul.f32 %v6694_v53, %v2195_v49  ;;  %v2221_v4 = vmul.f32 %v6694_v53, %v6697_v36 }
 0x450   :  { %7855 = vst [vmem:[#allocation38_spill] sm:$0xff] %v6941_v56  ;;  %v7856_v45 = vrot.slane %v6741_v33, 1  ;;  %v7857_v47 = vrot.slane %v6896_v62, 1  ;;  %v2328_v49 = vsel %vm686_vm15, %v2325_v20, %v2327_v52  ;;  %v7858_v53 = vrot.slane %v6920_v58, 7 }
 0x451   :  { %3100 = vmatmul.mubr.bf16.gmra.mrb[120].mxu0 %v6929_v15  ;;  %v6976_v18 = vmul.f32 %v2262_v54, %v6538_v39  ;;  %v6982_v20 = vpack.c.bf16 %v6908_v6, %v6896_v62  ;;  %4854 = vmatpush3.bf16.msra.mxu1 %v5308_v34 }
 0x452   :  { %3107 = vmatprep.mubr.bf16.mxu0 %v6937_v12  ;;  %4786 = vmatpush3.bf16.msra.mxu0 %v5302_v55  ;;  %v6959_v3 = vsel %vm778_vm8, %v7729_v35, %v7856_v45  ;;  %v6965_v16 = vsel %vm778_vm8, %v2393_v28, %v7857_v47  ;;  %v6973_v36 = vsel %vm686_vm15, %v2327_v52, %v7858_v53  ;;  %v2397_v47 = vrot.slane %v6908_v6, 1  ;;  %v5313_v35 = vld [vmem:[#allocation5 + $0x1b8] sm:$0xff]  }
 0x453   :  { %3205 = vmatmul.mubr.bf16.gmra.mrb[120].mxu1 %v6941_v56  ;;  %4787 = vmatprep.subr.bf16.mxu0 %v5307_v2  ;;  %v2245_v45 = vadd.f32 %v6706_v59, %v2220_v5  ;;  %v2246_v28 = vadd.f32 %v6706_v59, %v2221_v4  ;;  %v6985_v2 = vmul.f32 %v2261_v63, %v6532_v14  ;;  %v5312_v59 = vld [vmem:[#allocation5 + $0x1f8] sm:$0xff]   ;;  %v2399_v52 = vrot.slane %v6920_v58, 1 }
 0x454   :  { %3212 = vmatprep.mubr.bf16.mxu1 %v2444_v17  ;;  %v5311_v17 = vld [vmem:[#allocation5 + $0x1b0] sm:$0xff]   ;;  %4855 = vmatprep.subr.bf16.mxu1 %v5310_v13  ;;  %v6996_v63 = vpack.c.bf16 %v6965_v16, %v6948_v11  ;;  %v2445_v34 = vpack.c.bf16 %v6973_v36, %v2328_v49  ;;  %v2403_v55 = vrot.slane %v6976_v18, 1  ;;  %v7861_v56 = vrot.slane %v6735_v40, 7 }
 0x455   :  { %v2263_v5 = vmax.f32 %v2245_v45, 0.0  ;;  %v2264_v53 = vmax.f32 %v2246_v28, 0.0  ;;  %v7003_v28 = vpack.c.bf16 %v2328_v49, %v2326_v25  ;;  %v2331_v54 = vrot.slane %v6985_v2, 7  ;;  %4856 = vmatpush3.bf16.msra.mxu1 %v5311_v17 }
 0x456   :  { %4788 = vmatpush3.bf16.msra.mxu0 %v5309_v26  ;;  %7859 = vst [vmem:[#allocation37_spill] sm:$0xff] %v6996_v63  ;;  %v2333_v26 = vrot.slane %v6976_v18, 7  ;;  %4857 = vmatprep.subr.bf16.mxu1 %v5312_v59  ;;  %v7033_v49 = vsel %vm778_vm8, %v2397_v47, %v2399_v52 }
 0x457   :  { %5040 = vmatprep.subr.bf16.mxu0 %v7778_v31  ;;  %v7007_v13 = vmul.f32 %v2263_v5, %v6546_v9  ;;  %v7010_v4 = vmul.f32 %v2264_v53, %v6552_v8  ;;  %v7860_v5 = vrot.slane %v6896_v62, 1 }
 0x459   :  { %3108 = vmatmul.mubr.bf16.gmra.mrb[124].mxu0 %v6945_v37  ;;  %v7023_v53 = vsel %vm778_vm8, %v7860_v5, %v2397_v47  ;;  %v2335_v45 = vrot.slane %v7007_v13, 7  ;;  %v2337_v8 = vrot.slane %v7010_v4, 7  ;;  %v7029_v17 = vpack.c.bf16 %v6735_v40, %v7010_v4  ;;  %4858 = vmatpush3.bf16.msra.mxu1 %v5313_v35 }
 0x45a   :  { %3115 = vmatprep.mubr.bf16.mxu0 %v6982_v20  ;;  %v2405_v25 = vrot.slane %v7007_v13, 1  ;;  %v2407_v9 = vrot.slane %v7010_v4, 1  ;;  %v7863_v47 = vrot.slane %v6735_v40, 1  ;;  %5092 = vmatprep.subr.bf16.mxu1 %v7778_v31  ;;  %v2334_v5 = vsel %vm686_vm15, %v2331_v54, %v2333_v26 }
 0x45b   :  { %3213 = vmatmul.mubr.bf16.gmra.mrb[124].mxu1 %v6996_v63  ;;  %v2336_v39 = vsel %vm686_vm15, %v2333_v26, %v2335_v45  ;;  %v2338_v14 = vsel %vm686_vm15, %v2335_v45, %v2337_v8  ;;  %v2339_v59 = vsel %vm686_vm15, %v2337_v8, %v7861_v56  ;;  %v7862_v63 = vrot.slane %v6920_v58, 7 }
 0x45c   :  { %3220 = vmatprep.mubr.bf16.mxu1 %v2445_v34  ;;  %v2447_v10 = vpack.c.bf16 %v2338_v14, %v2336_v39  ;;  %v7050_v60 = vsel %vm778_vm8, %v2403_v55, %v2405_v25  ;;  %v7053_v34 = vsel %vm778_vm8, %v2405_v25, %v2407_v9  ;;  %v2448_v8 = vpack.c.bf16 %v6773_v0, %v2339_v59 }
 0x45d   :  { %v2332_v48 = vsel %vm686_vm15, %v7862_v63, %v2331_v54  ;;  %v7057_v45 = vpack.c.bf16 %v7053_v34, %v7050_v60  ;;  %v7060_v56 = vpack.c.bf16 %v2339_v59, %v2338_v14  ;;  %v7065_v63 = vsel %vm778_vm8, %v2407_v9, %v7863_v47 }
 0x45e   :  { %v7071_v35 = vpack.c.bf16 %v6959_v3, %v7065_v63  ;;  %v7079_v0 = vpack.c.bf16 %v6985_v2, %v6920_v58  ;;  %v7088_v26 = vpack.c.bf16 %v7033_v49, %v7023_v53  ;;  %v2446_v59 = vpack.c.bf16 %v2334_v5, %v2332_v48 }
 0x45f   :  { %v2401_v47 = vrot.slane %v6985_v2, 1  ;;  %v7098_v54 = vpack.c.bf16 %v2332_v48, %v6973_v36  ;;  %v7102_v25 = vpack.c.bf16 %v7007_v13, %v6976_v18  ;;  %v7864_v48 = vpack.c.bf16 %v6813_v46, %v6789_v23  ;;  %v5315_v36 = vld [vmem:[#allocation5 + $0x208] sm:$0xff]   ;;  %v5316_v23 = vld [vmem:[#allocation5 + $0x210] sm:$0xff]  }
 0x461   :  { %3116 = vmatmul.mubr.bf16.gmra.mrb[128].mxu0 %v7003_v28  ;;  %v2402_v14 = vsel %vm778_vm8, %v2399_v52, %v2401_v47  ;;  %v7095_v9 = vsel %vm778_vm8, %v2401_v47, %v2403_v55  ;;  %v2365_v52 = vpack.c.bf16 %v2336_v39, %v2334_v5  ;;  %v5314_v55 = vld [vmem:[#allocation5 + $0x200] sm:$0xff]   ;;  %v7865_v39 = vpack.c.bf16 %v6744_v24, %v6738_v1 }
 0x462   :  { %3123 = vmatprep.mubr.bf16.mxu0 %v7079_v0  ;;  %v7106_v40 = vpack.c.bf16 %v7095_v9, %v2402_v14  ;;  %v2460_v1 = vpack.c.bf16 %v6914_v29, %v6844_v38  ;;  %v7867_v24 = vpack.c.bf16 %v6750_v22, %v6747_v61  ;;  %v7868_v61 = vpack.c.bf16 %v6807_v7, %v6753_v42  ;;  %v5319_v22 = vld [vmem:[#allocation5 + $0x228] sm:$0xff]   ;;  %v5321_v7 = vld [vmem:[#allocation5 + $0x238] sm:$0xff]  }
 0x463   :  { %3221 = vmatmul.mubr.bf16.gmra.mrb[128].mxu1 %v7088_v26  ;;  %v7869_v42 = vpack.c.bf16 %v6875_v30, %v6871_v43  ;;  %v2463_v46 = vpack.c.bf16 %v2402_v14, %v7033_v49  ;;  %v2464_v38 = vpack.c.bf16 %v7050_v60, %v7095_v9  ;;  %v7872_v43 = vpack.c.bf16 %v6920_v58, %v6908_v6  ;;  %v7877_v6 = vld [vmem:[#allocation27_spill] sm:$0xff]  ;;  %v7878_v29 = vld [vmem:[#allocation28_spill] sm:$0xff] }
 0x464   :  { %3228 = vmatprep.mubr.bf16.mxu1 %v2446_v59  ;;  %v7873_v30 = vpack.c.bf16 %v6976_v18, %v6985_v2  ;;  %v7875_v60 = vpack.c.bf16 %v7010_v4, %v7007_v13  ;;  %v7879_v58 = vpack.c.bf16 %v6741_v33, %v7878_v29  ;;  %v7883_v33 = vld [vmem:[#allocation38_spill] sm:$0xff] }
 0x469   :  { %3124 = vmatmul.mubr.bf16.gmra.mrb[132].mxu0 %v7098_v54 }
 0x46a   :  { %3131 = vmatprep.mubr.bf16.mxu0 %v7102_v25 }
 0x46b   :  { %3229 = vmatmul.mubr.bf16.gmra.mrb[132].mxu1 %v7106_v40 }
 0x46c   :  { %3236 = vmatprep.mubr.bf16.mxu1 %v2447_v10  ;;  %v7866_v10 = vpack.c.bf16 %v6834_v19, %v6821_v51  ;;  %v7870_v51 = vld [vmem:[#allocation34_spill] sm:$0xff] }
 0x46d   :  { %v7871_v19 = vpack.c.bf16 %v6896_v62, %v7870_v51  ;;  %v7876_v62 = vpack.c.bf16 %v6785_v50, %v6959_v3  ;;  %v7882_v50 = vld [vmem:[#allocation35_spill] sm:$0xff] }
 0x471   :  { %3132 = vmatmul.mubr.bf16.gmra.mrb[136].mxu0 %v2365_v52 }
 0x472   :  { %3139 = vmatprep.mubr.bf16.mxu0 %v7029_v17 }
 0x473   :  { %3237 = vmatmul.mubr.bf16.gmra.mrb[136].mxu1 %v7057_v45 }
 0x474   :  { %3244 = vmatprep.mubr.bf16.mxu1 %v2448_v8 }
 0x479   :  { %3140 = vmatmul.mubr.bf16.gmra.mrb[140].mxu0 %v7060_v56 }
 0x47a   :  { %3285 = vmatprep.mubr.bf16.mxu0 %v7864_v48 }
 0x47b   :  { %3245 = vmatmul.mubr.bf16.gmra.mrb[140].mxu1 %v7071_v35 }
 0x47c   :  { %3390 = vmatprep.mubr.bf16.mxu1 %v6765_v44  ;;  %v5317_v44 = vld [vmem:[#allocation5 + $0x218] sm:$0xff]  }
 0x481   :  { %3286 = vmatmul.mubr.bf16.vlgmr.msra.gmra.mrb[144].mxu0 %v7865_v39 }
 0x482   :  { %5041 = vmatpush3.bf16.msra.mxu0 %v5314_v55  ;;  %3293 = vmatprep.mubr.bf16.mxu0 %v7866_v10 }
 0x483   :  { %3391 = vmatmul.mubr.bf16.vlgmr.msra.gmra.mrb[144].mxu1 %v6802_v41  ;;  %5042 = vmatprep.subr.bf16.mxu0 %v7778_v31  ;;  %v2461_v41 = vpack.c.bf16 %v6948_v11, %v6917_v27  ;;  %v2462_v27 = vpack.c.bf16 %v7023_v53, %v6965_v16  ;;  %v7885_v11 = vld [vmem:[#allocation31_spill] sm:$0xff] }
 0x484   :  { %3398 = vmatprep.mubr.bf16.mxu1 %v6794_v57  ;;  %v5318_v57 = vld [vmem:[#allocation5 + $0x220] sm:$0xff]  }
 0x486   :  { %5043 = vmatpush3.bf16.msra.mxu0 %v5315_v36 }
 0x487   :  { %5044 = vmatprep.subr.bf16.mxu0 %v7778_v31 }
 0x489   :  { %3294 = vmatmul.mubr.bf16.gmra.mrb[148].mxu0 %v7867_v24 }
 0x48a   :  { %3301 = vmatprep.mubr.bf16.mxu0 %v2460_v1  ;;  %5045 = vmatpush3.bf16.msra.mxu0 %v5316_v23 }
 0x48b   :  { %3399 = vmatmul.mubr.bf16.gmra.mrb[148].mxu1 %v6830_v21  ;;  %5046 = vmatprep.subr.bf16.mxu0 %v7778_v31  ;;  %v5320_v21 = vld [vmem:[#allocation5 + $0x230] sm:$0xff]  }
 0x48c   :  { %3406 = vmatprep.mubr.bf16.mxu1 %v6890_v32  ;;  %v7874_v32 = vpack.c.bf16 %v7065_v63, %v7053_v34 }
 0x48e   :  { %5047 = vmatpush3.bf16.msra.mxu0 %v5317_v44 }
 0x48f   :  { %5048 = vmatprep.subr.bf16.mxu0 %v7778_v31 }
 0x491   :  { %3302 = vmatmul.mubr.bf16.gmra.mrb[152].mxu0 %v7868_v61 }
 0x492   :  { %3309 = vmatprep.mubr.bf16.mxu0 %v2461_v41  ;;  %5049 = vmatpush3.bf16.msra.mxu0 %v5318_v57 }
 0x493   :  { %3407 = vmatmul.mubr.bf16.gmra.mrb[152].mxu1 %v6929_v15  ;;  %5050 = vmatprep.subr.bf16.mxu0 %v7778_v31  ;;  %v7880_v15 = vld [vmem:[#allocation32_spill] sm:$0xff] }
 0x494   :  { %3414 = vmatprep.mubr.bf16.mxu1 %v6937_v12  ;;  %v7881_v12 = vld [vmem:[#allocation36_spill] sm:$0xff] }
 0x496   :  { %5051 = vmatpush3.bf16.msra.mxu0 %v5319_v22 }
 0x497   :  { %5052 = vmatprep.subr.bf16.mxu0 %v7778_v31 }
 0x499   :  { %3310 = vmatmul.mubr.bf16.gmra.mrb[156].mxu0 %v7869_v42 }
 0x49a   :  { %3317 = vmatprep.mubr.bf16.mxu0 %v2462_v27  ;;  %5053 = vmatpush3.bf16.msra.mxu0 %v5320_v21 }
 0x49b   :  { %3415 = vmatmul.mubr.bf16.gmra.mrb[156].mxu1 %v6945_v37  ;;  %5054 = vmatprep.subr.bf16.mxu0 %v7778_v31  ;;  %v7884_v37 = vld [vmem:[#allocation37_spill] sm:$0xff] }
 0x49c   :  { %3422 = vmatprep.mubr.bf16.mxu1 %v6982_v20 }
 0x49e   :  { %5055 = vmatpush3.bf16.msra.mxu0 %v5321_v7 }
 0x4a1   :  { %3318 = vmatmul.mubr.bf16.gmra.mrb[160].mxu0 %v7871_v19 }
 0x4a2   :  { %3325 = vmatprep.mubr.bf16.mxu0 %v2463_v46 }
 0x4a3   :  { %3423 = vmatmul.mubr.bf16.gmra.mrb[160].mxu1 %v7003_v28 }
 0x4a4   :  { %3430 = vmatprep.mubr.bf16.mxu1 %v7079_v0 }
 0x4a9   :  { %3326 = vmatmul.mubr.bf16.gmra.mrb[164].mxu0 %v7872_v43 }
 0x4aa   :  { %3333 = vmatprep.mubr.bf16.mxu0 %v2464_v38 }
 0x4ab   :  { %3431 = vmatmul.mubr.bf16.gmra.mrb[164].mxu1 %v7098_v54 }
 0x4ac   :  { %3438 = vmatprep.mubr.bf16.mxu1 %v7102_v25 }
 0x4b1   :  { %3334 = vmatmul.mubr.bf16.gmra.mrb[168].mxu0 %v7873_v30 }
 0x4b2   :  { %3341 = vmatprep.mubr.bf16.mxu0 %v7874_v32 }
 0x4b3   :  { %3439 = vmatmul.mubr.bf16.gmra.mrb[168].mxu1 %v2365_v52 }
 0x4b4   :  { %3446 = vmatprep.mubr.bf16.mxu1 %v7029_v17 }
 0x4b9   :  { %3342 = vmatmul.mubr.bf16.gmra.mrb[172].mxu0 %v7875_v60 }
 0x4ba   :  { %3349 = vmatprep.mubr.bf16.mxu0 %v7876_v62 }
 0x4bb   :  { %3447 = vmatmul.mubr.bf16.gmra.mrb[172].mxu1 %v7060_v56 }
 0x4bc   :  { %3454 = vmatprep.mubr.bf16.mxu1 %v7877_v6 }
 0x4c1   :  { %3350 = vmatmul.mubr.bf16.gmra.mrb[176].mxu0 %v7879_v58 }
 0x4c2   :  { %5056 = vmatprep.mubr.msk.bf16.mxu0 %vm5428_vm1, %v7778_v31 }
 0x4c3   :  { %3455 = vmatmul.mubr.bf16.gmra.mrb[176].mxu1 %v7880_v15 }
 0x4c4   :  { %5108 = vmatprep.mubr.msk.bf16.mxu1 %vm5428_vm1, %v7778_v31 }
 0x4c9   :  { %5057 = vmatmul.mubr.bf16.vlgmr.msra.gmra.mrb[180].mxu0 %v7881_v12 }
 0x4ca   :  { %5060 = vmatprep.mubr.msk.bf16.mxu0 %vm5428_vm1, %v7778_v31 }
 0x4d1   :  { %5061 = vmatmul.mubr.bf16.gmra.mrb[184].mxu0 %v7882_v50 }
 0x4d2   :  { %5064 = vmatprep.mubr.msk.bf16.mxu0 %vm5428_vm1, %v7778_v31 }
 0x4d9   :  { %5065 = vmatmul.mubr.bf16.gmra.mrb[188].mxu0 %v7883_v33 }
 0x4da   :  { %5068 = vmatprep.mubr.msk.bf16.mxu0 %vm5428_vm1, %v7778_v31 }
 0x4e1   :  { %5069 = vmatmul.mubr.bf16.gmra.mrb[192].mxu0 %v7884_v37 }
 0x4e2   :  { %5072 = vmatprep.mubr.msk.bf16.mxu0 %vm5428_vm1, %v7778_v31 }
 0x4e9   :  { %5073 = vmatmul.mubr.bf16.gmra.mrb[196].mxu0 %v7088_v26 }
 0x4ea   :  { %5076 = vmatprep.mubr.msk.bf16.mxu0 %vm5428_vm1, %v7778_v31 }
 0x4f1   :  { %5077 = vmatmul.mubr.bf16.gmra.mrb[200].mxu0 %v7106_v40 }
 0x4f2   :  { %5080 = vmatprep.mubr.msk.bf16.mxu0 %vm5428_vm1, %v7778_v31 }
 0x4f9   :  { %5081 = vmatmul.mubr.bf16.gmra.mrb[204].mxu0 %v7057_v45 }
 0x4fa   :  { %5084 = vmatprep.mubr.msk.bf16.mxu0 %vm5428_vm1, %v7778_v31 }
 0x501   :  { %5085 = vmatmul.mubr.bf16.gmra.mrb[208].mxu0 %v7071_v35 }
 0x502   :  { %5088 = vmatprep.mubr.msk.bf16.mxu0 %vm5428_vm1, %v7778_v31 }
 0x509   :  { %5089 = vmatmul.mubr.bf16.gmra.mrb[212].mxu0 %v7885_v11 }
 0x50c   :  { %v4649_v3 = vpop.f32.mrb[108].mxu0 }
 0x50d   :  { %v4650_v16 = vpop.f32.mrb[109].mxu0 }
 0x50e   :  { %v4651_v18 = vadd.f32 %v4650_v16, %v4649_v3  ;;  %v4719_v20 = vpop.f32.mrb[108].mxu1  ;;  %v4652_v40 = vpop.f32.mrb[110].mxu0 }
 0x50f   :  { %v4720_v2 = vpop.f32.mrb[109].mxu1  ;;  %v4653_v4 = vpop.f32.mrb[111].mxu0 }
 0x510   :  { %v4721_v28 = vadd.f32 %v4720_v2, %v4719_v20  ;;  %v4654_v13 = vadd.f32 %v4653_v4, %v4652_v40  ;;  %v4722_v49 = vpop.f32.mrb[110].mxu1 }
 0x511   :  { %v4723_v53 = vpop.f32.mrb[111].mxu1 }
 0x512   :  { %v7215_v17 = vadd.f32 %v4721_v28, %v4651_v18  ;;  %v4724_v5 = vadd.f32 %v4723_v53, %v4722_v49 }
 0x514   :  { %v7217_v34 = vadd.f32 %v4724_v5, %v4654_v13  ;;  %v4655_v45 = vpop.f32.mrb[112].mxu0 }
 0x515   :  { %v4656_v8 = vpop.f32.mrb[113].mxu0 }
 0x516   :  { %v4657_v56 = vadd.f32 %v4656_v8, %v4655_v45  ;;  %v4725_v63 = vpop.f32.mrb[112].mxu1  ;;  %v4658_v35 = vpop.f32.mrb[114].mxu0 }
 0x517   :  { %v4726_v25 = vpop.f32.mrb[113].mxu1  ;;  %v4659_v14 = vpop.f32.mrb[115].mxu0 }
 0x518   :  { %v4727_v0 = vadd.f32 %v4726_v25, %v4725_v63  ;;  %v4660_v9 = vadd.f32 %v4659_v14, %v4658_v35  ;;  %v4728_v54 = vpop.f32.mrb[114].mxu1 }
 0x519   :  { %v4729_v26 = vpop.f32.mrb[115].mxu1 }
 0x51a   :  { %v7219_v59 = vadd.f32 %v4727_v0, %v4657_v56  ;;  %v4730_v47 = vadd.f32 %v4729_v26, %v4728_v54 }
 0x51c   :  { %v7221_v52 = vadd.f32 %v4730_v47, %v4660_v9  ;;  %v4661_v48 = vpop.f32.mrb[116].mxu0 }
 0x51d   :  { %v4662_v55 = vpop.f32.mrb[117].mxu0 }
 0x51e   :  { %v4663_v39 = vadd.f32 %v4662_v55, %v4661_v48  ;;  %v4731_v10 = vpop.f32.mrb[116].mxu1  ;;  %v4664_v36 = vpop.f32.mrb[118].mxu0 }
 0x51f   :  { %v4732_v23 = vpop.f32.mrb[117].mxu1  ;;  %v4665_v1 = vpop.f32.mrb[119].mxu0 }
 0x520   :  { %v4733_v24 = vadd.f32 %v4732_v23, %v4731_v10  ;;  %v4666_v44 = vadd.f32 %v4665_v1, %v4664_v36  ;;  %v4734_v57 = vpop.f32.mrb[118].mxu1 }
 0x521   :  { %v4735_v41 = vpop.f32.mrb[119].mxu1 }
 0x522   :  { %v7223_v61 = vadd.f32 %v4733_v24, %v4663_v39  ;;  %v4736_v22 = vadd.f32 %v4735_v41, %v4734_v57 }
 0x524   :  { %v7225_v21 = vadd.f32 %v4736_v22, %v4666_v44  ;;  %v4667_v27 = vpop.f32.mrb[120].mxu0 }
 0x525   :  { %v4668_v42 = vpop.f32.mrb[121].mxu0 }
 0x526   :  { %v4669_v7 = vadd.f32 %v4668_v42, %v4667_v27  ;;  %v4737_v46 = vpop.f32.mrb[120].mxu1  ;;  %v4670_v51 = vpop.f32.mrb[122].mxu0 }
 0x527   :  { %v4738_v19 = vpop.f32.mrb[121].mxu1  ;;  %v4671_v38 = vpop.f32.mrb[123].mxu0 }
 0x528   :  { %v4739_v43 = vadd.f32 %v4738_v19, %v4737_v46  ;;  %v4672_v30 = vadd.f32 %v4671_v38, %v4670_v51  ;;  %v4740_v32 = vpop.f32.mrb[122].mxu1 }
 0x529   :  { %v4741_v60 = vpop.f32.mrb[123].mxu1 }
 0x52a   :  { %v7227_v62 = vadd.f32 %v4739_v43, %v4669_v7  ;;  %v4742_v6 = vadd.f32 %v4741_v60, %v4740_v32 }
 0x52c   :  { %v7229_v29 = vadd.f32 %v4742_v6, %v4672_v30  ;;  %v4673_v58 = vpop.f32.mrb[124].mxu0 }
 0x52d   :  { %v4674_v15 = vpop.f32.mrb[125].mxu0 }
 0x52e   :  { %v4675_v12 = vadd.f32 %v4674_v15, %v4673_v58  ;;  %v4743_v50 = vpop.f32.mrb[124].mxu1  ;;  %v4676_v33 = vpop.f32.mrb[126].mxu0 }
 0x52f   :  { %v4744_v37 = vpop.f32.mrb[125].mxu1  ;;  %v4677_v11 = vpop.f32.mrb[127].mxu0 }
 0x530   :  { %v4745_v3 = vadd.f32 %v4744_v37, %v4743_v50  ;;  %v4678_v16 = vadd.f32 %v4677_v11, %v4676_v33  ;;  %v4746_v18 = vpop.f32.mrb[126].mxu1 }
 0x531   :  { %v4747_v20 = vpop.f32.mrb[127].mxu1 }
 0x532   :  { %v7231_v40 = vadd.f32 %v4745_v3, %v4675_v12  ;;  %v4748_v2 = vadd.f32 %v4747_v20, %v4746_v18 }
 0x534   :  { %v7233_v4 = vadd.f32 %v4748_v2, %v4678_v16  ;;  %v4679_v28 = vpop.f32.mrb[128].mxu0 }
 0x535   :  { %v4680_v13 = vpop.f32.mrb[129].mxu0 }
 0x536   :  { %v4681_v49 = vadd.f32 %v4680_v13, %v4679_v28  ;;  %v4749_v53 = vpop.f32.mrb[128].mxu1  ;;  %v4682_v5 = vpop.f32.mrb[130].mxu0 }
 0x537   :  { %v4750_v45 = vpop.f32.mrb[129].mxu1  ;;  %v4683_v8 = vpop.f32.mrb[131].mxu0 }
 0x538   :  { %v4751_v56 = vadd.f32 %v4750_v45, %v4749_v53  ;;  %v4684_v63 = vadd.f32 %v4683_v8, %v4682_v5  ;;  %v4752_v35 = vpop.f32.mrb[130].mxu1 }
 0x539   :  { %v4753_v25 = vpop.f32.mrb[131].mxu1 }
 0x53a   :  { %v7235_v14 = vadd.f32 %v4751_v56, %v4681_v49  ;;  %v4754_v0 = vadd.f32 %v4753_v25, %v4752_v35 }
 0x53c   :  { %v7237_v9 = vadd.f32 %v4754_v0, %v4684_v63  ;;  %v4685_v54 = vpop.f32.mrb[132].mxu0 }
 0x53d   :  { %v4686_v26 = vpop.f32.mrb[133].mxu0 }
 0x53e   :  { %v4687_v47 = vadd.f32 %v4686_v26, %v4685_v54  ;;  %v4755_v48 = vpop.f32.mrb[132].mxu1  ;;  %v4688_v55 = vpop.f32.mrb[134].mxu0 }
 0x53f   :  { %v4756_v39 = vpop.f32.mrb[133].mxu1  ;;  %v4689_v10 = vpop.f32.mrb[135].mxu0 }
 0x540   :  { %v4757_v36 = vadd.f32 %v4756_v39, %v4755_v48  ;;  %v4690_v23 = vadd.f32 %v4689_v10, %v4688_v55  ;;  %v4758_v1 = vpop.f32.mrb[134].mxu1 }
 0x541   :  { %v4759_v24 = vpop.f32.mrb[135].mxu1 }
 0x542   :  { %v7239_v44 = vadd.f32 %v4757_v36, %v4687_v47  ;;  %v4760_v57 = vadd.f32 %v4759_v24, %v4758_v1 }
 0x544   :  { %v7241_v41 = vadd.f32 %v4760_v57, %v4690_v23  ;;  %v4691_v22 = vpop.f32.mrb[136].mxu0 }
 0x545   :  { %v4692_v27 = vpop.f32.mrb[137].mxu0 }
 0x546   :  { %v4693_v42 = vadd.f32 %v4692_v27, %v4691_v22  ;;  %v4761_v7 = vpop.f32.mrb[136].mxu1  ;;  %v4694_v46 = vpop.f32.mrb[138].mxu0 }
 0x547   :  { %v4762_v51 = vpop.f32.mrb[137].mxu1  ;;  %v4695_v19 = vpop.f32.mrb[139].mxu0 }
 0x548   :  { %v4763_v38 = vadd.f32 %v4762_v51, %v4761_v7  ;;  %v4696_v43 = vadd.f32 %v4695_v19, %v4694_v46  ;;  %v4764_v30 = vpop.f32.mrb[138].mxu1 }
 0x549   :  { %v4765_v32 = vpop.f32.mrb[139].mxu1 }
 0x54a   :  { %v7243_v60 = vadd.f32 %v4763_v38, %v4693_v42  ;;  %v4766_v6 = vadd.f32 %v4765_v32, %v4764_v30 }
 0x54c   :  { %v7245_v58 = vadd.f32 %v4766_v6, %v4696_v43  ;;  %v4697_v15 = vpop.f32.mrb[140].mxu0 }
 0x54d   :  { %v4698_v12 = vpop.f32.mrb[141].mxu0 }
 0x54e   :  { %v4699_v50 = vadd.f32 %v4698_v12, %v4697_v15  ;;  %v4767_v33 = vpop.f32.mrb[140].mxu1  ;;  %v4700_v37 = vpop.f32.mrb[142].mxu0 }
 0x54f   :  { %v4768_v11 = vpop.f32.mrb[141].mxu1  ;;  %v4701_v3 = vpop.f32.mrb[143].mxu0 }
 0x550   :  { %v4769_v16 = vadd.f32 %v4768_v11, %v4767_v33  ;;  %v4702_v18 = vadd.f32 %v4701_v3, %v4700_v37  ;;  %v4770_v20 = vpop.f32.mrb[142].mxu1 }
 0x551   :  { %v4771_v2 = vpop.f32.mrb[143].mxu1 }
 0x552   :  { %v7247_v28 = vadd.f32 %v4769_v16, %v4699_v50  ;;  %v4772_v13 = vadd.f32 %v4771_v2, %v4770_v20 }
 0x554   :  { %v7249_v49 = vadd.f32 %v4772_v13, %v4702_v18  ;;  %v4789_v53 = vpop.f32.mrb[144].mxu0 }
 0x555   :  { %v4790_v5 = vpop.f32.mrb[145].mxu0 }
 0x556   :  { %v4791_v45 = vadd.f32 %v4790_v5, %v4789_v53  ;;  %v4859_v8 = vpop.f32.mrb[144].mxu1  ;;  %v4792_v56 = vpop.f32.mrb[146].mxu0 }
 0x557   :  { %v4860_v63 = vpop.f32.mrb[145].mxu1  ;;  %v4793_v35 = vpop.f32.mrb[147].mxu0 }
 0x558   :  { %v3288_v25 = vadd.f32 %v4791_v45, %v7215_v17  ;;  %v4861_v0 = vadd.f32 %v4860_v63, %v4859_v8  ;;  %v4794_v54 = vadd.f32 %v4793_v35, %v4792_v56  ;;  %v4862_v26 = vpop.f32.mrb[146].mxu1 }
 0x559   :  { %v4863_v47 = vpop.f32.mrb[147].mxu1 }
 0x55a   :  { %v3291_v48 = vadd.f32 %v4794_v54, %v7217_v34  ;;  %v4864_v55 = vadd.f32 %v4863_v47, %v4862_v26  ;;  %v7253_v39 = vadd.f32 %v4861_v0, %v3288_v25 }
 0x55c   :  { %v4795_v10 = vpop.f32.mrb[148].mxu0  ;;  %v7255_v36 = vadd.f32 %v4864_v55, %v3291_v48 }
 0x55d   :  { %v4796_v23 = vpop.f32.mrb[149].mxu0 }
 0x55e   :  { %v4797_v1 = vadd.f32 %v4796_v23, %v4795_v10  ;;  %v4865_v24 = vpop.f32.mrb[148].mxu1  ;;  %v4798_v57 = vpop.f32.mrb[150].mxu0 }
 0x55f   :  { %v4866_v22 = vpop.f32.mrb[149].mxu1  ;;  %v4799_v27 = vpop.f32.mrb[151].mxu0 }
 0x560   :  { %v3296_v17 = vadd.f32 %v4797_v1, %v7219_v59  ;;  %v4867_v42 = vadd.f32 %v4866_v22, %v4865_v24  ;;  %v4800_v7 = vadd.f32 %v4799_v27, %v4798_v57  ;;  %v4868_v46 = vpop.f32.mrb[150].mxu1 }
 0x561   :  { %v4869_v51 = vpop.f32.mrb[151].mxu1 }
 0x562   :  { %v3299_v34 = vadd.f32 %v4800_v7, %v7221_v52  ;;  %v4870_v19 = vadd.f32 %v4869_v51, %v4868_v46  ;;  %v7259_v38 = vadd.f32 %v4867_v42, %v3296_v17 }
 0x564   :  { %v4801_v43 = vpop.f32.mrb[152].mxu0  ;;  %v7261_v30 = vadd.f32 %v4870_v19, %v3299_v34 }
 0x565   :  { %v4802_v32 = vpop.f32.mrb[153].mxu0 }
 0x566   :  { %v4803_v6 = vadd.f32 %v4802_v32, %v4801_v43  ;;  %v4871_v15 = vpop.f32.mrb[152].mxu1  ;;  %v4804_v12 = vpop.f32.mrb[154].mxu0 }
 0x567   :  { %v4872_v50 = vpop.f32.mrb[153].mxu1  ;;  %v4805_v33 = vpop.f32.mrb[155].mxu0 }
 0x568   :  { %v3304_v59 = vadd.f32 %v4803_v6, %v7223_v61  ;;  %v4873_v37 = vadd.f32 %v4872_v50, %v4871_v15  ;;  %v4806_v11 = vadd.f32 %v4805_v33, %v4804_v12  ;;  %v4874_v3 = vpop.f32.mrb[154].mxu1 }
 0x569   :  { %v4875_v16 = vpop.f32.mrb[155].mxu1 }
 0x56a   :  { %v3307_v52 = vadd.f32 %v4806_v11, %v7225_v21  ;;  %v4876_v18 = vadd.f32 %v4875_v16, %v4874_v3  ;;  %v7265_v20 = vadd.f32 %v4873_v37, %v3304_v59 }
 0x56c   :  { %v4807_v2 = vpop.f32.mrb[156].mxu0  ;;  %v7267_v13 = vadd.f32 %v4876_v18, %v3307_v52 }
 0x56d   :  { %v4808_v53 = vpop.f32.mrb[157].mxu0 }
 0x56e   :  { %v4809_v5 = vadd.f32 %v4808_v53, %v4807_v2  ;;  %v4877_v45 = vpop.f32.mrb[156].mxu1  ;;  %v4810_v8 = vpop.f32.mrb[158].mxu0 }
 0x56f   :  { %v4878_v56 = vpop.f32.mrb[157].mxu1  ;;  %v4811_v63 = vpop.f32.mrb[159].mxu0 }
 0x570   :  { %v3312_v61 = vadd.f32 %v4809_v5, %v7227_v62  ;;  %v4879_v35 = vadd.f32 %v4878_v56, %v4877_v45  ;;  %v4812_v25 = vadd.f32 %v4811_v63, %v4810_v8  ;;  %v4880_v0 = vpop.f32.mrb[158].mxu1 }
 0x571   :  { %v4881_v54 = vpop.f32.mrb[159].mxu1 }
 0x572   :  { %v3315_v21 = vadd.f32 %v4812_v25, %v7229_v29  ;;  %v4882_v26 = vadd.f32 %v4881_v54, %v4880_v0  ;;  %v7271_v47 = vadd.f32 %v4879_v35, %v3312_v61 }
 0x574   :  { %v4813_v48 = vpop.f32.mrb[160].mxu0  ;;  %v7273_v55 = vadd.f32 %v4882_v26, %v3315_v21 }
 0x575   :  { %v4814_v10 = vpop.f32.mrb[161].mxu0 }
 0x576   :  { %v4815_v23 = vadd.f32 %v4814_v10, %v4813_v48  ;;  %v4883_v1 = vpop.f32.mrb[160].mxu1  ;;  %v4816_v24 = vpop.f32.mrb[162].mxu0 }
 0x577   :  { %v4884_v57 = vpop.f32.mrb[161].mxu1  ;;  %v4817_v22 = vpop.f32.mrb[163].mxu0 }
 0x578   :  { %v3320_v62 = vadd.f32 %v4815_v23, %v7231_v40  ;;  %v4885_v27 = vadd.f32 %v4884_v57, %v4883_v1  ;;  %v4818_v17 = vadd.f32 %v4817_v22, %v4816_v24  ;;  %v4886_v42 = vpop.f32.mrb[162].mxu1 }
 0x579   :  { %v4887_v7 = vpop.f32.mrb[163].mxu1 }
 0x57a   :  { %v3323_v29 = vadd.f32 %v4818_v17, %v7233_v4  ;;  %v4888_v46 = vadd.f32 %v4887_v7, %v4886_v42  ;;  %v7277_v51 = vadd.f32 %v4885_v27, %v3320_v62 }
 0x57c   :  { %v4819_v34 = vpop.f32.mrb[164].mxu0  ;;  %v7279_v19 = vadd.f32 %v4888_v46, %v3323_v29 }
 0x57d   :  { %v4820_v43 = vpop.f32.mrb[165].mxu0 }
 0x57e   :  { %v4821_v32 = vadd.f32 %v4820_v43, %v4819_v34  ;;  %v4889_v6 = vpop.f32.mrb[164].mxu1  ;;  %v4822_v15 = vpop.f32.mrb[166].mxu0 }
 0x57f   :  { %v4890_v12 = vpop.f32.mrb[165].mxu1  ;;  %v4823_v50 = vpop.f32.mrb[167].mxu0 }
 0x580   :  { %v3328_v40 = vadd.f32 %v4821_v32, %v7235_v14  ;;  %v4891_v33 = vadd.f32 %v4890_v12, %v4889_v6  ;;  %v4824_v59 = vadd.f32 %v4823_v50, %v4822_v15  ;;  %v4892_v37 = vpop.f32.mrb[166].mxu1 }
 0x581   :  { %v4893_v11 = vpop.f32.mrb[167].mxu1 }
 0x582   :  { %v3331_v4 = vadd.f32 %v4824_v59, %v7237_v9  ;;  %v4894_v3 = vadd.f32 %v4893_v11, %v4892_v37  ;;  %v7283_v16 = vadd.f32 %v4891_v33, %v3328_v40 }
 0x584   :  { %v4825_v52 = vpop.f32.mrb[168].mxu0  ;;  %v7285_v18 = vadd.f32 %v4894_v3, %v3331_v4 }
 0x585   :  { %v4826_v2 = vpop.f32.mrb[169].mxu0 }
 0x586   :  { %v4827_v53 = vadd.f32 %v4826_v2, %v4825_v52  ;;  %v4895_v5 = vpop.f32.mrb[168].mxu1  ;;  %v4828_v45 = vpop.f32.mrb[170].mxu0 }
 0x587   :  { %v4896_v8 = vpop.f32.mrb[169].mxu1  ;;  %v4829_v56 = vpop.f32.mrb[171].mxu0 }
 0x588   :  { %v3336_v14 = vadd.f32 %v4827_v53, %v7239_v44  ;;  %v4897_v63 = vadd.f32 %v4896_v8, %v4895_v5  ;;  %v4830_v61 = vadd.f32 %v4829_v56, %v4828_v45  ;;  %v4898_v35 = vpop.f32.mrb[170].mxu1  ;;  %v7887_v56 = vld [vmem:[#allocation14_spill] sm:$0xff] }
 0x589   :  { %v4899_v25 = vpop.f32.mrb[171].mxu1 }
 0x58a   :  { %v3339_v9 = vadd.f32 %v4830_v61, %v7241_v41  ;;  %v4900_v0 = vadd.f32 %v4899_v25, %v4898_v35  ;;  %v7289_v54 = vadd.f32 %v4897_v63, %v3336_v14 }
 0x58c   :  { %v4831_v21 = vpop.f32.mrb[172].mxu0  ;;  %v7291_v26 = vadd.f32 %v4900_v0, %v3339_v9 }
 0x58d   :  { %v4832_v48 = vpop.f32.mrb[173].mxu0 }
 0x58e   :  { %v4833_v10 = vadd.f32 %v4832_v48, %v4831_v21  ;;  %v4901_v23 = vpop.f32.mrb[172].mxu1  ;;  %v4834_v1 = vpop.f32.mrb[174].mxu0  ;;  %v7889_v48 = vld [vmem:[#allocation12_spill] sm:$0xff] }
 0x58f   :  { %v4902_v24 = vpop.f32.mrb[173].mxu1  ;;  %v4835_v57 = vpop.f32.mrb[175].mxu0 }
 0x590   :  { %v3344_v44 = vadd.f32 %v4833_v10, %v7243_v60  ;;  %v4903_v22 = vadd.f32 %v4902_v24, %v4901_v23  ;;  %v4836_v62 = vadd.f32 %v4835_v57, %v4834_v1  ;;  %v4904_v27 = vpop.f32.mrb[174].mxu1 }
 0x591   :  { %v4905_v17 = vpop.f32.mrb[175].mxu1 }
 0x592   :  { %v3347_v41 = vadd.f32 %v4836_v62, %v7245_v58  ;;  %v4906_v42 = vadd.f32 %v4905_v17, %v4904_v27  ;;  %v7295_v7 = vadd.f32 %v4903_v22, %v3344_v44  ;;  %v7890_v44 = vld [vmem:[#allocation21_spill] sm:$0xff]  ;;  %v7891_v17 = vld [vmem:[#allocation18_spill] sm:$0xff] }
 0x594   :  { %v4837_v29 = vpop.f32.mrb[176].mxu0  ;;  %v7297_v46 = vadd.f32 %v4906_v42, %v3347_v41 }
 0x595   :  { %v4838_v34 = vpop.f32.mrb[177].mxu0 }
 0x596   :  { %v4839_v43 = vadd.f32 %v4838_v34, %v4837_v29  ;;  %v4907_v32 = vpop.f32.mrb[176].mxu1  ;;  %v4840_v6 = vpop.f32.mrb[178].mxu0 }
 0x597   :  { %v4908_v15 = vpop.f32.mrb[177].mxu1  ;;  %v4841_v12 = vpop.f32.mrb[179].mxu0 }
 0x598   :  { %v3352_v60 = vadd.f32 %v4839_v43, %v7247_v28  ;;  %v4909_v50 = vadd.f32 %v4908_v15, %v4907_v32  ;;  %v4842_v40 = vadd.f32 %v4841_v12, %v4840_v6  ;;  %v4910_v33 = vpop.f32.mrb[178].mxu1  ;;  %v7886_v28 = vld [vmem:[#allocation17_spill] sm:$0xff]  ;;  %v7892_v32 = vld [vmem:[#allocation16_spill] sm:$0xff] }
 0x599   :  { %v4911_v59 = vpop.f32.mrb[179].mxu1 }
 0x59a   :  { %v3355_v58 = vadd.f32 %v4842_v40, %v7249_v49  ;;  %v4912_v37 = vadd.f32 %v4911_v59, %v4910_v33  ;;  %v7301_v11 = vadd.f32 %v4909_v50, %v3352_v60  ;;  %v7893_v60 = vld [vmem:[#allocation15_spill] sm:$0xff] }
 0x59c   :  { %v3497_v4 = vpop.f32.mrb[180].mxu0  ;;  %v7303_v3 = vadd.f32 %v4912_v37, %v3355_v58  ;;  %v7894_v37 = vld [vmem:[#allocation25_spill] sm:$0xff] }
 0x59d   :  { %v3498_v52 = vadd.f32 %v3497_v4, %v7253_v39  ;;  %v5058_v2 = vpop.f32.mrb[181].mxu0  ;;  %v7888_v39 = vld [vmem:[#allocation13_spill] sm:$0xff] }
 0x59e   :  { %v3500_v53 = vpop.f32.mrb[182].mxu0 }
 0x59f   :  { %v3501_v5 = vadd.f32 %v3500_v53, %v7255_v36  ;;  %v5059_v45 = vpop.f32.mrb[183].mxu0  ;;  %v7308_v8 = vmul.f32 %v3498_v52, %v7886_v28  ;;  %v7895_v53 = vld [vmem:[#allocation22_spill] sm:$0xff] }
 0x5a1   :  { %v7311_v14 = vmul.f32 %v3501_v5, %v7887_v56 }
 0x5a3   :  { %v3586_v49 = vadd.f32 %v7311_v14, %v7308_v8 }
 0x5a4   :  { %v3505_v63 = vpop.f32.mrb[184].mxu0 }
 0x5a5   :  { %v3506_v61 = vadd.f32 %v3505_v63, %v7259_v38  ;;  %v5062_v35 = vpop.f32.mrb[185].mxu0 }
 0x5a6   :  { %v3508_v25 = vpop.f32.mrb[186].mxu0  ;;  %v7896_v35 = vld [vmem:[#allocation20_spill] sm:$0xff] }
 0x5a7   :  { %v7317_v9 = vmul.f32 %v3506_v61, %v7888_v39  ;;  %v3509_v36 = vadd.f32 %v3508_v25, %v7261_v30  ;;  %v5063_v0 = vpop.f32.mrb[187].mxu0 }
 0x5a9   :  { %v3587_v21 = vadd.f32 %v3586_v49, %v7317_v9  ;;  %v7322_v10 = vmul.f32 %v3509_v36, %v7889_v48 }
 0x5ab   :  { %v3588_v23 = vadd.f32 %v3587_v21, %v7322_v10  ;;  %v7897_v21 = vld [vmem:[#allocation19_spill] sm:$0xff] }
 0x5ac   :  { %v3513_v1 = vpop.f32.mrb[188].mxu0 }
 0x5ad   :  { %v3514_v24 = vadd.f32 %v3513_v1, %v7265_v20  ;;  %v5066_v57 = vpop.f32.mrb[189].mxu0 }
 0x5ae   :  { %v3516_v38 = vpop.f32.mrb[190].mxu0 }
 0x5af   :  { %v7327_v22 = vmul.f32 %v3514_v24, %v7890_v44  ;;  %v3517_v62 = vadd.f32 %v3516_v38, %v7267_v13  ;;  %v5067_v27 = vpop.f32.mrb[191].mxu0 }
 0x5b1   :  { %v3589_v30 = vadd.f32 %v3588_v23, %v7327_v22  ;;  %v7332_v41 = vmul.f32 %v3517_v62, %v7891_v17  ;;  %v7898_v62 = vld [vmem:[#allocation29_spill] sm:$0xff] }
 0x5b3   :  { %v3590_v42 = vadd.f32 %v3589_v30, %v7332_v41 }
 0x5b4   :  { %v3521_v29 = vpop.f32.mrb[192].mxu0 }
 0x5b5   :  { %v3522_v34 = vadd.f32 %v3521_v29, %v7271_v47  ;;  %v5070_v43 = vpop.f32.mrb[193].mxu0  ;;  %v7899_v29 = vld [vmem:[#allocation26_spill] sm:$0xff] }
 0x5b6   :  { %v3524_v20 = vpop.f32.mrb[194].mxu0 }
 0x5b7   :  { %v7337_v6 = vmul.f32 %v3522_v34, %v7892_v32  ;;  %v3525_v15 = vadd.f32 %v3524_v20, %v7273_v55  ;;  %v5071_v12 = vpop.f32.mrb[195].mxu0 }
 0x5b9   :  { %v3591_v13 = vadd.f32 %v3590_v42, %v7337_v6  ;;  %v7342_v50 = vmul.f32 %v3525_v15, %v7893_v60 }
 0x5bb   :  { %v3592_v40 = vadd.f32 %v3591_v13, %v7342_v50 }
 0x5bc   :  { %v3529_v33 = vpop.f32.mrb[196].mxu0 }
 0x5bd   :  { %v3530_v59 = vadd.f32 %v3529_v33, %v7277_v51  ;;  %v5074_v58 = vpop.f32.mrb[197].mxu0 }
 0x5be   :  { %v3532_v47 = vpop.f32.mrb[198].mxu0 }
 0x5bf   :  { %v7347_v4 = vmul.f32 %v3530_v59, %v7894_v37  ;;  %v3533_v52 = vadd.f32 %v3532_v47, %v7279_v19  ;;  %v5075_v2 = vpop.f32.mrb[199].mxu0 }
 0x5c1   :  { %v3593_v55 = vadd.f32 %v3592_v40, %v7347_v4  ;;  %v7352_v5 = vmul.f32 %v3533_v52, %v7895_v53  ;;  %v7900_v40 = vld [vmem:[#allocation24_spill] sm:$0xff]  ;;  %v7901_v52 = vld [vmem:[#allocation23_spill] sm:$0xff] }
 0x5c3   :  { %v3594_v45 = vadd.f32 %v3593_v55, %v7352_v5 }
 0x5c4   :  { %v3537_v49 = vpop.f32.mrb[200].mxu0 }
 0x5c5   :  { %v3538_v63 = vadd.f32 %v3537_v49, %v7283_v16  ;;  %v5078_v61 = vpop.f32.mrb[201].mxu0 }
 0x5c6   :  { %v3540_v51 = vpop.f32.mrb[202].mxu0  ;;  %v5325_v61 = vld [vmem:[%s7656_s9 + $0x18] sm:$0xff]  }
 0x5c7   :  { %v7357_v25 = vmul.f32 %v3538_v63, %v7896_v35  ;;  %v3541_v36 = vadd.f32 %v3540_v51, %v7285_v18  ;;  %v5079_v0 = vpop.f32.mrb[203].mxu0  ;;  %v7902_v51 = vld [vmem:[#allocation33_spill] sm:$0xff] }
 0x5c9   :  { %v3595_v19 = vadd.f32 %v3594_v45, %v7357_v25  ;;  %v7362_v23 = vmul.f32 %v3541_v36, %v7897_v21 }
 0x5cb   :  { %v3596_v1 = vadd.f32 %v3595_v19, %v7362_v23 }
 0x5cc   :  { %v3545_v24 = vpop.f32.mrb[204].mxu0 }
 0x5cd   :  { %v3546_v57 = vadd.f32 %v3545_v24, %v7289_v54  ;;  %v5082_v38 = vpop.f32.mrb[205].mxu0  ;;  %v5322_v54 = vld [vmem:[%s7656_s9] sm:$0xff]   ;;  %v7903_v24 = vld [vmem:[#allocation30_spill] sm:$0xff] }
 0x5ce   :  { %v3548_v16 = vpop.f32.mrb[206].mxu0  ;;  %5093 = vmatpush3.bf16.msra.mxu1 %v5322_v54  ;;  %v5329_v54 = vld [vmem:[%s7656_s9 + $0x38] sm:$0xff]  }
 0x5cf   :  { %v7367_v27 = vmul.f32 %v3546_v57, %v7898_v62  ;;  %v3549_v30 = vadd.f32 %v3548_v16, %v7291_v26  ;;  %v5083_v42 = vpop.f32.mrb[207].mxu0  ;;  %v5323_v26 = vld [vmem:[%s7656_s9 + $0x8] sm:$0xff]   ;;  %5094 = vmatprep.subr.bf16.mxu1 %v7778_v31 }
 0x5d1   :  { %v3597_v18 = vadd.f32 %v3596_v1, %v7367_v27  ;;  %v7372_v34 = vmul.f32 %v3549_v30, %v7899_v29 }
 0x5d2   :  { %5095 = vmatpush3.bf16.msra.mxu1 %v5323_v26 }
 0x5d3   :  { %v3598_v43 = vadd.f32 %v3597_v18, %v7372_v34  ;;  %5096 = vmatprep.subr.bf16.mxu1 %v7778_v31  ;;  %v5328_v18 = vld [vmem:[%s7656_s9 + $0x30] sm:$0xff]  }
 0x5d4   :  { %v3553_v20 = vpop.f32.mrb[208].mxu0 }
 0x5d5   :  { %v3554_v15 = vadd.f32 %v3553_v20, %v7295_v7  ;;  %v5086_v12 = vpop.f32.mrb[209].mxu0  ;;  %v5324_v7 = vld [vmem:[%s7656_s9 + $0x10] sm:$0xff]  }
 0x5d6   :  { %v3556_v13 = vpop.f32.mrb[210].mxu0  ;;  %5097 = vmatpush3.bf16.msra.mxu1 %v5324_v7 }
 0x5d7   :  { %v7383_v33 = vmul.f32 %v3554_v15, %v7900_v40  ;;  %v3557_v59 = vadd.f32 %v3556_v13, %v7297_v46  ;;  %v5087_v58 = vpop.f32.mrb[211].mxu0  ;;  %5098 = vmatprep.subr.bf16.mxu1 %v7778_v31 }
 0x5d9   :  { %v3599_v47 = vadd.f32 %v3598_v43, %v7383_v33  ;;  %v7389_v2 = vmul.f32 %v3557_v59, %v7901_v52 }
 0x5da   :  { %5099 = vmatpush3.bf16.msra.mxu1 %v5325_v61 }
 0x5db   :  { %v3600_v55 = vadd.f32 %v3599_v47, %v7389_v2  ;;  %5100 = vmatprep.subr.bf16.mxu1 %v7778_v31 }
 0x5dc   :  { %v3561_v45 = vpop.f32.mrb[212].mxu0 }
 0x5dd   :  { %v3562_v46 = vadd.f32 %v3561_v45, %v7301_v11  ;;  %v5090_v49 = vpop.f32.mrb[213].mxu0  ;;  %v5326_v11 = vld [vmem:[%s7656_s9 + $0x20] sm:$0xff]  }
 0x5de   :  { %v3564_v63 = vpop.f32.mrb[214].mxu0  ;;  %5101 = vmatpush3.bf16.msra.mxu1 %v5326_v11 }
 0x5df   :  { %v7401_v36 = vmul.f32 %v3562_v46, %v7902_v51  ;;  %v3565_v0 = vadd.f32 %v3564_v63, %v7303_v3  ;;  %v5091_v19 = vpop.f32.mrb[215].mxu0  ;;  %v5327_v3 = vld [vmem:[%s7656_s9 + $0x28] sm:$0xff]   ;;  %5102 = vmatprep.subr.bf16.mxu1 %v7778_v31 }
 0x5e1   :  { %v3601_v1 = vadd.f32 %v3600_v55, %v7401_v36  ;;  %v7407_v57 = vmul.f32 %v3565_v0, %v7903_v24 }
 0x5e2   :  { %5103 = vmatpush3.bf16.msra.mxu1 %v5327_v3 }
 0x5e3   :  { %v3602_v38 = vadd.f32 %v3601_v1, %v7407_v57  ;;  %5104 = vmatprep.subr.bf16.mxu1 %v7778_v31 }
 0x5e5   :  { %v3603_v16 = vrot.slane %v3602_v38, 4 }
 0x5e6   :  { %5105 = vmatpush3.bf16.msra.mxu1 %v5328_v18 }
 0x5e7   :  { %v3604_v30 = vadd.f32 %v3603_v16, %v3602_v38  ;;  %5106 = vmatprep.subr.bf16.mxu1 %v7778_v31 }
 0x5e9   :  { %v3605_v42 = vrot.slane %v3604_v30, 2 }
 0x5ea   :  { %5107 = vmatpush3.bf16.msra.mxu1 %v5329_v54 }
 0x5eb   :  { %v3606_v43 = vadd.f32 %v3605_v42, %v3604_v30  ;;  %5112 = vmatprep.subr.bf16.mxu1 %v7778_v31 }
 0x5ed   :  { %v3607_v20 = vrot.slane %v3606_v43, 1 }
 0x5ef   :  { %v3608_v15 = vadd.f32 %v3607_v20, %v3606_v43 }
 0x5f1   :  { %v7426_v12 = vmul.f32 0.010204081, %v3608_v15 }
 0x5f3   :  { %v3610_v13 = vsub.f32 %v7308_v8, %v7426_v12  ;;  %v3611_v26 = vsub.f32 %v7311_v14, %v7426_v12  ;;  %v3612_v59 = vsub.f32 %v7317_v9, %v7426_v12  ;;  %v3613_v58 = vsub.f32 %v7322_v10, %v7426_v12 }
 0x5f4   :  { %v3614_v47 = vsub.f32 %v7327_v22, %v7426_v12  ;;  %v3615_v7 = vsub.f32 %v7332_v41, %v7426_v12  ;;  %v3616_v8 = vsub.f32 %v7337_v6, %v7426_v12  ;;  %v3617_v14 = vsub.f32 %v7342_v50, %v7426_v12 }
 0x5f5   :  { %v3618_v9 = vsub.f32 %v7347_v4, %v7426_v12  ;;  %v3619_v10 = vsub.f32 %v7352_v5, %v7426_v12  ;;  %v3620_v55 = vsub.f32 %v7357_v25, %v7426_v12  ;;  %v3621_v22 = vsub.f32 %v7362_v23, %v7426_v12 }
 0x5f6   :  { %v3622_v41 = vsub.f32 %v7367_v27, %v7426_v12  ;;  %v3623_v6 = vsub.f32 %v7372_v34, %v7426_v12  ;;  %v3624_v50 = vsub.f32 %v7383_v33, %v7426_v12  ;;  %v3625_v4 = vsub.f32 %v7389_v2, %v7426_v12 }
 0x5f7   :  { %v3626_v5 = vsub.f32 %v7401_v36, %v7426_v12  ;;  %v3627_v25 = vsub.f32 %v7407_v57, %v7426_v12  ;;  %v7466_v23 = vmul.f32 %v3610_v13, %v7886_v28  ;;  %v7469_v27 = vmul.f32 %v3611_v26, %v7887_v56 }
 0x5f8   :  { %v7472_v34 = vmul.f32 %v3612_v59, %v7888_v39  ;;  %v7479_v45 = vmul.f32 %v3613_v58, %v7889_v48  ;;  %v7482_v46 = vmul.f32 %v3614_v47, %v7890_v44  ;;  %v7487_v61 = vmul.f32 %v3615_v7, %v7891_v17 }
 0x5f9   :  { %v3646_v33 = vmul.f32 %v7466_v23, %v7466_v23  ;;  %v3647_v2 = vmul.f32 %v7469_v27, %v7469_v27  ;;  %v7492_v19 = vmul.f32 %v3616_v8, %v7892_v32  ;;  %v7497_v11 = vmul.f32 %v3617_v14, %v7893_v60 }
 0x5fa   :  { %v3648_v49 = vmul.f32 %v7472_v34, %v7472_v34  ;;  %v3649_v36 = vmul.f32 %v7479_v45, %v7479_v45  ;;  %v3650_v1 = vmul.f32 %v7482_v46, %v7482_v46  ;;  %v3651_v38 = vmul.f32 %v7487_v61, %v7487_v61 }
 0x5fb   :  { %v3664_v63 = vadd.f32 %v3647_v2, %v3646_v33  ;;  %v3636_v3 = vmul.f32 %v3618_v9, %v7894_v37  ;;  %v3652_v30 = vmul.f32 %v7492_v19, %v7492_v19  ;;  %v3637_v18 = vmul.f32 %v3619_v10, %v7895_v53 }
 0x5fc   :  { %v3653_v43 = vmul.f32 %v7497_v11, %v7497_v11  ;;  %v3638_v54 = vmul.f32 %v3620_v55, %v7896_v35  ;;  %v3639_v13 = vmul.f32 %v3621_v22, %v7897_v21  ;;  %v3640_v58 = vmul.f32 %v3622_v41, %v7898_v62 }
 0x5fd   :  { %v3665_v0 = vadd.f32 %v3664_v63, %v3648_v49  ;;  %v3654_v15 = vmul.f32 %v3636_v3, %v3636_v3  ;;  %v3655_v26 = vmul.f32 %v3637_v18, %v3637_v18  ;;  %v3641_v8 = vmul.f32 %v3623_v6, %v7899_v29 }
 0x5fe   :  { %v3656_v47 = vmul.f32 %v3638_v54, %v3638_v54  ;;  %v3657_v14 = vmul.f32 %v3639_v13, %v3639_v13  ;;  %v3642_v10 = vmul.f32 %v3624_v50, %v7900_v40  ;;  %v3658_v33 = vmul.f32 %v3640_v58, %v3640_v58 }
 0x5ff   :  { %v3666_v57 = vadd.f32 %v3665_v0, %v3649_v36  ;;  %v3643_v55 = vmul.f32 %v3625_v4, %v7901_v52  ;;  %v3659_v49 = vmul.f32 %v3641_v8, %v3641_v8  ;;  %v3644_v22 = vmul.f32 %v3626_v5, %v7902_v51 }
 0x600   :  { %v3660_v36 = vmul.f32 %v3642_v10, %v3642_v10  ;;  %v3645_v41 = vmul.f32 %v3627_v25, %v7903_v24  ;;  %v7518_v25 = vld [vmem:[%s7654_s7] ss:$0 sm:$0xff] }
 0x601   :  { %v3667_v16 = vadd.f32 %v3666_v57, %v3650_v1  ;;  %v3661_v1 = vmul.f32 %v3643_v55, %v3643_v55 }
 0x603   :  { %v3668_v42 = vadd.f32 %v3667_v16, %v3651_v38  ;;  %v3662_v38 = vmul.f32 %v3644_v22, %v3644_v22  ;;  %v3663_v16 = vmul.f32 %v3645_v41, %v3645_v41 }
 0x605   :  { %v3669_v20 = vadd.f32 %v3668_v42, %v3652_v30 }
 0x607   :  { %v3670_v12 = vadd.f32 %v3669_v20, %v3653_v43 }
 0x609   :  { %v3671_v59 = vadd.f32 %v3670_v12, %v3654_v15 }
 0x60b   :  { %v3672_v7 = vadd.f32 %v3671_v59, %v3655_v26 }
 0x60d   :  { %v3673_v9 = vadd.f32 %v3672_v7, %v3656_v47 }
 0x60f   :  { %v3674_v2 = vadd.f32 %v3673_v9, %v3657_v14 }
 0x611   :  { %v3675_v63 = vadd.f32 %v3674_v2, %v3658_v33 }
 0x613   :  { %v3676_v0 = vadd.f32 %v3675_v63, %v3659_v49 }
 0x615   :  { %v3677_v57 = vadd.f32 %v3676_v0, %v3660_v36  ;;  %v7525_v36 = vld [vmem:[%s7655_s8] ss:$0 sm:$0xff] }
 0x617   :  { %v3678_v6 = vadd.f32 %v3677_v57, %v3661_v1 }
 0x619   :  { %v3679_v30 = vadd.f32 %v3678_v6, %v3662_v38 }
 0x61b   :  { %v3680_v42 = vadd.f32 %v3679_v30, %v3663_v16 }
 0x61d   :  { %v3681_v50 = vrot.slane %v3680_v42, 4 }
 0x61f   :  { %v3682_v43 = vadd.f32 %v3681_v50, %v3680_v42 }
 0x621   :  { %v3683_v20 = vrot.slane %v3682_v43, 2 }
 0x623   :  { %v3684_v15 = vadd.f32 %v3683_v20, %v3682_v43 }
 0x625   :  { %v3685_v4 = vrot.slane %v3684_v15, 1 }
 0x627   :  { %v3686_v12 = vadd.f32 %v3685_v4, %v3684_v15 }
 0x629   :  { %v3687_v26 = vmul.f32 0.010204081, %v3686_v12 }
 0x62b   :  { %v3688_v59 = vadd.f32 1e-05, %v3687_v26 }
 0x62d   :  { %5340 = vrsqrt.f32 %v3688_v59 }
 0x637   :  { %v5341_v5 = vpop.eup %5340 }
 0x638   :  { %v7520_v47 = vmul.f32 %v5341_v5, %v3636_v3  ;;  %v3699_v7 = vmul.f32 %v5341_v5, %v3637_v18  ;;  %v3700_v14 = vmul.f32 %v5341_v5, %v3638_v54  ;;  %v3701_v9 = vmul.f32 %v5341_v5, %v3639_v13 }
 0x639   :  { %v3702_v33 = vmul.f32 %v5341_v5, %v3640_v58  ;;  %v3703_v2 = vmul.f32 %v5341_v5, %v3641_v8  ;;  %v3704_v49 = vmul.f32 %v5341_v5, %v3642_v10  ;;  %v3705_v63 = vmul.f32 %v5341_v5, %v3643_v55 }
 0x63a   :  { %v3706_v0 = vmul.f32 %v5341_v5, %v3644_v22  ;;  %v3707_v1 = vmul.f32 %v5341_v5, %v3645_v41  ;;  %v3724_v57 = vmul.f32 %v7518_v25, %v3699_v7  ;;  %v3725_v38 = vmul.f32 %v7518_v25, %v3700_v14 }
 0x63b   :  { %v3726_v3 = vmul.f32 %v7518_v25, %v3701_v9  ;;  %v3727_v18 = vmul.f32 %v7518_v25, %v3702_v33  ;;  %v3728_v54 = vmul.f32 %v7518_v25, %v3703_v2  ;;  %v3729_v13 = vmul.f32 %v7518_v25, %v3704_v49 }
 0x63c   :  { %v3730_v58 = vmul.f32 %v7518_v25, %v3705_v63  ;;  %v3731_v8 = vmul.f32 %v7518_v25, %v3706_v0  ;;  %v3732_v10 = vmul.f32 %v7518_v25, %v3707_v1  ;;  %v3749_v55 = vadd.f32 %v7525_v36, %v3724_v57 }
 0x63d   :  { %v3750_v22 = vadd.f32 %v7525_v36, %v3725_v38  ;;  %v3751_v41 = vadd.f32 %v7525_v36, %v3726_v3  ;;  %v3752_v6 = vadd.f32 %v7525_v36, %v3727_v18  ;;  %v3753_v16 = vadd.f32 %v7525_v36, %v3728_v54 }
 0x63e   :  { %v3754_v30 = vadd.f32 %v7525_v36, %v3729_v13  ;;  %v3755_v42 = vadd.f32 %v7525_v36, %v3730_v58  ;;  %v3756_v50 = vadd.f32 %v7525_v36, %v3731_v8  ;;  %v3757_v43 = vadd.f32 %v7525_v36, %v3732_v10 }
 0x63f   :  { %v3767_v20 = vmax.f32 %v3749_v55, 0.0  ;;  %v3768_v15 = vmax.f32 %v3750_v22, 0.0  ;;  %v3769_v4 = vmax.f32 %v3751_v41, 0.0  ;;  %v3770_v12 = vmax.f32 %v3752_v6, 0.0 }
 0x640   :  { %v3771_v26 = vmax.f32 %v3753_v16, 0.0  ;;  %v3772_v59 = vmax.f32 %v3754_v30, 0.0  ;;  %v3773_v7 = vmax.f32 %v3755_v42, 0.0  ;;  %v3774_v14 = vmax.f32 %v3756_v50, 0.0 }
 0x641   :  { %v3775_v9 = vmax.f32 %v3757_v43, 0.0  ;;  %v3785_v33 = vmul.f32 %v3767_v20, %v7895_v53  ;;  %v3786_v2 = vmul.f32 %v3768_v15, %v7896_v35  ;;  %v3787_v49 = vmul.f32 %v3769_v4, %v7897_v21 }
 0x642   :  { %v3788_v63 = vmul.f32 %v3770_v12, %v7898_v62  ;;  %v3789_v0 = vmul.f32 %v3771_v26, %v7899_v29  ;;  %v3790_v1 = vmul.f32 %v3772_v59, %v7900_v40  ;;  %v3791_v57 = vmul.f32 %v3773_v7, %v7901_v52 }
 0x643   :  { %v3792_v38 = vmul.f32 %v3774_v14, %v7902_v51  ;;  %v3793_v3 = vmul.f32 %v3775_v9, %v7903_v24  ;;  %v3808_v18 = vmax.f32 %v3785_v33, %v3787_v49  ;;  %v3690_v54 = vmul.f32 %v5341_v5, %v7466_v23 }
 0x644   :  { %v3809_v53 = vmax.f32 %v3786_v2, %v3788_v63  ;;  %v3691_v35 = vmul.f32 %v5341_v5, %v7469_v27  ;;  %v3692_v21 = vmul.f32 %v5341_v5, %v7472_v34  ;;  %v3693_v62 = vmul.f32 %v5341_v5, %v7479_v45 }
 0x645   :  { %v3810_v13 = vmax.f32 %v3808_v18, %v3789_v0  ;;  %v3694_v29 = vmul.f32 %v5341_v5, %v7482_v46  ;;  %v3695_v40 = vmul.f32 %v5341_v5, %v7487_v61  ;;  %v3696_v52 = vmul.f32 %v5341_v5, %v7492_v19 }
 0x646   :  { %v3811_v51 = vmax.f32 %v3809_v53, %v3790_v1  ;;  %v3697_v24 = vmul.f32 %v5341_v5, %v7497_v11  ;;  %v3715_v58 = vmul.f32 %v7518_v25, %v3690_v54  ;;  %v3716_v23 = vmul.f32 %v7518_v25, %v3691_v35 }
 0x647   :  { %v3812_v8 = vmax.f32 %v3810_v13, %v3791_v57  ;;  %v3717_v27 = vmul.f32 %v7518_v25, %v3692_v21  ;;  %v3718_v34 = vmul.f32 %v7518_v25, %v3693_v62  ;;  %v3719_v45 = vmul.f32 %v7518_v25, %v3694_v29 }
 0x648   :  { %v3813_v10 = vmax.f32 %v3811_v51, %v3792_v38  ;;  %v3720_v46 = vmul.f32 %v7518_v25, %v3695_v40  ;;  %v3721_v61 = vmul.f32 %v7518_v25, %v3696_v52  ;;  %v3722_v19 = vmul.f32 %v7518_v25, %v3697_v24 }
 0x649   :  { %v3814_v55 = vmax.f32 %v3812_v8, %v3793_v3  ;;  %v3723_v11 = vmul.f32 %v7518_v25, %v7520_v47  ;;  %v3740_v5 = vadd.f32 %v7525_v36, %v3715_v58  ;;  %v3741_v22 = vadd.f32 %v7525_v36, %v3716_v23 }
 0x64a   :  { %v3742_v41 = vadd.f32 %v7525_v36, %v3717_v27  ;;  %v3743_v6 = vadd.f32 %v7525_v36, %v3718_v34  ;;  %v3744_v16 = vadd.f32 %v7525_v36, %v3719_v45  ;;  %v3745_v30 = vadd.f32 %v7525_v36, %v3720_v46  ;;  %v5330_v34 = vld [vmem:[%s7658_s11] sm:$0xff]   ;;  %v5332_v46 = vld [vmem:[%s7658_s11 + $0x10] sm:$0xff]  }
 0x64b   :  { %v3815_v42 = vmax.f32 %v3814_v55, %v3813_v10  ;;  %v3746_v50 = vadd.f32 %v7525_v36, %v3721_v61  ;;  %v3747_v43 = vadd.f32 %v7525_v36, %v3722_v19  ;;  %v3748_v20 = vadd.f32 %v7525_v36, %v3723_v11  ;;  %v5331_v10 = vld [vmem:[%s7658_s11 + $0x8] sm:$0xff]   ;;  %v5333_v61 = vld [vmem:[%s7658_s11 + $0x18] sm:$0xff]   ;;  %v5334_v19 = vld [vmem:[%s7658_s11 + $0x20] sm:$0xff]  }
 0x64c   :  { %v3758_v25 = vmax.f32 %v3740_v5, 0.0  ;;  %v3759_v47 = vmax.f32 %v3741_v22, 0.0  ;;  %v3760_v15 = vmax.f32 %v3742_v41, 0.0  ;;  %v3761_v4 = vmax.f32 %v3743_v6, 0.0  ;;  %v5335_v55 = vld [vmem:[%s7658_s11 + $0x28] sm:$0xff]   ;;  %v5336_v11 = vld [vmem:[%s7658_s11 + $0x30] sm:$0xff]  }
 0x64d   :  { %v3816_v12 = vrot.slane %v3815_v42, 4  ;;  %v3762_v26 = vmax.f32 %v3744_v16, 0.0  ;;  %v3763_v59 = vmax.f32 %v3745_v30, 0.0  ;;  %v3764_v7 = vmax.f32 %v3746_v50, 0.0  ;;  %v5337_v5 = vld [vmem:[%s7658_s11 + $0x38] sm:$0xff]  }
 0x64e   :  { %v3776_v14 = vmul.f32 %v3758_v25, %v7886_v28  ;;  %v3777_v9 = vmul.f32 %v3759_v47, %v7887_v56  ;;  %v3765_v2 = vmax.f32 %v3747_v43, 0.0  ;;  %v3778_v49 = vmul.f32 %v3760_v15, %v7888_v39  ;;  %v4307_v22 = vld [vmem:[%s7657_s10] ss:$0 sm:$0xff]  ;;  %s5429_s10 = smov [#allocation7]  }
 0x64f   :  { %v3817_v33 = vmax.f32 %v3815_v42, %v3816_v12  ;;  %v3779_v63 = vmul.f32 %v3761_v4, %v7889_v48  ;;  %v3766_v0 = vmax.f32 %v3748_v20, 0.0  ;;  %v3780_v36 = vmul.f32 %v3762_v26, %v7890_v44  ;;  %v4316_v20 = vld [vmem:[%s7659_s12] ss:$0 sm:$0xff]  ;;  %s4084_s11 = sshll.u32 %s5429_s10, 4  ;;  %s4085_s11 = int_to_ptr.vmem [resolvable:$true] %s4084_s11 }
 0x650   :  { %v3781_v1 = vmul.f32 %v3763_v59, %v7891_v17  ;;  %v3794_v57 = vmax.f32 %v3776_v14, %v3778_v49  ;;  %v3782_v18 = vmul.f32 %v3764_v7, %v7892_v32  ;;  %v3783_v28 = vmul.f32 %v3765_v2, %v7893_v60  ;;  %s5392_s12 = scalar_lea.vmem %s4085_s11, 32  ;;  %p5397_p3 = scmp.lt.s32.totalorder %s4085_s11, %s4085_s11 }
 0x651   :  { %v3795_v38 = vmax.f32 %v3777_v9, %v3779_v63  ;;  %v3818_v3 = vrot.slane %v3817_v33, 2  ;;  %v3784_v53 = vmul.f32 %v3766_v0, %v7894_v37  ;;  %p5393_p2 = scmp.ne.s32.totalorder %s4085_s11, %s5392_s12  ;;  %p5398_p4 = scmp.lt.s32.totalorder %s5392_s12, %s5392_s12 }
 0x652   :  { %v3796_v54 = vmax.f32 %v3794_v57, %v3780_v36 }
 0x653   :  { %v3797_v56 = vmax.f32 %v3795_v38, %v3781_v1  ;;  %v3819_v21 = vmax.f32 %v3817_v33, %v3818_v3  ;;  %p5399_p5 = por %p5398_p4, %p5397_p3 }
 0x654   :  { %v3798_v35 = vmax.f32 %v3796_v54, %v3782_v18 }
 0x655   :  { %v3799_v39 = vmax.f32 %v3797_v56, %v3783_v28  ;;  %v3820_v13 = vrot.slane %v3819_v21, 1  ;;  %p5400_p6 = pnand %p5399_p5, %p5393_p2 }
 0x656   :  { %v3800_v48 = vmax.f32 %v3798_v35, %v3784_v53 }
 0x657   :  { %v3821_v17 = vmax.f32 %v3819_v21, %v3820_v13 }
 0x658   :  { %v3801_v62 = vmax.f32 %v3800_v48, %v3799_v39 }
 0x659   :  { %v3823_v51 = vmax.f32 %v3821_v17, 0.0 }
 0x65a   :  { %v3802_v44 = vrot.slane %v3801_v62, 4 }
 0x65b   :  { %v3825_v58 = vpack.c.bf16 %v3823_v51, %v3823_v51 }
 0x65c   :  { %v3803_v29 = vmax.f32 %v3801_v62, %v3802_v44 }
 0x65d   :  { %v3852_v8 = vunpack.c.l.b16 %v3825_v58 }
 0x65e   :  { %v3804_v40 = vrot.slane %v3803_v29, 2 }
 0x660   :  { %v3805_v52 = vmax.f32 %v3803_v29, %v3804_v40 }
 0x662   :  { %v3806_v24 = vrot.slane %v3805_v52, 1 }
 0x664   :  { %v3807_v32 = vmax.f32 %v3805_v52, %v3806_v24 }
 0x666   :  { %v3822_v60 = vmax.f32 %v3807_v32, 0.0 }
 0x668   :  { %v3824_v23 = vpack.c.bf16 %v3822_v60, %v3822_v60 }
 0x66a   :  { %v3851_v37 = vunpack.c.l.b16 %v3824_v23 }
 0x66c   :  { %v3854_v27 = vsel %vm3853_vm0, %v3852_v8, %v3851_v37 }
 0x66d   :  { %v3855_v45 = vpack.c.b16 %v3854_v27, %v3854_v27 }
 0x66f   :  { %5109 = vmatmul.mubr.bf16.vlgmr.msra.gmra.mrb[180].mxu1 %v3855_v45 }
 0x670   :  { %5113 = vmatpush3.bf16.msra.mxu1 %v5330_v34  ;;  %5128 = vmatprep.mubr.msk.bf16.mxu1 %vm5428_vm1, %v7778_v31 }
 0x671   :  { %5114 = vmatprep.subr.bf16.mxu1 %v7778_v31 }
 0x674   :  { %5115 = vmatpush3.bf16.msra.mxu1 %v5331_v10 }
 0x675   :  { %5116 = vmatprep.subr.bf16.mxu1 %v7778_v31 }
 0x678   :  { %5117 = vmatpush3.bf16.msra.mxu1 %v5332_v46 }
 0x679   :  { %5118 = vmatprep.subr.bf16.mxu1 %v7778_v31 }
 0x67c   :  { %5119 = vmatpush3.bf16.msra.mxu1 %v5333_v61 }
 0x67d   :  { %5120 = vmatprep.subr.bf16.mxu1 %v7778_v31 }
 0x680   :  { %5121 = vmatpush3.bf16.msra.mxu1 %v5334_v19 }
 0x681   :  { %5122 = vmatprep.subr.bf16.mxu1 %v7778_v31 }
 0x684   :  { %5123 = vmatpush3.bf16.msra.mxu1 %v5335_v55 }
 0x685   :  { %5124 = vmatprep.subr.bf16.mxu1 %v7778_v31 }
 0x688   :  { %5125 = vmatpush3.bf16.msra.mxu1 %v5336_v11 }
 0x689   :  { %5126 = vmatprep.subr.bf16.mxu1 %v7778_v31  ;;  %v7904_v31 = vld [vmem:[#allocation11_spill] sm:$0xff] }
 0x68a   :  { %vm4058_vm1 = vcmp.lt.s32.totalorder %v7904_v31, 7  ;;  %vm4059_vm3 = vcmp.eq.s32.totalorder %v7904_v31, 7 }
 0x68c   :  { %5127 = vmatpush3.bf16.msra.mxu1 %v5337_v5 }
 0x742   :  { %v3939_v41 = vpop.f32.mrb[180].mxu1 }
 0x743   :  { %v3940_v6 = vadd.f32 %v4307_v22, %v3939_v41  ;;  %v5110_v16 = vpop.f32.mrb[181].mxu1 }
 0x744   :  { %v3942_v30 = vpop.f32.mrb[182].mxu1 }
 0x745   :  { %5342 = vtanh.f32 %v3940_v6  ;;  %v5111_v42 = vpop.f32.mrb[183].mxu1 }
 0x74f   :  { %v5343_v50 = vpop.eup %5342 }
 0x750   :  { %v3946_v43 = vpack.c.bf16 %v5343_v50, %v5343_v50 }
 0x752   :  { %5129 = vmatmul.mubr.bf16.vlgmr.msra.gmra.mrb[184].mxu1 %v3946_v43 }
 0x825   :  { %v4052_v25 = vpop.f32.mrb[184].mxu1 }
 0x826   :  { %v4053_v47 = vadd.f32 %v4316_v20, %v4052_v25  ;;  %v5130_v15 = vpop.f32.mrb[185].mxu1 }
 0x827   :  { %v4055_v4 = vpop.f32.mrb[186].mxu1 }
 0x828   :  { %v5131_v12 = vpop.f32.mrb[187].mxu1  ;;  %v4060_v26 = vsel %vm4058_vm1, %v4053_v47, -inf  ;;  %v4075_v57 = vsel %vm4059_vm3, %v4053_v47, 0.0 }
 0x829   :  { %v4062_v59 = vsel %vm4061_vm2, %v4060_v26, -inf }
 0x82a   :  { %4063 = vmax.xlane.f32.xlu0 %v4062_v59 }
 0x8b7   :  { %v4064_v7 = vpop.xlane.xlu0 %4063 }
 0x8b8   :  { %v4065_v14 = vsub.f32 %v4060_v26, %v4064_v7 }
 0x8ba   :  { %v4066_v9 = vmul.f32 1.442695, %v4065_v14 }
 0x8bc   :  { %5344 = vpow2.f32 %v4066_v9 }
 0x8c6   :  { %v5345_v33 = vpop.eup %5344 }
 0x8c7   :  { %v4068_v2 = vsel %vm4061_vm2, %v5345_v33, 0.0 }
 0x8c8   :  { %4069 = vadd.xlane.f32.xlu1 %v4068_v2 }
 0x955   :  { %v4070_v49 = vpop.xlane.xlu1 %4069 }
 0x956   :  { %5346 = vlog2.f32 %v4070_v49 }
 0x960   :  { %v5347_v63 = vpop.eup %5346 }
 0x961   :  { %v4072_v0 = vmul.f32 0.6931472, %v5347_v63 }
 0x963   :  { %v4073_v36 = vadd.f32 %v4072_v0, %v4064_v7 }
 0x965   :  { %v4074_v1 = vsub.f32 %v4053_v47, %v4073_v36 }
 0x967   :  { %v4076_v38 = vsel %vm4058_vm1, %v4074_v1, %v4075_v57 }
 0x968   :  { %4077 = vst [vmem:[#allocation7] sm:$0x3] %v4076_v38 }
 0x969   :  { %5403 = shalt.err (!%p5400_p6)
}
 0x96a   :  { %s5404_s24 = scalar_lea.hbm %s7660_s13, 32 }
 0x96b   :  { %p5405_p7 = scmp.ne.s32.totalorder %s7660_s13, %s5404_s24  ;;  %p5408_p8 = scmp.lt.u32.totalorder %s5404_s24, %s7660_s13 }
 0x96d   :  { %p5410_p9 = pnand %p5408_p8, %p5405_p7 }
 0x96f   :  { %5413 = shalt.err (!%p5410_p9)
}
 0x970   :  { %4087 = dma.vmem_to_hbm [thread:$0]  %s4085_s11, 32, %s7660_s13, [#allocation4]  }
 0x971   :  { %5418 = dma.done.wait [#allocation4], 32  }
 0x972   :  { %5419 = vsyncadd [#allocation4], 4294967264 }
 0x973   :  { %4091 = vsyncpa [#allocation3], 1 }
 0x974   :  { %4092 = vsyncpa [#allocation6], 1 }
 0x975   :  { %4093 = vsyncpa [#allocation4], 1 }

</bundles_post_ra>
